<compile_context>
chip_gen: v7x
topology: tpu7x:2x2x1
jax: 0.10.0
libtpu: 0.0.40
codegen_flags: <defaults>
</compile_context>

<pallas_src>
import functools
from collections import OrderedDict

import numpy as np
import jax
import jax.numpy as jnp
from jax import lax
from jax.experimental import pallas as pl
from jax.experimental.pallas import tpu as pltpu


_VMEM_LIMIT = 48 * 1024 * 1024   # leaves headroom on v7x (64 MiB physical VMEM)


def _pick_tk(c_in):
    """Input-channel chunk: a multiple of 128 (MXU lanes) that divides C_in."""
    for cand in (256, 128):
        if c_in % cand == 0 and c_in > cand:
            return cand
    return c_in


# --------------------------------------------------------------------------
# Kernel 1: fused 3x3 conv (pad=1, no bias) + BN(eval) + ReLU + 1x1 conv
# --------------------------------------------------------------------------
def _fcn_head_kernel(x_ref, w1_ref, scale_ref, shift_ref, w2_ref, out_ref,
                     acc_ref, *, n_rows, Wp):
    # x_ref:     (1, (H+3)*Wp, tk)  bf16  flattened zero-padded NHWC rows,
    #                                     one batch element, one C_in chunk
    # w1_ref:    (9, tk, C_mid)     bf16  3x3 conv weight, taps-major
    # scale_ref: (1, C_mid)         f32   folded BN scale  (gamma/sqrt(var+eps))
    # shift_ref: (1, C_mid)         f32   folded BN shift  (beta - mean*scale)
    # w2_ref:    (C_mid, C_pad)     bf16  1x1 conv weight, lane-padded classes
    # out_ref:   (1, n_rows, C_pad) f32   n_rows = H*Wp (cols W..Wp-1 are junk,
    #                                     sliced off by the wrapper)
    # acc_ref:   (n_rows, C_mid)    f32   VMEM scratch accumulator
    k = pl.program_id(1)

    @pl.when(k == 0)
    def _init():
        acc_ref[...] = jnp.zeros_like(acc_ref)

    # 3x3 conv over this input-channel chunk: each tap is a contiguous
    # sublane-offset window of the flattened padded plane -> one MXU matmul.
    acc = acc_ref[...]
    for dy in range(3):
        for dx in range(3):
            off = dy * Wp + dx
            acc = acc + jnp.dot(x_ref[0, off:off + n_rows, :],
                                w1_ref[dy * 3 + dx],
                                preferred_element_type=jnp.float32)
    acc_ref[...] = acc

    @pl.when(k == pl.num_programs(1) - 1)
    def _finalize():
        # BatchNorm (eval) + ReLU in f32.  Dropout is the identity at inference.
        y = jnp.maximum(acc * scale_ref[...] + shift_ref[...], 0.0)
        out_ref[0] = jnp.dot(y.astype(jnp.bfloat16), w2_ref[...],
                             preferred_element_type=jnp.float32)


def fcn_head_apply(x_flat, H, W, w1, scale, shift, w2p):
    """x_flat: (N, (H+3)*(W+2), C_in) bf16 -> (N, H*(W+2), C_pad) f32."""
    N, n_pad_rows, C_in = x_flat.shape
    Wp = W + 2
    n_rows = H * Wp
    assert n_pad_rows == (H + 3) * Wp
    C_mid = w1.shape[2]
    C_pad = w2p.shape[1]
    tk = _pick_tk(C_in)
    n_k = C_in // tk

    kernel = functools.partial(_fcn_head_kernel, n_rows=n_rows, Wp=Wp)
    return pl.pallas_call(
        kernel,
        out_shape=jax.ShapeDtypeStruct((N, n_rows, C_pad), jnp.float32),
        grid_spec=pltpu.PrefetchScalarGridSpec(
            num_scalar_prefetch=0,
            grid=(N, n_k),
            in_specs=[
                pl.BlockSpec((1, n_pad_rows, tk), lambda n, k: (n, 0, k)),
                pl.BlockSpec((9, tk, C_mid), lambda n, k: (0, k, 0)),
                pl.BlockSpec((1, C_mid), lambda n, k: (0, 0)),
                pl.BlockSpec((1, C_mid), lambda n, k: (0, 0)),
                pl.BlockSpec((C_mid, C_pad), lambda n, k: (0, 0)),
            ],
            out_specs=pl.BlockSpec((1, n_rows, C_pad), lambda n, k: (n, 0, 0)),
            scratch_shapes=[pltpu.VMEM((n_rows, C_mid), jnp.float32)],
        ),
        compiler_params=pltpu.CompilerParams(
            dimension_semantics=("parallel", "arbitrary"),
            vmem_limit_bytes=_VMEM_LIMIT),
    )(x_flat, w1, scale, shift, w2p)


# --------------------------------------------------------------------------
# Kernel 2: bilinear upsample (align_corners=False) as two matmuls per channel
# --------------------------------------------------------------------------
def _bilinear_kernel(x_ref, a_ref, bt_ref, out_ref, *, Cb):
    # x_ref: (1, Cb, H, W); a_ref: (Ho, H); bt_ref: (W, Wo); out_ref: (1, Cb, Ho, Wo)
    a = a_ref[...]
    bt = bt_ref[...]
    for c in range(Cb):
        t = jnp.dot(a, x_ref[0, c], preferred_element_type=jnp.float32)
        out_ref[0, c] = jnp.dot(t, bt, preferred_element_type=jnp.float32)


def _interp_matrix(out_size, in_size):
    # Matches PyTorch nn.Upsample(mode='bilinear', align_corners=False).
    scale = in_size / out_size
    o = np.arange(out_size, dtype=np.float64)
    src = np.maximum((o + 0.5) * scale - 0.5, 0.0)
    i0 = np.minimum(np.floor(src).astype(np.int64), in_size - 1)
    i1 = np.minimum(i0 + 1, in_size - 1)
    w1 = (src - i0).astype(np.float32)
    w0 = 1.0 - w1
    M = np.zeros((out_size, in_size), dtype=np.float32)
    M[np.arange(out_size), i0] += w0
    M[np.arange(out_size), i1] += w1
    return jnp.asarray(M)


def bilinear_upsample_nchw(x_nchw, out_size):
    N, C, H, W = x_nchw.shape
    Ho = Wo = int(out_size)
    A = _interp_matrix(Ho, H)            # (Ho, H)
    Bt = _interp_matrix(Wo, W).T         # (W, Wo)
    Cb = C if C <= 32 else 32            # all classes per step for typical heads
    kernel = functools.partial(_bilinear_kernel, Cb=Cb)
    return pl.pallas_call(
        kernel,
        out_shape=jax.ShapeDtypeStruct((N, C, Ho, Wo), jnp.float32),
        grid_spec=pltpu.PrefetchScalarGridSpec(
            num_scalar_prefetch=0,
            grid=(N, pl.cdiv(C, Cb)),
            in_specs=[
                pl.BlockSpec((1, Cb, H, W), lambda n, c: (n, c, 0, 0)),
                pl.BlockSpec((Ho, H), lambda n, c: (0, 0)),
                pl.BlockSpec((W, Wo), lambda n, c: (0, 0)),
            ],
            out_specs=pl.BlockSpec((1, Cb, Ho, Wo), lambda n, c: (n, c, 0, 0)),
        ),
        compiler_params=pltpu.CompilerParams(
            dimension_semantics=("parallel", "parallel"),
            vmem_limit_bytes=_VMEM_LIMIT),
    )(x_nchw, A, Bt)


# --------------------------------------------------------------------------
# Parameter init (deterministic, mirrors make_fcn_head shapes)
# --------------------------------------------------------------------------
def init_fcn_head_params(key, in_channels, inter_channels, num_classes):
    k1, k2, k3, k4 = jax.random.split(key, 4)
    # Conv2d(in, inter, 3, padding=1, bias=False): weight (inter, in, 3, 3)
    w_conv1 = 0.05 * jax.random.normal(k1, (inter_channels, in_channels, 3, 3),
                                       jnp.float32)
    # BatchNorm2d(inter), eval-mode running stats
    gamma = 1.0 + 0.1 * jax.random.normal(k2, (inter_channels,), jnp.float32)
    beta = 0.1 * jax.random.normal(k3, (inter_channels,), jnp.float32)
    running_mean = jnp.zeros((inter_channels,), jnp.float32)
    running_var = jnp.ones((inter_channels,), jnp.float32)
    eps = 1e-5
    # Conv2d(inter, num_classes, 1, bias=False): weight (num_classes, inter, 1, 1)
    w_conv2 = 0.05 * jax.random.normal(k4, (num_classes, inter_channels, 1, 1),
                                       jnp.float32)

    # Kernel-side packing: taps-major bf16 3x3 weight, folded BN affine (f32),
    # lane-padded bf16 1x1 weight.
    inv_std = gamma / jnp.sqrt(running_var + eps)
    w1 = jnp.transpose(w_conv1, (2, 3, 1, 0)).reshape(
        9, in_channels, inter_channels).astype(jnp.bfloat16)
    scale = inv_std.reshape(1, inter_channels)
    shift = (beta - running_mean * inv_std).reshape(1, inter_channels)
    w2 = jnp.transpose(w_conv2[:, :, 0, 0], (1, 0))           # (C_mid, C_out)
    c_pad = ((num_classes + 127) // 128) * 128
    w2p = jnp.zeros((inter_channels, c_pad), jnp.float32)
    w2p = w2p.at[:, :num_classes].set(w2).astype(jnp.bfloat16)
    return dict(w1=w1, scale=scale, shift=shift, w2=w2p,
                num_classes=num_classes, w_conv1=w_conv1, w_conv2=w_conv2)


# --------------------------------------------------------------------------
# FCNHead.forward (inference / eval path)
# --------------------------------------------------------------------------
def _prep_input(x_nchw):
    """NCHW f32 -> bf16 NHWC, zero-padded (top 1 / bottom 2 / left-right 1),
    flattened to (N, (H+3)*(W+2), C) rows.  Done once and shared by all tasks."""
    N, C, H, W = x_nchw.shape
    x = jnp.transpose(x_nchw.astype(jnp.bfloat16), (0, 2, 3, 1))
    x = jnp.pad(x, ((0, 0), (1, 2), (1, 1), (0, 0)))
    return x.reshape(N, (H + 3) * (W + 2), C), H, W


def _head_seg_nchw(x_flat, H, W, p):
    seg_flat = fcn_head_apply(x_flat, H, W, p["w1"], p["scale"], p["shift"],
                              p["w2"])
    N = x_flat.shape[0]
    seg = seg_flat.reshape(N, H, W + 2, -1)[:, :, :W, :p["num_classes"]]
    return jnp.transpose(seg, (0, 3, 1, 2))                   # NCHW


def fcn_head_forward(feats, params_per_task, input_shape=480):
    assert isinstance(feats, (dict, OrderedDict))
    feats = OrderedDict(feats)
    _, x_nchw = feats.popitem()                 # last feature map (NCHW)
    x_flat, H, W = _prep_input(x_nchw)          # pad/transpose/cast hoisted
    outputs = {}
    for task, p in params_per_task.items():
        seg_nchw = _head_seg_nchw(x_flat, H, W, p)
        outputs[task] = bilinear_upsample_nchw(seg_nchw, input_shape)
    return outputs


# --------------------------------------------------------------------------
# Pure-JAX references (same bf16 operand rounding, f32 accumulation)
# --------------------------------------------------------------------------
def _round_bf16(a):
    return a.astype(jnp.bfloat16).astype(jnp.float32)


def _ref_head_nchw(x_nchw, p):
    y = lax.conv_general_dilated(
        _round_bf16(x_nchw), _round_bf16(p["w_conv1"]),
        window_strides=(1, 1), padding=((1, 1), (1, 1)),
        dimension_numbers=("NCHW", "OIHW", "NCHW"),
        precision=lax.Precision.HIGHEST)
    y = jnp.maximum(y * p["scale"].reshape(1, -1, 1, 1)
                    + p["shift"].reshape(1, -1, 1, 1), 0.0)
    w2 = _round_bf16(p["w_conv2"][:, :, 0, 0])                # (C_out, C_mid)
    return jnp.einsum("oc,nchw->nohw", w2, _round_bf16(y),
                      precision=lax.Precision.HIGHEST)


if __name__ == "__main__":
    key = jax.random.PRNGKey(0)
    # Small shapes consistent with the module (in_channels, inter = in // 4).
    num_classes = {"cityscapes": 5, "voc": 3}
    in_channels = 256
    inter_channels = in_channels // 4
    N, H, W = 2, 16, 16
    input_shape = 64

    kx, kp = jax.random.split(key)
    # Backbone feature dict: forward() uses the LAST entry via popitem().
    feats = OrderedDict()
    feats["aux"] = jax.random.normal(kx, (N, in_channels // 2, H, W),
                                     jnp.float32)
    feats["out"] = jax.random.normal(jax.random.fold_in(kx, 1),
                                     (N, in_channels, H, W), jnp.float32)

    params = {
        task: init_fcn_head_params(jax.random.fold_in(kp, i), in_channels,
                                   inter_channels, nc)
        for i, (task, nc) in enumerate(num_classes.items())
    }

    outs = fcn_head_forward(feats, params, input_shape=input_shape)
    outs = {t: jax.block_until_ready(o) for t, o in outs.items()}

    # Shape checks.
    for task, nc in num_classes.items():
        assert outs[task].shape == (N, nc, input_shape, input_shape)

    # Fused-head kernel vs pure-JAX reference (same bf16 operand rounding).
    x_last = feats["out"]
    x_flat, Hh, Ww = _prep_input(x_last)
    seg = _head_seg_nchw(x_flat, Hh, Ww, params["cityscapes"])
    ref = _ref_head_nchw(x_last, params["cityscapes"])
    assert jnp.allclose(seg, ref, rtol=1e-2, atol=1e-2)

    # Upsample kernel vs dense interpolation-matrix reference.
    A = _interp_matrix(input_shape, H)
    B = _interp_matrix(input_shape, W)
    up_ref = jnp.einsum("oh,nchw,pw->ncop", A, seg, B,
                        precision=lax.Precision.HIGHEST)
    assert jnp.allclose(outs["cityscapes"], up_ref, rtol=1e-3, atol=1e-3)

    print("KERNEL_OK")
</pallas_src>

<mosaic_0001>
module attributes {stable_mosaic.version = 11 : i64} {
  func.func @_fcn_head_kernel(%arg0: i32, %arg1: i32, %arg2: memref<1x342x128xbf16, #tpu.memory_space<vmem>>, %arg3: memref<9x128x64xbf16, #tpu.memory_space<vmem>>, %arg4: memref<1x64xf32, #tpu.memory_space<vmem>>, %arg5: memref<1x64xf32, #tpu.memory_space<vmem>>, %arg6: memref<64x128xbf16, #tpu.memory_space<vmem>>, %arg7: memref<1x288x128xf32, #tpu.memory_space<vmem>>, %arg8: memref<288x64xf32, #tpu.memory_space<vmem>>) attributes {dimension_semantics = [#tpu.dimension_semantics<parallel>, #tpu.dimension_semantics<arbitrary>], iteration_bounds = array<i64: 2, 2>, scalar_prefetch = 0 : i64, scratch_operands = 1 : i64, tpu.core_type = #tpu.core_type<tc>, window_params = [{transform_indices = @transform_0, window_bounds = array<i64: 1, 342, 128>}, {transform_indices = @transform_1, window_bounds = array<i64: 9, 128, 64>}, {pipeline_mode = #tpu.pipeline_mode<synchronous>, transform_indices = @transform_2, window_bounds = array<i64: 1, 64>}, {pipeline_mode = #tpu.pipeline_mode<synchronous>, transform_indices = @transform_3, window_bounds = array<i64: 1, 64>}, {pipeline_mode = #tpu.pipeline_mode<synchronous>, transform_indices = @transform_4, window_bounds = array<i64: 64, 128>}, {transform_indices = @transform_5, window_bounds = array<i64: 1, 288, 128>}]} {
    %c0_i32 = arith.constant 0 : i32
    %0 = arith.cmpi eq, %arg1, %c0_i32 : i32
    %1 = arith.extui %0 : i1 to i32
    %c0_i32_0 = arith.constant 0 : i32
    %2 = arith.cmpi ne, %1, %c0_i32_0 : i32
    scf.if %2 {
      %cst_53 = arith.constant 0.000000e+00 : f32
      %62 = vector.broadcast %cst_53 : f32 to vector<288x64xf32>
      %c0_54 = arith.constant 0 : index
      %c0_55 = arith.constant 0 : index
      %63 = vector.load %arg8[%c0_54, %c0_55] : memref<288x64xf32, #tpu.memory_space<vmem>>, vector<288x64xf32>
      tpu.vector_store %arg8[%c0_54, %c0_55], %62 {strides = array<i32>} : memref<288x64xf32, #tpu.memory_space<vmem>>, vector<288x64xf32>,
    } else {
    }
    %c0 = arith.constant 0 : index
    %c0_1 = arith.constant 0 : index
    %3 = vector.load %arg8[%c0, %c0_1] : memref<288x64xf32, #tpu.memory_space<vmem>>, vector<288x64xf32>
    %c0_2 = arith.constant 0 : index
    %c0_3 = arith.constant 0 : index
    %c0_4 = arith.constant 0 : index
    %4 = vector.load %arg2[%c0_2, %c0_3, %c0_4] : memref<1x342x128xbf16, #tpu.memory_space<vmem>>, vector<1x288x128xbf16>
    %5 = vector.shape_cast %4 : vector<1x288x128xbf16> to vector<288x128xbf16>
    %c0_5 = arith.constant 0 : index
    %c0_6 = arith.constant 0 : index
    %c0_7 = arith.constant 0 : index
    %6 = vector.load %arg3[%c0_5, %c0_6, %c0_7] : memref<9x128x64xbf16, #tpu.memory_space<vmem>>, vector<1x128x64xbf16>
    %7 = vector.shape_cast %6 : vector<1x128x64xbf16> to vector<128x64xbf16>
    %cst = arith.constant dense<0.000000e+00> : vector<288x64xf32>
    %8 = tpu.matmul %5, %7, %cst {dimension_numbers = #tpu.dot_dimension_numbers<[1], [0], [0], [1], [0, 0, 1, 1], [], []>} : vector<288x128xbf16>, vector<128x64xbf16>, vector<288x64xf32> -> vector<288x64xf32>
    %9 = arith.addf %3, %8 : vector<288x64xf32>
    %c0_8 = arith.constant 0 : index
    %c1 = arith.constant 1 : index
    %c0_9 = arith.constant 0 : index
    %10 = vector.load %arg2[%c0_8, %c1, %c0_9] : memref<1x342x128xbf16, #tpu.memory_space<vmem>>, vector<1x288x128xbf16>
    %11 = vector.shape_cast %10 : vector<1x288x128xbf16> to vector<288x128xbf16>
    %c1_10 = arith.constant 1 : index
    %c0_11 = arith.constant 0 : index
    %c0_12 = arith.constant 0 : index
    %12 = vector.load %arg3[%c1_10, %c0_11, %c0_12] : memref<9x128x64xbf16, #tpu.memory_space<vmem>>, vector<1x128x64xbf16>
    %13 = vector.shape_cast %12 : vector<1x128x64xbf16> to vector<128x64xbf16>
    %cst_13 = arith.constant dense<0.000000e+00> : vector<288x64xf32>
    %14 = tpu.matmul %11, %13, %cst_13 {dimension_numbers = #tpu.dot_dimension_numbers<[1], [0], [0], [1], [0, 0, 1, 1], [], []>} : vector<288x128xbf16>, vector<128x64xbf16>, vector<288x64xf32> -> vector<288x64xf32>
    %15 = arith.addf %9, %14 : vector<288x64xf32>
    %c0_14 = arith.constant 0 : index
    %c2 = arith.constant 2 : index
    %c0_15 = arith.constant 0 : index
    %16 = vector.load %arg2[%c0_14, %c2, %c0_15] : memref<1x342x128xbf16, #tpu.memory_space<vmem>>, vector<1x288x128xbf16>
    %17 = vector.shape_cast %16 : vector<1x288x128xbf16> to vector<288x128xbf16>
    %c2_16 = arith.constant 2 : index
    %c0_17 = arith.constant 0 : index
    %c0_18 = arith.constant 0 : index
    %18 = vector.load %arg3[%c2_16, %c0_17, %c0_18] : memref<9x128x64xbf16, #tpu.memory_space<vmem>>, vector<1x128x64xbf16>
    %19 = vector.shape_cast %18 : vector<1x128x64xbf16> to vector<128x64xbf16>
    %cst_19 = arith.constant dense<0.000000e+00> : vector<288x64xf32>
    %20 = tpu.matmul %17, %19, %cst_19 {dimension_numbers = #tpu.dot_dimension_numbers<[1], [0], [0], [1], [0, 0, 1, 1], [], []>} : vector<288x128xbf16>, vector<128x64xbf16>, vector<288x64xf32> -> vector<288x64xf32>
    %21 = arith.addf %15, %20 : vector<288x64xf32>
    %c0_20 = arith.constant 0 : index
    %c18 = arith.constant 18 : index
    %c0_21 = arith.constant 0 : index
    %22 = vector.load %arg2[%c0_20, %c18, %c0_21] : memref<1x342x128xbf16, #tpu.memory_space<vmem>>, vector<1x288x128xbf16>
    %23 = vector.shape_cast %22 : vector<1x288x128xbf16> to vector<288x128xbf16>
    %c3 = arith.constant 3 : index
    %c0_22 = arith.constant 0 : index
    %c0_23 = arith.constant 0 : index
    %24 = vector.load %arg3[%c3, %c0_22, %c0_23] : memref<9x128x64xbf16, #tpu.memory_space<vmem>>, vector<1x128x64xbf16>
    %25 = vector.shape_cast %24 : vector<1x128x64xbf16> to vector<128x64xbf16>
    %cst_24 = arith.constant dense<0.000000e+00> : vector<288x64xf32>
    %26 = tpu.matmul %23, %25, %cst_24 {dimension_numbers = #tpu.dot_dimension_numbers<[1], [0], [0], [1], [0, 0, 1, 1], [], []>} : vector<288x128xbf16>, vector<128x64xbf16>, vector<288x64xf32> -> vector<288x64xf32>
    %27 = arith.addf %21, %26 : vector<288x64xf32>
    %c0_25 = arith.constant 0 : index
    %c19 = arith.constant 19 : index
    %c0_26 = arith.constant 0 : index
    %28 = vector.load %arg2[%c0_25, %c19, %c0_26] : memref<1x342x128xbf16, #tpu.memory_space<vmem>>, vector<1x288x128xbf16>
    %29 = vector.shape_cast %28 : vector<1x288x128xbf16> to vector<288x128xbf16>
    %c4 = arith.constant 4 : index
    %c0_27 = arith.constant 0 : index
    %c0_28 = arith.constant 0 : index
    %30 = vector.load %arg3[%c4, %c0_27, %c0_28] : memref<9x128x64xbf16, #tpu.memory_space<vmem>>, vector<1x128x64xbf16>
    %31 = vector.shape_cast %30 : vector<1x128x64xbf16> to vector<128x64xbf16>
    %cst_29 = arith.constant dense<0.000000e+00> : vector<288x64xf32>
    %32 = tpu.matmul %29, %31, %cst_29 {dimension_numbers = #tpu.dot_dimension_numbers<[1], [0], [0], [1], [0, 0, 1, 1], [], []>} : vector<288x128xbf16>, vector<128x64xbf16>, vector<288x64xf32> -> vector<288x64xf32>
    %33 = arith.addf %27, %32 : vector<288x64xf32>
    %c0_30 = arith.constant 0 : index
    %c20 = arith.constant 20 : index
    %c0_31 = arith.constant 0 : index
    %34 = vector.load %arg2[%c0_30, %c20, %c0_31] : memref<1x342x128xbf16, #tpu.memory_space<vmem>>, vector<1x288x128xbf16>
    %35 = vector.shape_cast %34 : vector<1x288x128xbf16> to vector<288x128xbf16>
    %c5 = arith.constant 5 : index
    %c0_32 = arith.constant 0 : index
    %c0_33 = arith.constant 0 : index
    %36 = vector.load %arg3[%c5, %c0_32, %c0_33] : memref<9x128x64xbf16, #tpu.memory_space<vmem>>, vector<1x128x64xbf16>
    %37 = vector.shape_cast %36 : vector<1x128x64xbf16> to vector<128x64xbf16>
    %cst_34 = arith.constant dense<0.000000e+00> : vector<288x64xf32>
    %38 = tpu.matmul %35, %37, %cst_34 {dimension_numbers = #tpu.dot_dimension_numbers<[1], [0], [0], [1], [0, 0, 1, 1], [], []>} : vector<288x128xbf16>, vector<128x64xbf16>, vector<288x64xf32> -> vector<288x64xf32>
    %39 = arith.addf %33, %38 : vector<288x64xf32>
    %c0_35 = arith.constant 0 : index
    %c36 = arith.constant 36 : index
    %c0_36 = arith.constant 0 : index
    %40 = vector.load %arg2[%c0_35, %c36, %c0_36] : memref<1x342x128xbf16, #tpu.memory_space<vmem>>, vector<1x288x128xbf16>
    %41 = vector.shape_cast %40 : vector<1x288x128xbf16> to vector<288x128xbf16>
    %c6 = arith.constant 6 : index
    %c0_37 = arith.constant 0 : index
    %c0_38 = arith.constant 0 : index
    %42 = vector.load %arg3[%c6, %c0_37, %c0_38] : memref<9x128x64xbf16, #tpu.memory_space<vmem>>, vector<1x128x64xbf16>
    %43 = vector.shape_cast %42 : vector<1x128x64xbf16> to vector<128x64xbf16>
    %cst_39 = arith.constant dense<0.000000e+00> : vector<288x64xf32>
    %44 = tpu.matmul %41, %43, %cst_39 {dimension_numbers = #tpu.dot_dimension_numbers<[1], [0], [0], [1], [0, 0, 1, 1], [], []>} : vector<288x128xbf16>, vector<128x64xbf16>, vector<288x64xf32> -> vector<288x64xf32>
    %45 = arith.addf %39, %44 : vector<288x64xf32>
    %c0_40 = arith.constant 0 : index
    %c37 = arith.constant 37 : index
    %c0_41 = arith.constant 0 : index
    %46 = vector.load %arg2[%c0_40, %c37, %c0_41] : memref<1x342x128xbf16, #tpu.memory_space<vmem>>, vector<1x288x128xbf16>
    %47 = vector.shape_cast %46 : vector<1x288x128xbf16> to vector<288x128xbf16>
    %c7 = arith.constant 7 : index
    %c0_42 = arith.constant 0 : index
    %c0_43 = arith.constant 0 : index
    %48 = vector.load %arg3[%c7, %c0_42, %c0_43] : memref<9x128x64xbf16, #tpu.memory_space<vmem>>, vector<1x128x64xbf16>
    %49 = vector.shape_cast %48 : vector<1x128x64xbf16> to vector<128x64xbf16>
    %cst_44 = arith.constant dense<0.000000e+00> : vector<288x64xf32>
    %50 = tpu.matmul %47, %49, %cst_44 {dimension_numbers = #tpu.dot_dimension_numbers<[1], [0], [0], [1], [0, 0, 1, 1], [], []>} : vector<288x128xbf16>, vector<128x64xbf16>, vector<288x64xf32> -> vector<288x64xf32>
    %51 = arith.addf %45, %50 : vector<288x64xf32>
    %c0_45 = arith.constant 0 : index
    %c38 = arith.constant 38 : index
    %c0_46 = arith.constant 0 : index
    %52 = vector.load %arg2[%c0_45, %c38, %c0_46] : memref<1x342x128xbf16, #tpu.memory_space<vmem>>, vector<1x288x128xbf16>
    %53 = vector.shape_cast %52 : vector<1x288x128xbf16> to vector<288x128xbf16>
    %c8 = arith.constant 8 : index
    %c0_47 = arith.constant 0 : index
    %c0_48 = arith.constant 0 : index
    %54 = vector.load %arg3[%c8, %c0_47, %c0_48] : memref<9x128x64xbf16, #tpu.memory_space<vmem>>, vector<1x128x64xbf16>
    %55 = vector.shape_cast %54 : vector<1x128x64xbf16> to vector<128x64xbf16>
    %cst_49 = arith.constant dense<0.000000e+00> : vector<288x64xf32>
    %56 = tpu.matmul %53, %55, %cst_49 {dimension_numbers = #tpu.dot_dimension_numbers<[1], [0], [0], [1], [0, 0, 1, 1], [], []>} : vector<288x128xbf16>, vector<128x64xbf16>, vector<288x64xf32> -> vector<288x64xf32>
    %57 = arith.addf %51, %56 : vector<288x64xf32>
    %c0_50 = arith.constant 0 : index
    %c0_51 = arith.constant 0 : index
    %58 = vector.load %arg8[%c0_50, %c0_51] : memref<288x64xf32, #tpu.memory_space<vmem>>, vector<288x64xf32>
    tpu.vector_store %arg8[%c0_50, %c0_51], %57 {strides = array<i32>} : memref<288x64xf32, #tpu.memory_space<vmem>>, vector<288x64xf32>,
    %c1_i32 = arith.constant 1 : i32
    %59 = arith.cmpi eq, %arg1, %c1_i32 : i32
    %60 = arith.extui %59 : i1 to i32
    %c0_i32_52 = arith.constant 0 : i32
    %61 = arith.cmpi ne, %60, %c0_i32_52 : i32
    scf.if %61 {
      %c0_53 = arith.constant 0 : index
      %c0_54 = arith.constant 0 : index
      %62 = vector.load %arg4[%c0_53, %c0_54] : memref<1x64xf32, #tpu.memory_space<vmem>>, vector<1x64xf32>
      %63 = vector.broadcast %62 : vector<1x64xf32> to vector<288x64xf32>
      %64 = arith.mulf %57, %63 : vector<288x64xf32>
      %c0_55 = arith.constant 0 : index
      %c0_56 = arith.constant 0 : index
      %65 = vector.load %arg5[%c0_55, %c0_56] : memref<1x64xf32, #tpu.memory_space<vmem>>, vector<1x64xf32>
      %66 = vector.broadcast %65 : vector<1x64xf32> to vector<288x64xf32>
      %67 = arith.addf %64, %66 : vector<288x64xf32>
      %cst_57 = arith.constant 0.000000e+00 : f32
      %68 = vector.broadcast %cst_57 : f32 to vector<288x64xf32>
      %69 = arith.maximumf %67, %68 : vector<288x64xf32>
      %70 = arith.truncf %69 : vector<288x64xf32> to vector<288x64xbf16>
      %c0_58 = arith.constant 0 : index
      %c0_59 = arith.constant 0 : index
      %71 = vector.load %arg6[%c0_58, %c0_59] : memref<64x128xbf16, #tpu.memory_space<vmem>>, vector<64x128xbf16>
      %cst_60 = arith.constant dense<0.000000e+00> : vector<288x128xf32>
      %72 = tpu.matmul %70, %71, %cst_60 {dimension_numbers = #tpu.dot_dimension_numbers<[1], [0], [0], [1], [0, 0, 1, 1], [], []>} : vector<288x64xbf16>, vector<64x128xbf16>, vector<288x128xf32> -> vector<288x128xf32>
      %c0_61 = arith.constant 0 : index
      %c0_62 = arith.constant 0 : index
      %c0_63 = arith.constant 0 : index
      %73 = vector.load %arg7[%c0_61, %c0_62, %c0_63] : memref<1x288x128xf32, #tpu.memory_space<vmem>>, vector<1x288x128xf32>
      %74 = vector.shape_cast %73 : vector<1x288x128xf32> to vector<288x128xf32>
      %75 = vector.shape_cast %72 : vector<288x128xf32> to vector<1x288x128xf32>
      tpu.vector_store %arg7[%c0_61, %c0_62, %c0_63], %75 {strides = array<i32>} : memref<1x288x128xf32, #tpu.memory_space<vmem>>, vector<1x288x128xf32>,
    } else {
    }
    return
  }
  func.func @transform_0(%arg0: i32, %arg1: i32) -> (i32, i32, i32) {
    %c0_i32 = arith.constant 0 : i32
    %c0_i32_0 = arith.constant 0 : i32
    return %arg0, %c0_i32, %arg1 : i32, i32, i32
  }
  func.func @transform_1(%arg0: i32, %arg1: i32) -> (i32, i32, i32) {
    %c0_i32 = arith.constant 0 : i32
    %c0_i32_0 = arith.constant 0 : i32
    %c0_i32_1 = arith.constant 0 : i32
    return %c0_i32, %arg1, %c0_i32_0 : i32, i32, i32
  }
  func.func @transform_2(%arg0: i32, %arg1: i32) -> (i32, i32) {
    %c0_i32 = arith.constant 0 : i32
    %c0_i32_0 = arith.constant 0 : i32
    %c0_i32_1 = arith.constant 0 : i32
    return %c0_i32, %c0_i32_0 : i32, i32
  }
  func.func @transform_3(%arg0: i32, %arg1: i32) -> (i32, i32) {
    %c0_i32 = arith.constant 0 : i32
    %c0_i32_0 = arith.constant 0 : i32
    %c0_i32_1 = arith.constant 0 : i32
    return %c0_i32, %c0_i32_0 : i32, i32
  }
  func.func @transform_4(%arg0: i32, %arg1: i32) -> (i32, i32) {
    %c0_i32 = arith.constant 0 : i32
    %c0_i32_0 = arith.constant 0 : i32
    %c0_i32_1 = arith.constant 0 : i32
    return %c0_i32, %c0_i32_0 : i32, i32
  }
  func.func @transform_5(%arg0: i32, %arg1: i32) -> (i32, i32, i32) {
    %c0_i32 = arith.constant 0 : i32
    %c0_i32_0 = arith.constant 0 : i32
    %c0_i32_1 = arith.constant 0 : i32
    return %arg0, %c0_i32, %c0_i32_0 : i32, i32, i32
  }
}

</mosaic_0001>

<bundles_post_ra>
// kernel: tpu_custom_call.1
= control target key start
LH: loop header
LB: loop body
LE: loop exit
PB: predicated region body
PF: predicated region fallthrough
CT: control target
= control target key end

     0   :  { %s9097_s0 = inlined_call_operand.vmem [shape: bf16[2,342,256], index: 0, kind: input, shape index: {}]   ;;  %s9098_s1 = inlined_call_operand.vmem [shape: bf16[9,256,64], index: 1, kind: input, shape index: {}]   ;;  %s9099_s2 = inlined_call_operand.vmem [shape: f32[1,64], index: 2, kind: input, shape index: {}]   ;;  %s9100_s3 = inlined_call_operand.vmem [shape: f32[1,64], index: 3, kind: input, shape index: {}]   ;;  %s9101_s4 = inlined_call_operand.vmem [shape: bf16[64,128], index: 4, kind: input, shape index: {}]   ;;  %s9102_s5 = inlined_call_operand.hbm [shape: f32[2,288,128], index: 5, kind: output, shape index: {}]  }
   0x1   :  { %9106 = sst [smem:[#allocation11_spill]] %s9102_s5 }
   0x2   :  { %10 = vsyncpa [#allocation6], 0 }
   0x3   :  { %12 = vsyncpa [#allocation6 + $0x1], 0  ;;  %s7526_s18 = smov 0   ;;  %s7528_s19 = smov 0  }
   0x4   :  { %s7530_s20 = smov 0   ;;  %s7532_s21 = smov 0  }
   0x5   :  { %s7534_s22 = smov 0   ;;  %s7536_s23 = smov 0  }
   0x6   :  { %s7538_s24 = smov 0   ;;  %s7540_s25 = smov 0  }
   0x7   :  { %s7542_s26 = smov 0   ;;  %s7544_s27 = smov 0  }
   0x8   :  { %s7546_s28 = smov 0   ;;  %s7548_s29 = smov 0  }
   0x9 LB: > { %s5632_s30 = sadd.s32 4294967295, %s7490_s29   ;;  %s5633_s6 = sadd.s32 4294967294, %s7490_s29   ;;  %s7490_s29 = sphi %s7548_s29, %s18_s29   ;;  %s7486_s28 = sphi %s7546_s28, %s9128_s28   ;;  %s7482_s27 = sphi %s7544_s27, %s9127_s27   ;;  %s7478_s26 = sphi %s7542_s26, %s9126_s26   ;;  %s7474_s25 = sphi %s7540_s25, %s9125_s25   ;;  %s7470_s24 = sphi %s7538_s24, %s9124_s24   ;;  %s7466_s23 = sphi %s7536_s23, %s9123_s23   ;;  %s7462_s22 = sphi %s7534_s22, %s9122_s22   ;;  %s7458_s21 = sphi %s7532_s21, %s9121_s21   ;;  %s7454_s20 = sphi %s7530_s20, %s9120_s20   ;;  %s7450_s19 = sphi %s7528_s19, %s9119_s19   ;;  %s7446_s18 = sphi %s7526_s18, %s9118_s18  }
   0xa   : > { %s27_s7 = sadd.s32 1, %s7482_s27  ;;  %s30_s8 = sadd.s32 1, %s7486_s28 }
   0xb   : > { %p28_p0 = scmp.ge.s32.totalorder %s27_s7, 2  ;;  %s39_s9 = sadd.s32 1, %s7470_s24 }
   0xc   : > { %p46_p1 = scmp.ne.s32.totalorder %s7470_s24, %s7466_s23  ;;  %p47_p2 = scmp.eq.s32.totalorder %s7490_s29, 0 }
   0xd   : > { %s9130_s7 = smov (%p28_p0, %s27_s7), 0  ;;  %s9132_s8 = smov (!%p28_p0, %s30_s8), %s7486_s28 }
   0xe   : > { %9107 = sst [smem:[#allocation8_spill]] %s9130_s7  ;;  %s35_s10 = ssub.s32 %s7482_s27, %s9130_s7 }
   0xf   : > { %p7599_p3 = por %p47_p2, %p46_p1  ;;  %p32_p4 = scmp.ge.s32.totalorder %s9132_s8, 2 }
  0x10   : > { %p63_p5 = scmp.eq.s32.totalorder %s35_s10, 0  ;;  %s65_s12 = sadd.s32 1, %s7462_s22 }
  0x11   : > { %p72_p6 = scmp.ne.s32.totalorder %s7462_s22, %s7458_s21  ;;  %s9134_s8 = smov (%p32_p4, %s9132_s8), 0 }
  0x12   : > { %9109 = sst [smem:[#allocation9_spill]] %s9134_s8  ;;  %s34_s14 = ssub.s32 %s7486_s28, %s9134_s8 }
  0x13   : > { %s7609_s13 = scalar_select %p63_p5, %s7462_s22, %s65_s12  }
  0x14   : > { %p7613_p7 = por %p72_p6, %p47_p2  ;;  %s36_s16 = sor.u32 %s35_s10, %s34_s14 }
  0x15   : > { %p152_p8 = scmp.eq.s32.totalorder %s34_s14, 0  ;;  %p37_p9 = scmp.eq.s32.totalorder %s36_s16, 0 }
  0x16   : > { %s154_s17 = sadd.s32 1, %s7454_s20  ;;  %p164_p10 = scmp.ne.s32.totalorder %s7454_s20, %s7450_s19 }
  0x17   : > { %s7619_s7 = scalar_select %p152_p8, %s7454_s20, %s154_s17  }
  0x18   : > { %s7622_s5 = scalar_select %p37_p9, %s7470_s24, %s39_s9  }
  0x19   : > { %p165_p11 = scmp.eq.s32.totalorder %s5632_s30, 3  ;;  %p170_p12 = scmp.ne.s32.totalorder %s7450_s19, %s7446_s18 }
  0x1a   : > { %9111 = sst [smem:[#allocation10_spill]] %s7622_s5  ;;  %p171_p13 = scmp.eq.s32.totalorder %s5633_s6, 3 }
  0x1b   : > { %p7628_p0 = por %p165_p11, %p164_p10  ;;  %p5635_p2 = scmp.ge.s32.totalorder %s7490_s29, 4 }
  0x1c   : > { %p7632_p1 = por %p171_p13, %p170_p12 }
  0x1d   : > { %196 = sbr.rel (%p5635_p2) target bundleno = 112 (0x70), region = 28 }
  0x24   : > { %199 = sbr.rel (!%p7599_p3) target bundleno = 71 (0x47), region = 32  ;;  %s201_s30 = sand.u32 (%p7599_p3), 1, %s7470_s24  }
  0x25   : > { %s7067_s9 = smul.u32 (%p7599_p3), 86, %s7486_s28 }
  0x26   : > { %s7066_s6 = smul.u32 (%p7599_p3), 172, %s201_s30 }
  0x27   : > { %s205_s10 = sadd.s32 (%p7599_p3), %s7482_s27, %s7067_s9 }
  0x28   : > { %s5636_s14 = sshll.u32 (%p7599_p3), %s205_s10, 2  ;;  %s7650_s11 = scalar_lea.vmem (%p7599_p3), [#allocation3], %s7066_s6 }
  0x29   : > { %s7645_s5 = scalar_lea.vmem (%p7599_p3), %s9097_s0, %s5636_s14 }
  0x2a   : > { %v223_v0 = vld [vmem:[%s7645_s5] sm:$0xf] (%p7599_p3)  ;;  %v225_v1 = vld [vmem:[%s7645_s5 + $0x8] sm:$0xf] (%p7599_p3)  ;;  %v227_v2 = vld [vmem:[%s7645_s5 + $0x10] sm:$0xf] (%p7599_p3) }
  0x2b   : > { %224 = vst [vmem:[%s7650_s11] sm:$0xf] %v223_v0  ;;  %226 = vst [vmem:[%s7650_s11 + $0x4] sm:$0xf] %v225_v1  ;;  %v229_v3 = vld [vmem:[%s7645_s5 + $0x18] sm:$0xf] }
  0x2c   : > { %228 = vst [vmem:[%s7650_s11 + $0x8] sm:$0xf] %v227_v2  ;;  %v231_v4 = vld [vmem:[%s7645_s5 + $0x20] sm:$0xf]  ;;  %v233_v5 = vld [vmem:[%s7645_s5 + $0x28] sm:$0xf] }
  0x2d   : > { %230 = vst [vmem:[%s7650_s11 + $0xc] sm:$0xf] %v229_v3  ;;  %232 = vst [vmem:[%s7650_s11 + $0x10] sm:$0xf] %v231_v4  ;;  %v235_v6 = vld [vmem:[%s7645_s5 + $0x30] sm:$0xf] }
  0x2e   : > { %234 = vst [vmem:[%s7650_s11 + $0x14] sm:$0xf] %v233_v5  ;;  %v237_v7 = vld [vmem:[%s7645_s5 + $0x38] sm:$0xf]  ;;  %v239_v8 = vld [vmem:[%s7645_s5 + $0x40] sm:$0xf] }
  0x2f   : > { %236 = vst [vmem:[%s7650_s11 + $0x18] sm:$0xf] %v235_v6  ;;  %238 = vst [vmem:[%s7650_s11 + $0x1c] sm:$0xf] %v237_v7  ;;  %v241_v9 = vld [vmem:[%s7645_s5 + $0x48] sm:$0xf] }
  0x30   : > { %240 = vst [vmem:[%s7650_s11 + $0x20] sm:$0xf] %v239_v8  ;;  %v243_v10 = vld [vmem:[%s7645_s5 + $0x50] sm:$0xf]  ;;  %v245_v11 = vld [vmem:[%s7645_s5 + $0x58] sm:$0xf] }
  0x31   : > { %242 = vst [vmem:[%s7650_s11 + $0x24] sm:$0xf] %v241_v9  ;;  %244 = vst [vmem:[%s7650_s11 + $0x28] sm:$0xf] %v243_v10  ;;  %v247_v12 = vld [vmem:[%s7645_s5 + $0x60] sm:$0xf] }
  0x32   : > { %246 = vst [vmem:[%s7650_s11 + $0x2c] sm:$0xf] %v245_v11  ;;  %v249_v13 = vld [vmem:[%s7645_s5 + $0x68] sm:$0xf]  ;;  %v251_v14 = vld [vmem:[%s7645_s5 + $0x70] sm:$0xf] }
  0x33   : > { %248 = vst [vmem:[%s7650_s11 + $0x30] sm:$0xf] %v247_v12  ;;  %250 = vst [vmem:[%s7650_s11 + $0x34] sm:$0xf] %v249_v13  ;;  %v253_v15 = vld [vmem:[%s7645_s5 + $0x78] sm:$0xf] }
  0x34   : > { %252 = vst [vmem:[%s7650_s11 + $0x38] sm:$0xf] %v251_v14  ;;  %v255_v16 = vld [vmem:[%s7645_s5 + $0x80] sm:$0xf]  ;;  %v257_v17 = vld [vmem:[%s7645_s5 + $0x88] sm:$0xf] }
  0x35   : > { %254 = vst [vmem:[%s7650_s11 + $0x3c] sm:$0xf] %v253_v15  ;;  %256 = vst [vmem:[%s7650_s11 + $0x40] sm:$0xf] %v255_v16  ;;  %v259_v18 = vld [vmem:[%s7645_s5 + $0x90] sm:$0xf] }
  0x36   : > { %258 = vst [vmem:[%s7650_s11 + $0x44] sm:$0xf] %v257_v17  ;;  %v261_v19 = vld [vmem:[%s7645_s5 + $0x98] sm:$0xf]  ;;  %v263_v20 = vld [vmem:[%s7645_s5 + $0xa0] sm:$0xf] }
  0x37   : > { %260 = vst [vmem:[%s7650_s11 + $0x48] sm:$0xf] %v259_v18  ;;  %262 = vst [vmem:[%s7650_s11 + $0x4c] sm:$0xf] %v261_v19  ;;  %v265_v21 = vld [vmem:[%s7645_s5 + $0xa8] sm:$0xf] }
  0x38   : > { %264 = vst [vmem:[%s7650_s11 + $0x50] sm:$0xf] %v263_v20  ;;  %v267_v22 = vld [vmem:[%s7645_s5 + $0xb0] sm:$0xf]  ;;  %v269_v23 = vld [vmem:[%s7645_s5 + $0xb8] sm:$0xf] }
  0x39   : > { %266 = vst [vmem:[%s7650_s11 + $0x54] sm:$0xf] %v265_v21  ;;  %268 = vst [vmem:[%s7650_s11 + $0x58] sm:$0xf] %v267_v22  ;;  %v271_v24 = vld [vmem:[%s7645_s5 + $0xc0] sm:$0xf] }
  0x3a   : > { %270 = vst [vmem:[%s7650_s11 + $0x5c] sm:$0xf] %v269_v23  ;;  %v273_v25 = vld [vmem:[%s7645_s5 + $0xc8] sm:$0xf]  ;;  %v275_v26 = vld [vmem:[%s7645_s5 + $0xd0] sm:$0xf] }
  0x3b   : > { %272 = vst [vmem:[%s7650_s11 + $0x60] sm:$0xf] %v271_v24  ;;  %274 = vst [vmem:[%s7650_s11 + $0x64] sm:$0xf] %v273_v25  ;;  %v277_v27 = vld [vmem:[%s7645_s5 + $0xd8] sm:$0xf] }
  0x3c   : > { %276 = vst [vmem:[%s7650_s11 + $0x68] sm:$0xf] %v275_v26  ;;  %v279_v28 = vld [vmem:[%s7645_s5 + $0xe0] sm:$0xf]  ;;  %v281_v29 = vld [vmem:[%s7645_s5 + $0xe8] sm:$0xf] }
  0x3d   : > { %278 = vst [vmem:[%s7650_s11 + $0x6c] sm:$0xf] %v277_v27  ;;  %280 = vst [vmem:[%s7650_s11 + $0x70] sm:$0xf] %v279_v28  ;;  %v283_v30 = vld [vmem:[%s7645_s5 + $0xf0] sm:$0xf] }
  0x3e   : > { %282 = vst [vmem:[%s7650_s11 + $0x74] sm:$0xf] %v281_v29  ;;  %v285_v31 = vld [vmem:[%s7645_s5 + $0xf8] sm:$0xf]  ;;  %v287_v32 = vld [vmem:[%s7645_s5 + $0x100] sm:$0xf] }
  0x3f   : > { %284 = vst [vmem:[%s7650_s11 + $0x78] sm:$0xf] %v283_v30  ;;  %286 = vst [vmem:[%s7650_s11 + $0x7c] sm:$0xf] %v285_v31  ;;  %v289_v33 = vld [vmem:[%s7645_s5 + $0x108] sm:$0xf] }
  0x40   : > { %288 = vst [vmem:[%s7650_s11 + $0x80] sm:$0xf] %v287_v32  ;;  %v291_v34 = vld [vmem:[%s7645_s5 + $0x110] sm:$0xf]  ;;  %v293_v35 = vld [vmem:[%s7645_s5 + $0x118] sm:$0xf] }
  0x41   : > { %290 = vst [vmem:[%s7650_s11 + $0x84] sm:$0xf] %v289_v33  ;;  %292 = vst [vmem:[%s7650_s11 + $0x88] sm:$0xf] %v291_v34  ;;  %v295_v36 = vld [vmem:[%s7645_s5 + $0x120] sm:$0xf] }
  0x42   : > { %294 = vst [vmem:[%s7650_s11 + $0x8c] sm:$0xf] %v293_v35  ;;  %v297_v37 = vld [vmem:[%s7645_s5 + $0x128] sm:$0xf]  ;;  %v299_v38 = vld [vmem:[%s7645_s5 + $0x130] sm:$0xf] }
  0x43   : > { %296 = vst [vmem:[%s7650_s11 + $0x90] sm:$0xf] %v295_v36  ;;  %298 = vst [vmem:[%s7650_s11 + $0x94] sm:$0xf] %v297_v37  ;;  %v301_v39 = vld [vmem:[%s7645_s5 + $0x138] sm:$0xf] }
  0x44   : > { %300 = vst [vmem:[%s7650_s11 + $0x98] sm:$0xf] %v299_v38  ;;  %v303_v40 = vld [vmem:[%s7645_s5 + $0x140] sm:$0xf]  ;;  %v305_v41 = vld [vmem:[%s7645_s5 + $0x148] sm:$0xf] }
  0x45   : > { %302 = vst [vmem:[%s7650_s11 + $0x9c] sm:$0xf] %v301_v39  ;;  %304 = vst [vmem:[%s7650_s11 + $0xa0] sm:$0xf] %v303_v40  ;;  %v307_v42 = vld [vmem:[%s7645_s5 + $0x150] sm:$0xf] }
  0x46   : > { %306 = vst [vmem:[%s7650_s11 + $0xa4] sm:$0xf] %v305_v41  ;;  %308 = vst [vmem:[%s7650_s11 + $0xa8] sm:$0xf] %v307_v42 }
  0x47 PF: > { %417 = sbr.rel (!%p7613_p7) target bundleno = 112 (0x70), region = 73  ;;  %s419_s30 = sand.u32 (%p7613_p7), 1, %s7462_s22  }
  0x48   : > { %s5949_s9 = sshll.u32 (%p7613_p7), %s7482_s27, 6  ;;  %s7068_s6 = smul.u32 (%p7613_p7), 576, %s419_s30 }
  0x49   : > { %s7742_s16 = scalar_lea.vmem (%p7613_p7), %s9098_s1, %s5949_s9 }
  0x4a   : > { %v440_v43 = vld [vmem:[%s7742_s16] sm:$0xff] (%p7613_p7)   ;;  %v444_v44 = vld [vmem:[%s7742_s16 + $0x8] sm:$0xff] (%p7613_p7)   ;;  %v448_v45 = vld [vmem:[%s7742_s16 + $0x10] sm:$0xff] (%p7613_p7)   ;;  %s7750_s5 = scalar_lea.vmem (%p7613_p7), [#allocation4], %s7068_s6 }
  0x4b   : > { %v452_v46 = vld [vmem:[%s7742_s16 + $0x18] sm:$0xff] (%p7613_p7)   ;;  %v456_v47 = vld [vmem:[%s7742_s16 + $0x20] sm:$0xff] (%p7613_p7)   ;;  %v460_v48 = vld [vmem:[%s7742_s16 + $0x28] sm:$0xff] (%p7613_p7)   ;;  %441 = vst [vmem:[%s7750_s5] sm:$0xff] (%p7613_p7), %v440_v43  }
  0x4c   : > { %445 = vst [vmem:[%s7750_s5 + $0x8] sm:$0xff] (%p7613_p7), %v444_v44   ;;  %449 = vst [vmem:[%s7750_s5 + $0x10] sm:$0xff] (%p7613_p7), %v448_v45   ;;  %v464_v49 = vld [vmem:[%s7742_s16 + $0x30] sm:$0xff] (%p7613_p7)   ;;  %v468_v50 = vld [vmem:[%s7742_s16 + $0x38] sm:$0xff] (%p7613_p7)  }
  0x4d   : > { %453 = vst [vmem:[%s7750_s5 + $0x18] sm:$0xff] (%p7613_p7), %v452_v46   ;;  %457 = vst [vmem:[%s7750_s5 + $0x20] sm:$0xff] (%p7613_p7), %v456_v47   ;;  %v472_v51 = vld [vmem:[%s7742_s16 + $0x80] sm:$0xff] (%p7613_p7)   ;;  %v476_v52 = vld [vmem:[%s7742_s16 + $0x88] sm:$0xff] (%p7613_p7)  }
  0x4e   : > { %461 = vst [vmem:[%s7750_s5 + $0x28] sm:$0xff] %v460_v48   ;;  %465 = vst [vmem:[%s7750_s5 + $0x30] sm:$0xff] %v464_v49   ;;  %v480_v53 = vld [vmem:[%s7742_s16 + $0x90] sm:$0xff]   ;;  %v484_v54 = vld [vmem:[%s7742_s16 + $0x98] sm:$0xff]  }
  0x4f   : > { %469 = vst [vmem:[%s7750_s5 + $0x38] sm:$0xff] %v468_v50   ;;  %473 = vst [vmem:[%s7750_s5 + $0x40] sm:$0xff] %v472_v51   ;;  %v488_v55 = vld [vmem:[%s7742_s16 + $0xa0] sm:$0xff]   ;;  %v492_v56 = vld [vmem:[%s7742_s16 + $0xa8] sm:$0xff]  }
  0x50   : > { %477 = vst [vmem:[%s7750_s5 + $0x48] sm:$0xff] %v476_v52   ;;  %481 = vst [vmem:[%s7750_s5 + $0x50] sm:$0xff] %v480_v53   ;;  %v496_v57 = vld [vmem:[%s7742_s16 + $0xb0] sm:$0xff]   ;;  %v500_v58 = vld [vmem:[%s7742_s16 + $0xb8] sm:$0xff]  }
  0x51   : > { %485 = vst [vmem:[%s7750_s5 + $0x58] sm:$0xff] %v484_v54   ;;  %489 = vst [vmem:[%s7750_s5 + $0x60] sm:$0xff] %v488_v55   ;;  %v504_v59 = vld [vmem:[%s7742_s16 + $0x100] sm:$0xff]   ;;  %v508_v60 = vld [vmem:[%s7742_s16 + $0x108] sm:$0xff]  }
  0x52   : > { %493 = vst [vmem:[%s7750_s5 + $0x68] sm:$0xff] %v492_v56   ;;  %497 = vst [vmem:[%s7750_s5 + $0x70] sm:$0xff] %v496_v57   ;;  %v512_v61 = vld [vmem:[%s7742_s16 + $0x110] sm:$0xff]   ;;  %v516_v62 = vld [vmem:[%s7742_s16 + $0x118] sm:$0xff]  }
  0x53   : > { %501 = vst [vmem:[%s7750_s5 + $0x78] sm:$0xff] %v500_v58   ;;  %505 = vst [vmem:[%s7750_s5 + $0x80] sm:$0xff] %v504_v59   ;;  %v520_v63 = vld [vmem:[%s7742_s16 + $0x120] sm:$0xff]   ;;  %v524_v0 = vld [vmem:[%s7742_s16 + $0x128] sm:$0xff]  }
  0x54   : > { %509 = vst [vmem:[%s7750_s5 + $0x88] sm:$0xff] %v508_v60   ;;  %513 = vst [vmem:[%s7750_s5 + $0x90] sm:$0xff] %v512_v61   ;;  %v528_v1 = vld [vmem:[%s7742_s16 + $0x130] sm:$0xff]   ;;  %v532_v2 = vld [vmem:[%s7742_s16 + $0x138] sm:$0xff]  }
  0x55   : > { %517 = vst [vmem:[%s7750_s5 + $0x98] sm:$0xff] %v516_v62   ;;  %521 = vst [vmem:[%s7750_s5 + $0xa0] sm:$0xff] %v520_v63   ;;  %v536_v3 = vld [vmem:[%s7742_s16 + $0x180] sm:$0xff]   ;;  %v540_v4 = vld [vmem:[%s7742_s16 + $0x188] sm:$0xff]  }
  0x56   : > { %525 = vst [vmem:[%s7750_s5 + $0xa8] sm:$0xff] %v524_v0   ;;  %529 = vst [vmem:[%s7750_s5 + $0xb0] sm:$0xff] %v528_v1   ;;  %v544_v5 = vld [vmem:[%s7742_s16 + $0x190] sm:$0xff]   ;;  %v548_v6 = vld [vmem:[%s7742_s16 + $0x198] sm:$0xff]  }
  0x57   : > { %533 = vst [vmem:[%s7750_s5 + $0xb8] sm:$0xff] %v532_v2   ;;  %537 = vst [vmem:[%s7750_s5 + $0xc0] sm:$0xff] %v536_v3   ;;  %v552_v7 = vld [vmem:[%s7742_s16 + $0x1a0] sm:$0xff]   ;;  %v556_v8 = vld [vmem:[%s7742_s16 + $0x1a8] sm:$0xff]  }
  0x58   : > { %541 = vst [vmem:[%s7750_s5 + $0xc8] sm:$0xff] %v540_v4   ;;  %545 = vst [vmem:[%s7750_s5 + $0xd0] sm:$0xff] %v544_v5   ;;  %v560_v9 = vld [vmem:[%s7742_s16 + $0x1b0] sm:$0xff]   ;;  %v564_v10 = vld [vmem:[%s7742_s16 + $0x1b8] sm:$0xff]  }
  0x59   : > { %549 = vst [vmem:[%s7750_s5 + $0xd8] sm:$0xff] %v548_v6   ;;  %553 = vst [vmem:[%s7750_s5 + $0xe0] sm:$0xff] %v552_v7   ;;  %v568_v11 = vld [vmem:[%s7742_s16 + $0x200] sm:$0xff]   ;;  %v572_v12 = vld [vmem:[%s7742_s16 + $0x208] sm:$0xff]  }
  0x5a   : > { %557 = vst [vmem:[%s7750_s5 + $0xe8] sm:$0xff] %v556_v8   ;;  %561 = vst [vmem:[%s7750_s5 + $0xf0] sm:$0xff] %v560_v9   ;;  %v576_v13 = vld [vmem:[%s7742_s16 + $0x210] sm:$0xff]   ;;  %v580_v14 = vld [vmem:[%s7742_s16 + $0x218] sm:$0xff]  }
  0x5b   : > { %565 = vst [vmem:[%s7750_s5 + $0xf8] sm:$0xff] %v564_v10   ;;  %569 = vst [vmem:[%s7750_s5 + $0x100] sm:$0xff] %v568_v11   ;;  %v584_v15 = vld [vmem:[%s7742_s16 + $0x220] sm:$0xff]   ;;  %v588_v16 = vld [vmem:[%s7742_s16 + $0x228] sm:$0xff]  }
  0x5c   : > { %573 = vst [vmem:[%s7750_s5 + $0x108] sm:$0xff] %v572_v12   ;;  %577 = vst [vmem:[%s7750_s5 + $0x110] sm:$0xff] %v576_v13   ;;  %v592_v17 = vld [vmem:[%s7742_s16 + $0x230] sm:$0xff]   ;;  %v596_v18 = vld [vmem:[%s7742_s16 + $0x238] sm:$0xff]  }
  0x5d   : > { %581 = vst [vmem:[%s7750_s5 + $0x118] sm:$0xff] %v580_v14   ;;  %585 = vst [vmem:[%s7750_s5 + $0x120] sm:$0xff] %v584_v15   ;;  %v600_v19 = vld [vmem:[%s7742_s16 + $0x280] sm:$0xff]   ;;  %v604_v20 = vld [vmem:[%s7742_s16 + $0x288] sm:$0xff]  }
  0x5e   : > { %589 = vst [vmem:[%s7750_s5 + $0x128] sm:$0xff] %v588_v16   ;;  %593 = vst [vmem:[%s7750_s5 + $0x130] sm:$0xff] %v592_v17   ;;  %v608_v21 = vld [vmem:[%s7742_s16 + $0x290] sm:$0xff]   ;;  %v612_v22 = vld [vmem:[%s7742_s16 + $0x298] sm:$0xff]  }
  0x5f   : > { %597 = vst [vmem:[%s7750_s5 + $0x138] sm:$0xff] %v596_v18   ;;  %601 = vst [vmem:[%s7750_s5 + $0x140] sm:$0xff] %v600_v19   ;;  %v616_v23 = vld [vmem:[%s7742_s16 + $0x2a0] sm:$0xff]   ;;  %v620_v24 = vld [vmem:[%s7742_s16 + $0x2a8] sm:$0xff]  }
  0x60   : > { %605 = vst [vmem:[%s7750_s5 + $0x148] sm:$0xff] %v604_v20   ;;  %609 = vst [vmem:[%s7750_s5 + $0x150] sm:$0xff] %v608_v21   ;;  %v624_v25 = vld [vmem:[%s7742_s16 + $0x2b0] sm:$0xff]   ;;  %v628_v26 = vld [vmem:[%s7742_s16 + $0x2b8] sm:$0xff]  }
  0x61   : > { %613 = vst [vmem:[%s7750_s5 + $0x158] sm:$0xff] %v612_v22   ;;  %617 = vst [vmem:[%s7750_s5 + $0x160] sm:$0xff] %v616_v23   ;;  %v632_v27 = vld [vmem:[%s7742_s16 + $0x300] sm:$0xff]   ;;  %v636_v28 = vld [vmem:[%s7742_s16 + $0x308] sm:$0xff]  }
  0x62   : > { %621 = vst [vmem:[%s7750_s5 + $0x168] sm:$0xff] %v620_v24   ;;  %625 = vst [vmem:[%s7750_s5 + $0x170] sm:$0xff] %v624_v25   ;;  %v640_v29 = vld [vmem:[%s7742_s16 + $0x310] sm:$0xff]   ;;  %v644_v30 = vld [vmem:[%s7742_s16 + $0x318] sm:$0xff]  }
  0x63   : > { %629 = vst [vmem:[%s7750_s5 + $0x178] sm:$0xff] %v628_v26   ;;  %633 = vst [vmem:[%s7750_s5 + $0x180] sm:$0xff] %v632_v27   ;;  %v648_v31 = vld [vmem:[%s7742_s16 + $0x320] sm:$0xff]   ;;  %v652_v32 = vld [vmem:[%s7742_s16 + $0x328] sm:$0xff]  }
  0x64   : > { %637 = vst [vmem:[%s7750_s5 + $0x188] sm:$0xff] %v636_v28   ;;  %641 = vst [vmem:[%s7750_s5 + $0x190] sm:$0xff] %v640_v29   ;;  %v656_v33 = vld [vmem:[%s7742_s16 + $0x330] sm:$0xff]   ;;  %v660_v34 = vld [vmem:[%s7742_s16 + $0x338] sm:$0xff]  }
  0x65   : > { %645 = vst [vmem:[%s7750_s5 + $0x198] sm:$0xff] %v644_v30   ;;  %649 = vst [vmem:[%s7750_s5 + $0x1a0] sm:$0xff] %v648_v31   ;;  %v664_v35 = vld [vmem:[%s7742_s16 + $0x380] sm:$0xff]   ;;  %v668_v36 = vld [vmem:[%s7742_s16 + $0x388] sm:$0xff]  }
  0x66   : > { %653 = vst [vmem:[%s7750_s5 + $0x1a8] sm:$0xff] %v652_v32   ;;  %657 = vst [vmem:[%s7750_s5 + $0x1b0] sm:$0xff] %v656_v33   ;;  %v672_v37 = vld [vmem:[%s7742_s16 + $0x390] sm:$0xff]   ;;  %v676_v38 = vld [vmem:[%s7742_s16 + $0x398] sm:$0xff]  }
  0x67   : > { %661 = vst [vmem:[%s7750_s5 + $0x1b8] sm:$0xff] %v660_v34   ;;  %665 = vst [vmem:[%s7750_s5 + $0x1c0] sm:$0xff] %v664_v35   ;;  %v680_v39 = vld [vmem:[%s7742_s16 + $0x3a0] sm:$0xff]   ;;  %v684_v40 = vld [vmem:[%s7742_s16 + $0x3a8] sm:$0xff]  }
  0x68   : > { %669 = vst [vmem:[%s7750_s5 + $0x1c8] sm:$0xff] %v668_v36   ;;  %673 = vst [vmem:[%s7750_s5 + $0x1d0] sm:$0xff] %v672_v37   ;;  %v688_v41 = vld [vmem:[%s7742_s16 + $0x3b0] sm:$0xff]   ;;  %v692_v42 = vld [vmem:[%s7742_s16 + $0x3b8] sm:$0xff]  }
  0x69   : > { %677 = vst [vmem:[%s7750_s5 + $0x1d8] sm:$0xff] %v676_v38   ;;  %681 = vst [vmem:[%s7750_s5 + $0x1e0] sm:$0xff] %v680_v39   ;;  %v696_v43 = vld [vmem:[%s7742_s16 + $0x400] sm:$0xff]   ;;  %v700_v44 = vld [vmem:[%s7742_s16 + $0x408] sm:$0xff]  }
  0x6a   : > { %685 = vst [vmem:[%s7750_s5 + $0x1e8] sm:$0xff] %v684_v40   ;;  %689 = vst [vmem:[%s7750_s5 + $0x1f0] sm:$0xff] %v688_v41   ;;  %v704_v45 = vld [vmem:[%s7742_s16 + $0x410] sm:$0xff]   ;;  %v708_v46 = vld [vmem:[%s7742_s16 + $0x418] sm:$0xff]  }
  0x6b   : > { %693 = vst [vmem:[%s7750_s5 + $0x1f8] sm:$0xff] %v692_v42   ;;  %697 = vst [vmem:[%s7750_s5 + $0x200] sm:$0xff] %v696_v43   ;;  %v712_v47 = vld [vmem:[%s7742_s16 + $0x420] sm:$0xff]   ;;  %v716_v48 = vld [vmem:[%s7742_s16 + $0x428] sm:$0xff]  }
  0x6c   : > { %701 = vst [vmem:[%s7750_s5 + $0x208] sm:$0xff] %v700_v44   ;;  %705 = vst [vmem:[%s7750_s5 + $0x210] sm:$0xff] %v704_v45   ;;  %v720_v49 = vld [vmem:[%s7742_s16 + $0x430] sm:$0xff]   ;;  %v724_v50 = vld [vmem:[%s7742_s16 + $0x438] sm:$0xff]  }
  0x6d   : > { %709 = vst [vmem:[%s7750_s5 + $0x218] sm:$0xff] %v708_v46   ;;  %713 = vst [vmem:[%s7750_s5 + $0x220] sm:$0xff] %v712_v47  }
  0x6e   : > { %717 = vst [vmem:[%s7750_s5 + $0x228] sm:$0xff] %v716_v48   ;;  %721 = vst [vmem:[%s7750_s5 + $0x230] sm:$0xff] %v720_v49  }
  0x6f   : > { %725 = vst [vmem:[%s7750_s5 + $0x238] sm:$0xff] %v724_v50  }
  0x70 PF: > { %p5639_p3 = scmp.ge.s32.totalorder %s7490_s29, 1  ;;  %p1037_p4 = scmp.lt.s32.totalorder %s7490_s29, 5 }
  0x72   : > { %p1038_p5 = pnand %p5639_p3, %p1037_p4 }
  0x73   : > { %s1044_s15 = sand.u32 (!%p1038_p5), 1, %s7466_s23   ;;  %s1051_s17 = sand.u32 (!%p1038_p5), 1, %s7458_s21  }
  0x74   : > { %1041 = sbr.rel (%p1038_p5) target bundleno = 992 (0x3e0), region = 114  ;;  %s1079_s30 = sand.u32 (!%p1038_p5), 1, %s7450_s19  }
  0x75   : > { %s7069_s11 = smul.u32 (!%p1038_p5), 172, %s1044_s15  ;;  %p5640_p6 = scmp.ne.s32.totalorder (!%p1038_p5), %s7474_s25, 0 }
  0x76   : > { %s7070_s9 = smul.u32 (!%p1038_p5), 576, %s1051_s17 }
  0x77   : > { %s7071_s6 = smul.u32 (!%p1038_p5), 288, %s1079_s30  ;;  %s7897_s10 = scalar_lea.vmem (!%p1038_p5), [#allocation3], %s7069_s11 }
  0x78   : > { %s7899_s14 = scalar_lea.vmem (!%p1038_p5), [#allocation4], %s7070_s9 }
  0x79   : > { %s7901_s16 = scalar_lea.vmem (!%p1038_p5), [#allocation5], %s7071_s6 }
  0x7b   : > { %1087 = sbr.rel (%p5640_p6) target bundleno = 142 (0x8e), region = 126  ;;  %vm1088_vm0 = vcmask (!%p5640_p6), 523264   ;;  %v7492_v51 = vmov (!%p5640_p6), 0.0  }
  0x7c   : > { %1089 = vst.msk [vmem:[#allocation2] sm:$0xff] (!%p5640_p6), %vm1088_vm0, %v7492_v51  ;;  %1090 = vst.msk [vmem:[#allocation2 + $0x8] sm:$0xff] (!%p5640_p6), %vm1088_vm0, %v7492_v51 }
  0x7d   : > { %1091 = vst.msk [vmem:[#allocation2 + $0x10] sm:$0xff] (!%p5640_p6), %vm1088_vm0, %v7492_v51  ;;  %1092 = vst.msk [vmem:[#allocation2 + $0x18] sm:$0xff] (!%p5640_p6), %vm1088_vm0, %v7492_v51 }
  0x7e   : > { %1093 = vst.msk [vmem:[#allocation2 + $0x20] sm:$0xff] (!%p5640_p6), %vm1088_vm0, %v7492_v51  ;;  %1094 = vst.msk [vmem:[#allocation2 + $0x28] sm:$0xff] (!%p5640_p6), %vm1088_vm0, %v7492_v51 }
  0x7f   : > { %1095 = vst.msk [vmem:[#allocation2 + $0x30] sm:$0xff] (!%p5640_p6), %vm1088_vm0, %v7492_v51  ;;  %1096 = vst.msk [vmem:[#allocation2 + $0x38] sm:$0xff] (!%p5640_p6), %vm1088_vm0, %v7492_v51 }
  0x80   : > { %1097 = vst.msk [vmem:[#allocation2 + $0x40] sm:$0xff] (!%p5640_p6), %vm1088_vm0, %v7492_v51  ;;  %1098 = vst.msk [vmem:[#allocation2 + $0x48] sm:$0xff] (!%p5640_p6), %vm1088_vm0, %v7492_v51 }
  0x81   : > { %1099 = vst.msk [vmem:[#allocation2 + $0x50] sm:$0xff] (!%p5640_p6), %vm1088_vm0, %v7492_v51  ;;  %1100 = vst.msk [vmem:[#allocation2 + $0x58] sm:$0xff] (!%p5640_p6), %vm1088_vm0, %v7492_v51 }
  0x82   : > { %1101 = vst.msk [vmem:[#allocation2 + $0x60] sm:$0xff] %vm1088_vm0, %v7492_v51  ;;  %1102 = vst.msk [vmem:[#allocation2 + $0x68] sm:$0xff] %vm1088_vm0, %v7492_v51 }
  0x83   : > { %1103 = vst.msk [vmem:[#allocation2 + $0x70] sm:$0xff] %vm1088_vm0, %v7492_v51  ;;  %1104 = vst.msk [vmem:[#allocation2 + $0x78] sm:$0xff] %vm1088_vm0, %v7492_v51 }
  0x84   : > { %1105 = vst.msk [vmem:[#allocation2 + $0x80] sm:$0xff] %vm1088_vm0, %v7492_v51  ;;  %1106 = vst.msk [vmem:[#allocation2 + $0x88] sm:$0xff] %vm1088_vm0, %v7492_v51 }
  0x85   : > { %1107 = vst.msk [vmem:[#allocation2 + $0x90] sm:$0xff] %vm1088_vm0, %v7492_v51  ;;  %1108 = vst.msk [vmem:[#allocation2 + $0x98] sm:$0xff] %vm1088_vm0, %v7492_v51 }
  0x86   : > { %1109 = vst.msk [vmem:[#allocation2 + $0xa0] sm:$0xff] %vm1088_vm0, %v7492_v51  ;;  %1110 = vst.msk [vmem:[#allocation2 + $0xa8] sm:$0xff] %vm1088_vm0, %v7492_v51 }
  0x87   : > { %1111 = vst.msk [vmem:[#allocation2 + $0xb0] sm:$0xff] %vm1088_vm0, %v7492_v51  ;;  %1112 = vst.msk [vmem:[#allocation2 + $0xb8] sm:$0xff] %vm1088_vm0, %v7492_v51 }
  0x88   : > { %1113 = vst.msk [vmem:[#allocation2 + $0xc0] sm:$0xff] %vm1088_vm0, %v7492_v51  ;;  %1114 = vst.msk [vmem:[#allocation2 + $0xc8] sm:$0xff] %vm1088_vm0, %v7492_v51 }
  0x89   : > { %1115 = vst.msk [vmem:[#allocation2 + $0xd0] sm:$0xff] %vm1088_vm0, %v7492_v51  ;;  %1116 = vst.msk [vmem:[#allocation2 + $0xd8] sm:$0xff] %vm1088_vm0, %v7492_v51 }
  0x8a   : > { %1117 = vst.msk [vmem:[#allocation2 + $0xe0] sm:$0xff] %vm1088_vm0, %v7492_v51  ;;  %1118 = vst.msk [vmem:[#allocation2 + $0xe8] sm:$0xff] %vm1088_vm0, %v7492_v51 }
  0x8b   : > { %1119 = vst.msk [vmem:[#allocation2 + $0xf0] sm:$0xff] %vm1088_vm0, %v7492_v51  ;;  %1120 = vst.msk [vmem:[#allocation2 + $0xf8] sm:$0xff] %vm1088_vm0, %v7492_v51 }
  0x8c   : > { %1121 = vst.msk [vmem:[#allocation2 + $0x100] sm:$0xff] %vm1088_vm0, %v7492_v51  ;;  %1122 = vst.msk [vmem:[#allocation2 + $0x108] sm:$0xff] %vm1088_vm0, %v7492_v51 }
  0x8d   : > { %1123 = vst.msk [vmem:[#allocation2 + $0x110] sm:$0xff] %vm1088_vm0, %v7492_v51  ;;  %1124 = vst.msk [vmem:[#allocation2 + $0x118] sm:$0xff] %vm1088_vm0, %v7492_v51 }
  0x8e PF: > { %v7179_v52 = vld [vmem:[%s7899_s14] sm:$0xff]   ;;  %v7181_v54 = vld [vmem:[%s7899_s14 + $0x8] sm:$0xff]   ;;  %v7183_v56 = vld [vmem:[%s7899_s14 + $0x10] sm:$0xff]   ;;  %vm2979_vm1 = vsmask.f32 6400  ;;  %vm3450_vm2 = vcmask 1045504  }
  0x8f   : > { %v7180_v53 = vld [vmem:[%s7899_s14 + $0x100] sm:$0xff]   ;;  %6206 = vmatprep.subr.bf16.mxu1 %v7179_v52  ;;  %v7182_v55 = vld [vmem:[%s7899_s14 + $0x108] sm:$0xff]   ;;  %v7184_v57 = vld [vmem:[%s7899_s14 + $0x110] sm:$0xff]   ;;  %vm2178_vm3 = vcmask 1046528   ;;  %vm1729_vm4 = vsmask.f32 7424 }
  0x90   : > { %6414 = vmatprep.subr.bf16.mxu0 %v7180_v53  ;;  %6207 = vmatpush3.bf16.msra.mxu1 %v7179_v52  ;;  %v7185_v58 = vld [vmem:[%s7899_s14 + $0x18] sm:$0xff]   ;;  %v7187_v60 = vld [vmem:[%s7899_s14 + $0x20] sm:$0xff]   ;;  %v7189_v62 = vld [vmem:[%s7899_s14 + $0x28] sm:$0xff]   ;;  %vm4251_vm5 = vsmask.f32 5376  ;;  %vm4722_vm6 = vcmask 1044480  }
  0x91   : > { %6415 = vmatpush3.bf16.msra.mxu0 %v7180_v53  ;;  %6208 = vmatprep.subr.bf16.mxu1 %v7181_v54  ;;  %v7186_v59 = vld [vmem:[%s7899_s14 + $0x118] sm:$0xff]   ;;  %v7188_v61 = vld [vmem:[%s7899_s14 + $0x120] sm:$0xff]   ;;  %v7190_v63 = vld [vmem:[%s7899_s14 + $0x128] sm:$0xff]   ;;  %vm5039_vm7 = vcmask 523264   ;;  %p5921_p7 = scmp.ne.s32.totalorder %s7474_s25, 1 }
  0x92   : > { %6416 = vmatprep.subr.bf16.mxu0 %v7182_v55  ;;  %v7195_v0 = vld [vmem:[%s7897_s10] sm:$0xff]   ;;  %v2495_v1 = vld [vmem:[%s7897_s10 + $0x8] sm:$0xe]  ;;  %v7955_v2 = vld [vmem:[%s7897_s10 + $0xc] sm:$0xf] }
  0x93   : > { %v7191_v3 = vld [vmem:[%s7899_s14 + $0x30] sm:$0xff]   ;;  %6222 = vmatprep.mubr.bf16.mxu1 %v7195_v0  ;;  %v7959_v4 = vcombine.low %v2495_v1, %v7955_v2  ;;  %v7962_v5 = vld [vmem:[%s7897_s10 + $0x10] sm:$0xff]  }
  0x94   : > { %6209 = vmatpush3.bf16.msra.mxu1 %v7181_v54  ;;  %v7192_v6 = vld [vmem:[%s7899_s14 + $0x130] sm:$0xff]   ;;  %v2989_v9 = vshrl.u32 %v7962_v5, 16  ;;  %v2992_v10 = vshll.u32 %v7962_v5, 16  ;;  %v7193_v16 = vld [vmem:[%s7899_s14 + $0x38] sm:$0xff]   ;;  %v7199_v23 = vld [vmem:[%s7899_s14 + $0x40] sm:$0xff]  }
  0x95   : > { %6417 = vmatpush3.bf16.msra.mxu0 %v7182_v55  ;;  %6210 = vmatprep.subr.bf16.mxu1 %v7183_v56  ;;  %v2981_v7 = vshrl.u32 %v7959_v4, 16  ;;  %v2984_v8 = vshll.u32 %v7959_v4, 16  ;;  %v7970_v15 = vld [vmem:[%s7897_s10 + $0x18] sm:$0xff]   ;;  %v7194_v17 = vld [vmem:[%s7899_s14 + $0x138] sm:$0xff]  }
  0x96   : > { %6418 = vmatprep.subr.bf16.mxu0 %v7184_v57  ;;  %v2991_v13 = vrot.slane %v2989_v9, 1  ;;  %v2994_v14 = vrot.slane %v2992_v10, 2  ;;  %v2998_v20 = vshrl.u32 %v7970_v15, 16  ;;  %v3001_v21 = vshll.u32 %v7970_v15, 16  ;;  %v7979_v26 = vld [vmem:[%s7897_s10 + $0x20] sm:$0xff]   ;;  %v7201_v28 = vld [vmem:[%s7899_s14 + $0x140] sm:$0xff]  }
  0x97   : > { %v2983_v11 = vrot.slane %v2981_v7, 1  ;;  %v2986_v12 = vrot.slane %v2984_v8, 2  ;;  %v3007_v29 = vshrl.u32 %v7979_v26, 16  ;;  %v3010_v30 = vshll.u32 %v7979_v26, 16  ;;  %v7985_v31 = vld [vmem:[%s7897_s10 + $0x28] sm:$0xff]   ;;  %v7202_v36 = vld [vmem:[%s7899_s14 + $0x148] sm:$0xff]  }
  0x98   : > { %6211 = vmatpush3.bf16.msra.mxu1 %v7183_v56  ;;  %v2995_v19 = vor.u32 %v2994_v14, %v2991_v13  ;;  %v3000_v24 = vrot.slane %v2998_v20, 1  ;;  %v3003_v25 = vrot.slane %v3001_v21, 2  ;;  %v7198_v32 = vld [vmem:[%s7897_s10 + $0x8] sm:$0xff]   ;;  %v3016_v35 = vshrl.u32 %v7985_v31, 16  ;;  %v7203_v39 = vld [vmem:[%s7897_s10 + $0x10] sm:$0xff]   ;;  %v7205_v48 = vld [vmem:[%s7897_s10 + $0x18] sm:$0xff]  }
  0x99   : > { %6419 = vmatpush3.bf16.msra.mxu0 %v7184_v57  ;;  %6212 = vmatprep.subr.bf16.mxu1 %v7185_v58  ;;  %v2987_v18 = vor.u32 %v2986_v12, %v2983_v11  ;;  %v3009_v33 = vrot.slane %v3007_v29, 1  ;;  %v3012_v34 = vrot.slane %v3010_v30, 2  ;;  %v3019_v37 = vshll.u32 %v7985_v31, 16  ;;  %v7994_v43 = vld [vmem:[%s7897_s10 + $0x30] sm:$0xff]   ;;  %v8002_v50 = vld [vmem:[%s7897_s10 + $0x38] sm:$0xff]   ;;  %v7210_v57 = vld [vmem:[%s7897_s10 + $0x20] sm:$0xff]  }
  0x9a   : > { %6420 = vmatprep.subr.bf16.mxu0 %v7186_v59  ;;  %v3004_v27 = vor.u32 %v3003_v25, %v3000_v24  ;;  %v3018_v41 = vrot.slane %v3016_v35, 1  ;;  %v7208_v45 = vld [vmem:[%s7899_s14 + $0x48] sm:$0xff]   ;;  %v3025_v46 = vshrl.u32 %v7994_v43, 16  ;;  %v3028_v47 = vshll.u32 %v7994_v43, 16  ;;  %v7207_v51 = vld [vmem:[%s7899_s14 + $0x150] sm:$0xff]   ;;  %v7214_v9 = vld [vmem:[%s7899_s14 + $0x160] sm:$0xff]  }
  0x9b   : > { %v2996_v22 = vsel %vm2979_vm1, %v2987_v18, %v2995_v19  ;;  %v3013_v40 = vor.u32 %v3012_v34, %v3009_v33  ;;  %v3021_v42 = vrot.slane %v3019_v37, 2  ;;  %v7215_v54 = vld [vmem:[%s7899_s14 + $0x50] sm:$0xff]   ;;  %v3034_v55 = vshrl.u32 %v8002_v50, 16  ;;  %v7222_v14 = vld [vmem:[%s7899_s14 + $0x58] sm:$0xff]   ;;  %v7227_v25 = vld [vmem:[%s7899_s14 + $0x60] sm:$0xff]  }
  0x9c   : > { %6213 = vmatpush3.bf16.msra.mxu1 %v7185_v58  ;;  %6430 = vmatprep.mubr.bf16.mxu0 %v2996_v22  ;;  %v3005_v38 = vsel %vm2979_vm1, %v2995_v19, %v3004_v27  ;;  %v3027_v52 = vrot.slane %v3025_v46, 1  ;;  %v3030_v53 = vrot.slane %v3028_v47, 2  ;;  %v3037_v56 = vshll.u32 %v8002_v50, 16  ;;  %v7212_v7 = vld [vmem:[%s7897_s10 + $0x28] sm:$0xff]   ;;  %v7216_v22 = vld [vmem:[%s7899_s14 + $0x168] sm:$0xff]  }
  0x9d   : > { %6421 = vmatpush3.bf16.msra.mxu0 %v7186_v59  ;;  %6214 = vmatprep.subr.bf16.mxu1 %v7187_v60  ;;  %v3014_v44 = vsel %vm2979_vm1, %v3004_v27, %v3013_v40  ;;  %v3022_v49 = vor.u32 %v3021_v42, %v3018_v41  ;;  %v3429_v21 = vld [vmem:[%s7897_s10 + $0x8] sm:$0xc]  ;;  %v7219_v27 = vld [vmem:[%s7897_s10 + $0x38] sm:$0xff]   ;;  %v3452_v29 = vrot.slane %v7962_v5, 2  ;;  %v7224_v33 = vld [vmem:[%s7897_s10 + $0x40] sm:$0xff]  }
  0x9e   : > { %6422 = vmatprep.subr.bf16.mxu0 %v7188_v61  ;;  %v3031_v58 = vor.u32 %v3030_v53, %v3027_v52  ;;  %v5819_v24 = vcombine.low %v3429_v21, %v7955_v2  ;;  %v7221_v30 = vld [vmem:[%s7899_s14 + $0x170] sm:$0xff]   ;;  %v7231_v2 = vld [vmem:[%s7899_s14 + $0x68] sm:$0xff]   ;;  %v7223_v35 = vld [vmem:[%s7899_s14 + $0x178] sm:$0xff]  }
  0x9f   : > { %v3023_v59 = vsel %vm2979_vm1, %v3013_v40, %v3022_v49  ;;  %v7226_v37 = vld [vmem:[%s7897_s10 + $0x48] sm:$0xff]   ;;  %v7228_v41 = vld [vmem:[%s7897_s10 + $0x50] sm:$0xff]  }
  0xa0   : > { %6215 = vmatpush3.bf16.msra.mxu1 %v7187_v60  ;;  %v7209_v60 = vld [vmem:[%s7899_s14 + $0x158] sm:$0xff]   ;;  %v3032_v0 = vsel %vm2979_vm1, %v3022_v49, %v3031_v58  ;;  %v7230_v40 = vld [vmem:[%s7899_s14 + $0x180] sm:$0xff]   ;;  %v7234_v46 = vld [vmem:[%s7899_s14 + $0x188] sm:$0xff]  }
  0xa1   : > { %6423 = vmatpush3.bf16.msra.mxu0 %v7188_v61  ;;  %6216 = vmatprep.subr.bf16.mxu1 %v7189_v62  ;;  %v3036_v61 = vrot.slane %v3034_v55, 1  ;;  %v7240_v42 = vld [vmem:[%s7899_s14 + $0x78] sm:$0xff]   ;;  %v7238_v47 = vld [vmem:[%s7899_s14 + $0x190] sm:$0xff]   ;;  %v8060_v52 = vld [vmem:[%s7899_s14 + $0x80] sm:$0xff]  }
  0xa2   : > { %6424 = vmatprep.subr.bf16.mxu0 %v7190_v63  ;;  %v7232_v49 = vld [vmem:[%s7897_s10 + $0x60] sm:$0xff]  }
  0xa4   : > { %6217 = vmatpush3.bf16.msra.mxu1 %v7189_v62  ;;  %v3039_v62 = vrot.slane %v3037_v56, 2  ;;  %v1582_v56 = vld [vmem:[%s7897_s10] sm:$0xf] }
  0xa5   : > { %6425 = vmatpush3.bf16.msra.mxu0 %v7190_v63  ;;  %6218 = vmatprep.subr.bf16.mxu1 %v7191_v3  ;;  %v8012_v63 = vld [vmem:[%s7897_s10 + $0x40] sm:$0xff]  }
  0xa6   : > { %6426 = vmatprep.subr.bf16.mxu0 %v7192_v6  ;;  %v3043_v1 = vshrl.u32 %v8012_v63, 16  ;;  %v3040_v8 = vor.u32 %v3039_v62, %v3036_v61  ;;  %v3464_v55 = vrot.slane %v8012_v63, 2  ;;  %v7233_v61 = vld [vmem:[%s7897_s10 + $0x68] sm:$0xff]   ;;  %v7236_v62 = vld [vmem:[%s7897_s10 + $0x70] sm:$0xff]  }
  0xa8   : > { %6219 = vmatpush3.bf16.msra.mxu1 %v7191_v3  ;;  %v3046_v3 = vshll.u32 %v8012_v63, 16  ;;  %v3045_v10 = vrot.slane %v3043_v1, 1  ;;  %v3041_v20 = vsel %vm2979_vm1, %v3031_v58, %v3040_v8  ;;  %v8075_v58 = vld [vmem:[%s7897_s10 + $0x10] sm:$0xff]  }
  0xa9   : > { %6427 = vmatpush3.bf16.msra.mxu0 %v7192_v6  ;;  %6220 = vmatprep.subr.bf16.mxu1 %v7193_v16  ;;  %v8018_v6 = vld [vmem:[%s7897_s10 + $0x48] sm:$0xff]  }
  0xaa   : > { %6428 = vmatprep.subr.bf16.mxu0 %v7194_v17  ;;  %v3048_v11 = vrot.slane %v3046_v3, 2  ;;  %v3052_v12 = vshrl.u32 %v8018_v6, 16  ;;  %v3055_v13 = vshll.u32 %v8018_v6, 16 }
  0xac   : > { %6221 = vmatpush3.bf16.msra.mxu1 %v7193_v16  ;;  %v7217_v16 = vld [vmem:[%s7897_s10 + $0x30] sm:$0xff]   ;;  %v3054_v18 = vrot.slane %v3052_v12, 1  ;;  %v3057_v19 = vrot.slane %v3055_v13, 2  ;;  %v7239_v13 = vld [vmem:[%s7897_s10 + $0x80] sm:$0xff]  }
  0xad   : > { %6429 = vmatpush3.bf16.msra.mxu0 %v7194_v17  ;;  %6258 = vmatprep.subr.bf16.mxu1 %v7199_v23  ;;  %v3049_v17 = vor.u32 %v3048_v11, %v3045_v10  ;;  %v7237_v11 = vld [vmem:[%s7897_s10 + $0x78] sm:$0xff]  }
  0xae   : > { %6466 = vmatprep.subr.bf16.mxu0 %v7201_v28 }
  0xaf   : > { %6223 = vmatmul.mubr.bf16.vlgmr.msra.gmra.mrb[0].mxu1 %v7198_v32  ;;  %v3451_v32 = vrot.slane %v5819_v24, 2 }
  0xb0   : > { %6431 = vmatmul.mubr.bf16.vlgmr.msra.gmra.mrb[0].mxu0 %v3005_v38  ;;  %6259 = vmatpush3.bf16.msra.mxu1 %v7199_v23  ;;  %v3050_v23 = vsel %vm2979_vm1, %v3040_v8, %v3049_v17  ;;  %v3454_v38 = vrot.slane %v7970_v15, 2  ;;  %v3458_v15 = vrot.slane %v7985_v31, 2  ;;  %v7244_v31 = vld [vmem:[%s7899_s14 + $0x198] sm:$0xff]   ;;  %v7259_v8 = vld [vmem:[%s7899_s14 + $0x1a8] sm:$0xff]  }
  0xb1   : > { %6467 = vmatpush3.bf16.msra.mxu0 %v7201_v28  ;;  %6226 = vmatprep.mubr.bf16.mxu1 %v7203_v39  ;;  %v8033_v28 = vor.u32 %v3057_v19, %v3054_v18  ;;  %v3453_v5 = vsel %vm3450_vm2, %v3451_v32, %v3452_v29  ;;  %v3456_v39 = vrot.slane %v7979_v26, 2  ;;  %v3460_v26 = vrot.slane %v7994_v43, 2 }
  0xb2   : > { %6468 = vmatprep.subr.bf16.mxu0 %v7202_v36  ;;  %6434 = vmatprep.mubr.bf16.mxu0 %v3014_v44  ;;  %v3455_v44 = vsel %vm3450_vm2, %v3452_v29, %v3454_v38  ;;  %v3462_v43 = vrot.slane %v8002_v50, 2  ;;  %v7269_v29 = vld [vmem:[%s7899_s14 + $0x1b8] sm:$0xff]  }
  0xb3   : > { %6260 = vmatprep.subr.bf16.mxu1 %v7208_v45  ;;  %v3059_v34 = vsel %vm2979_vm1, %v3049_v17, %v8033_v28  ;;  %v3461_v53 = vsel %vm3450_vm2, %v3458_v15, %v3460_v26 }
  0xb4   : > { %6261 = vmatpush3.bf16.msra.mxu1 %v7208_v45  ;;  %v3457_v45 = vsel %vm3450_vm2, %v3454_v38, %v3456_v39  ;;  %v3465_v3 = vsel %vm3450_vm2, %v3462_v43, %v3464_v55 }
  0xb5   : > { %6469 = vmatpush3.bf16.msra.mxu0 %v7202_v36  ;;  %6262 = vmatprep.subr.bf16.mxu1 %v7215_v54  ;;  %v7235_v36 = vld [vmem:[%s7899_s14 + $0x70] sm:$0xff]  }
  0xb6   : > { %6470 = vmatprep.subr.bf16.mxu0 %v7207_v51 }
  0xb7   : > { %6227 = vmatmul.mubr.bf16.gmra.mrb[4].mxu1 %v7205_v48  ;;  %v7229_v48 = vld [vmem:[%s7897_s10 + $0x58] sm:$0xff]  }
  0xb8   : > { %6435 = vmatmul.mubr.bf16.gmra.mrb[4].mxu0 %v3023_v59  ;;  %6230 = vmatprep.mubr.bf16.mxu1 %v7210_v57  ;;  %v8072_v57 = vld [vmem:[%s7897_s10 + $0x4] sm:$0xf]  ;;  %v7251_v59 = vld [vmem:[%s7899_s14 + $0x1a0] sm:$0xff]  }
  0xb9   : > { %6471 = vmatpush3.bf16.msra.mxu0 %v7207_v51  ;;  %6438 = vmatprep.mubr.bf16.mxu0 %v3032_v0  ;;  %v3459_v51 = vsel %vm3450_vm2, %v3456_v39, %v3458_v15  ;;  %v3463_v0 = vsel %vm3450_vm2, %v3460_v26, %v3462_v43  ;;  %v5683_v1 = vcombine.low %v1582_v56, %v8072_v57  ;;  %v8118_v39 = vld [vmem:[%s7897_s10 + $0x20] sm:$0xff]  }
  0xba   : > { %6472 = vmatprep.subr.bf16.mxu0 %v7209_v60  ;;  %6263 = vmatpush3.bf16.msra.mxu1 %v7215_v54  ;;  %v8066_v54 = vld [vmem:[%s7897_s10 + $0x8] sm:$0xff]   ;;  %v1762_v26 = vshll.u32 %v8118_v39, 16 }
  0xbb   : > { %6264 = vmatprep.subr.bf16.mxu1 %v7222_v14  ;;  %v2180_v50 = vrot.slane %v8066_v54, 1  ;;  %v1733_v10 = vshll.u32 %v5683_v1, 16  ;;  %v1738_v19 = vshll.u32 %v8066_v54, 16  ;;  %v1742_v32 = vshrl.u32 %v8066_v54, 16 }
  0xbd   : > { %6473 = vmatpush3.bf16.msra.mxu0 %v7209_v60  ;;  %v2182_v60 = vrot.slane %v8075_v58, 1  ;;  %v1735_v18 = vrot.slane %v1733_v10, 1  ;;  %v1740_v24 = vrot.slane %v1738_v19, 1  ;;  %v7262_v10 = vld [vmem:[%s7899_s14 + $0x90] sm:$0xff]  }
  0xbe   : > { %6474 = vmatprep.subr.bf16.mxu0 %v7214_v9  ;;  %6265 = vmatpush3.bf16.msra.mxu1 %v7222_v14  ;;  %v7243_v14 = vld [vmem:[%s7897_s10 + $0x58] sm:$0xff]  }
  0xbf   : > { %6231 = vmatmul.mubr.bf16.gmra.mrb[8].mxu1 %v7212_v7  ;;  %6266 = vmatprep.subr.bf16.mxu1 %v7227_v25  ;;  %v8087_v63 = vsel %vm2178_vm3, %v2180_v50, %v2182_v60  ;;  %v7241_v7 = vld [vmem:[%s7897_s10 + $0x50] sm:$0xff]   ;;  %v3470_v21 = vrot.slane %v7243_v14, 2 }
  0xc0   : > { %6439 = vmatmul.mubr.bf16.gmra.mrb[8].mxu0 %v3041_v20  ;;  %6234 = vmatprep.mubr.bf16.mxu1 %v7217_v16  ;;  %v3468_v12 = vrot.slane %v7241_v7, 2  ;;  %v1731_v16 = vshrl.u32 %v5683_v1, 16  ;;  %v7247_v20 = vld [vmem:[%s7897_s10 + $0x60] sm:$0xff]   ;;  %v8143_v7 = vld [vmem:[%s7897_s10 + $0x38] sm:$0xff]  }
  0xc1   : > { %6475 = vmatpush3.bf16.msra.mxu0 %v7214_v9  ;;  %6442 = vmatprep.mubr.bf16.mxu0 %v3050_v23  ;;  %v3466_v9 = vrot.slane %v8018_v6, 2 }
  0xc2   : > { %6476 = vmatprep.subr.bf16.mxu0 %v7216_v22  ;;  %6267 = vmatpush3.bf16.msra.mxu1 %v7227_v25  ;;  %v1736_v23 = vor.u32 %v1735_v18, %v1731_v16  ;;  %v8104_v25 = vld [vmem:[%s7897_s10 + $0x18] sm:$0xff]   ;;  %v8153_v18 = vld [vmem:[%s7897_s10 + $0x90] sm:$0xff]  }
  0xc3   : > { %6268 = vmatprep.subr.bf16.mxu1 %v7231_v2  ;;  %v3467_v17 = vsel %vm3450_vm2, %v3464_v55, %v3466_v9  ;;  %v3469_v6 = vsel %vm3450_vm2, %v3466_v9, %v3468_v12  ;;  %v1754_v38 = vshll.u32 %v8104_v25, 16  ;;  %v8132_v55 = vld [vmem:[%s7899_s14 + $0x1c0] sm:$0xff]  }
  0xc5   : > { %6477 = vmatpush3.bf16.msra.mxu0 %v7216_v22  ;;  %v7267_v22 = vld [vmem:[%s7899_s14 + $0x1b0] sm:$0xff]  }
  0xc6   : > { %6478 = vmatprep.subr.bf16.mxu0 %v7221_v30  ;;  %6269 = vmatpush3.bf16.msra.mxu1 %v7231_v2  ;;  %v1746_v2 = vshll.u32 %v8075_v58, 16 }
  0xc7   : > { %6235 = vmatmul.mubr.bf16.gmra.mrb[12].mxu1 %v7219_v27  ;;  %6270 = vmatprep.subr.bf16.mxu1 %v7235_v36  ;;  %v3472_v27 = vrot.slane %v7247_v20, 2 }
  0xc8   : > { %6443 = vmatmul.mubr.bf16.gmra.mrb[12].mxu0 %v3059_v34  ;;  %6238 = vmatprep.mubr.bf16.mxu1 %v7224_v33  ;;  %v3471_v33 = vsel %vm3450_vm2, %v3468_v12, %v3470_v21  ;;  %v1741_v34 = vsel %vm1729_vm4, %v1736_v23, %v1740_v24 }
  0xc9   : > { %6479 = vmatpush3.bf16.msra.mxu0 %v7221_v30  ;;  %6482 = vmatprep.mubr.bf16.mxu0 %v3453_v5  ;;  %v7242_v30 = vld [vmem:[%s7897_s10 + $0x88] sm:$0xff]   ;;  %v1750_v5 = vshrl.u32 %v8075_v58, 16 }
  0xca   : > { %6480 = vmatprep.subr.bf16.mxu0 %v7223_v35  ;;  %6271 = vmatpush3.bf16.msra.mxu1 %v7235_v36  ;;  %v7253_v36 = vld [vmem:[%s7897_s10 + $0x70] sm:$0xff]  }
  0xcb   : > { %6272 = vmatprep.subr.bf16.mxu1 %v7240_v42  ;;  %v3476_v15 = vrot.slane %v7253_v36, 2  ;;  %v8171_v36 = vld [vmem:[%s7897_s10 + $0x50] sm:$0xff]  }
  0xcc   : > { %v8238_v58 = vld [vmem:[%s7899_s14 + $0xc0] sm:$0xff]  }
  0xcd   : > { %6481 = vmatpush3.bf16.msra.mxu0 %v7223_v35  ;;  %v7250_v35 = vld [vmem:[%s7897_s10 + $0x68] sm:$0xff]  }
  0xce   : > { %6518 = vmatprep.subr.bf16.mxu0 %v7230_v40  ;;  %6273 = vmatpush3.bf16.msra.mxu1 %v7240_v42  ;;  %v3474_v42 = vrot.slane %v7250_v35, 2  ;;  %v3484_v35 = vrot.slane %v8153_v18, 2 }
  0xcf   : > { %6239 = vmatmul.mubr.bf16.gmra.mrb[16].mxu1 %v7226_v37  ;;  %6310 = vmatprep.subr.bf16.mxu1 %v8060_v52  ;;  %v3473_v37 = vsel %vm3450_vm2, %v3470_v21, %v3472_v27  ;;  %v8159_v21 = vld [vmem:[%s7897_s10 + $0x40] sm:$0xff]  }
  0xd0   : > { %6483 = vmatmul.mubr.bf16.vlgmr.msra.gmra.mrb[0].mxu0 %v3455_v44  ;;  %6242 = vmatprep.mubr.bf16.mxu1 %v7228_v41  ;;  %v1748_v41 = vrot.slane %v1746_v2, 1  ;;  %v8121_v44 = vld [vmem:[%s7897_s10 + $0x28] sm:$0xff]   ;;  %v7266_v2 = vld [vmem:[%s7897_s10 + $0x98] ss:$0 sps:$4 sm:$0x33]  }
  0xd1   : > { %6486 = vmatprep.mubr.bf16.mxu0 %v3457_v45  ;;  %6519 = vmatpush3.bf16.msra.mxu0 %v7230_v40  ;;  %v1744_v40 = vor.u32 %v1742_v32, %v1740_v24  ;;  %v1770_v43 = vshll.u32 %v8121_v44, 16 }
  0xd2   : > { %6520 = vmatprep.subr.bf16.mxu0 %v7234_v46  ;;  %v1752_v45 = vor.u32 %v1750_v5, %v1748_v41  ;;  %v1794_v5 = vshll.u32 %v8159_v21, 16 }
  0xd3   : > { %v1772_v9 = vrot.slane %v1770_v43, 1 }
  0xd5   : > { %6521 = vmatpush3.bf16.msra.mxu0 %v7234_v46  ;;  %v1756_v46 = vrot.slane %v1754_v38, 1 }
  0xd6   : > { %6522 = vmatprep.subr.bf16.mxu0 %v7238_v47 }
  0xd7   : > { %6243 = vmatmul.mubr.bf16.gmra.mrb[20].mxu1 %v7229_v48  ;;  %v1758_v48 = vshrl.u32 %v8104_v25, 16  ;;  %v1757_v56 = vsel %vm1729_vm4, %v1752_v45, %v1756_v46 }
  0xd8   : > { %6487 = vmatmul.mubr.bf16.gmra.mrb[4].mxu0 %v3459_v51  ;;  %6246 = vmatprep.mubr.bf16.mxu1 %v7232_v49  ;;  %v7255_v49 = vld [vmem:[%s7897_s10 + $0x78] sm:$0xff]  }
  0xd9   : > { %6490 = vmatprep.mubr.bf16.mxu0 %v3461_v53  ;;  %6523 = vmatpush3.bf16.msra.mxu0 %v7238_v47  ;;  %v1749_v47 = vsel %vm1729_vm4, %v1744_v40, %v1748_v41  ;;  %v7256_v51 = vld [vmem:[%s7899_s14 + $0x88] sm:$0xff]   ;;  %v1766_v53 = vshrl.u32 %v8118_v39, 16  ;;  %v1760_v1 = vor.u32 %v1758_v48, %v1756_v46  ;;  %v1790_v40 = vshrl.u32 %v8143_v7, 16 }
  0xda   : > { %6524 = vmatprep.subr.bf16.mxu0 %v7244_v31  ;;  %v8177_v41 = vld [vmem:[%s7897_s10 + $0x18] sm:$0xff]   ;;  %v1798_v46 = vshrl.u32 %v8159_v21, 16 }
  0xdb   : > { %v7281_v48 = vld [vmem:[%s7899_s14 + $0xa8] sm:$0xff]  }
  0xdd   : > { %6525 = vmatpush3.bf16.msra.mxu0 %v7244_v31  ;;  %v3475_v31 = vsel %vm3450_vm2, %v3472_v27, %v3474_v42 }
  0xde   : > { %6526 = vmatprep.subr.bf16.mxu0 %v7251_v59 }
  0xdf   : > { %6247 = vmatmul.mubr.bf16.gmra.mrb[24].mxu1 %v7233_v61  ;;  %v1764_v61 = vrot.slane %v1762_v26, 1 }
  0xe0   : > { %6491 = vmatmul.mubr.bf16.gmra.mrb[8].mxu0 %v3463_v0  ;;  %6250 = vmatprep.mubr.bf16.mxu1 %v7236_v62  ;;  %v7258_v62 = vld [vmem:[%s7897_s10 + $0x80] sm:$0xff]   ;;  %v8138_v0 = vld [vmem:[%s7897_s10 + $0x30] sm:$0xff]  }
  0xe1   : > { %6494 = vmatprep.mubr.bf16.mxu0 %v3465_v3  ;;  %6527 = vmatpush3.bf16.msra.mxu0 %v7251_v59  ;;  %v3477_v59 = vsel %vm3450_vm2, %v3474_v42, %v3476_v15  ;;  %v3478_v3 = vrot.slane %v7255_v49, 2  ;;  %v1778_v12 = vshll.u32 %v8138_v0, 16  ;;  %v1765_v14 = vsel %vm1729_vm4, %v1760_v1, %v1764_v61  ;;  %v8194_v1 = vld [vmem:[%s7897_s10 + $0x58] sm:$0xff]  }
  0xe2   : > { %6528 = vmatprep.subr.bf16.mxu0 %v7259_v8  ;;  %v1782_v16 = vshrl.u32 %v8138_v0, 16  ;;  %v1796_v49 = vrot.slane %v1794_v5, 1  ;;  %v1818_v18 = vshll.u32 %v8194_v1, 16 }
  0xe3   : > { %v3479_v19 = vsel %vm3450_vm2, %v3476_v15, %v3478_v3  ;;  %v1780_v23 = vrot.slane %v1778_v12, 1 }
  0xe5   : > { %6529 = vmatpush3.bf16.msra.mxu0 %v7259_v8  ;;  %v1768_v8 = vor.u32 %v1766_v53, %v1764_v61  ;;  %v1784_v32 = vor.u32 %v1782_v16, %v1780_v23  ;;  %v1810_v53 = vshll.u32 %v8171_v36, 16  ;;  %v1800_v61 = vor.u32 %v1798_v46, %v1796_v49 }
  0xe6   : > { %6530 = vmatprep.subr.bf16.mxu0 %v7267_v22  ;;  %v2192_v46 = vrot.slane %v8143_v7, 1 }
  0xe7   : > { %6251 = vmatmul.mubr.bf16.gmra.mrb[28].mxu1 %v7237_v11  ;;  %v3480_v11 = vrot.slane %v7258_v62, 2 }
  0xe8   : > { %6495 = vmatmul.mubr.bf16.gmra.mrb[12].mxu0 %v3467_v17  ;;  %6254 = vmatprep.mubr.bf16.mxu1 %v7239_v13  ;;  %v7261_v13 = vld [vmem:[%s7897_s10 + $0x88] sm:$0xff]   ;;  %v1786_v17 = vshll.u32 %v8143_v7, 16 }
  0xe9   : > { %6498 = vmatprep.mubr.bf16.mxu0 %v3469_v6  ;;  %6531 = vmatpush3.bf16.msra.mxu0 %v7267_v22  ;;  %v1773_v6 = vsel %vm1729_vm4, %v1768_v8, %v1772_v9  ;;  %v3481_v20 = vsel %vm3450_vm2, %v3478_v3, %v3480_v11  ;;  %v7268_v22 = vld [vmem:[%s7899_s14 + $0x98] sm:$0xff]   ;;  %v3482_v24 = vrot.slane %v7261_v13, 2  ;;  %v7287_v8 = vld [vmem:[%s7899_s14 + $0xb0] sm:$0xff]  }
  0xea   : > { %6532 = vmatprep.subr.bf16.mxu0 %v7269_v29 }
  0xeb   : > { %v3483_v42 = vsel %vm3450_vm2, %v3480_v11, %v3482_v24  ;;  %v3485_v26 = vsel %vm3450_vm2, %v3482_v24, %v3484_v35  ;;  %v2186_v24 = vrot.slane %v8118_v39, 1 }
  0xed   : > { %6533 = vmatpush3.bf16.msra.mxu0 %v7269_v29  ;;  %v1788_v29 = vrot.slane %v1786_v17, 1 }
  0xee   : > { %6570 = vmatprep.subr.bf16.mxu0 %v8132_v55 }
  0xef   : > { %6255 = vmatmul.mubr.bf16.gmra.mrb[32].mxu1 %v7242_v30  ;;  %v8163_v30 = vld [vmem:[%s7897_s10 + $0x48] sm:$0xff]   ;;  %v1789_v45 = vsel %vm1729_vm4, %v1784_v32, %v1788_v29  ;;  %v1792_v43 = vor.u32 %v1790_v40, %v1788_v29  ;;  %v2188_v32 = vrot.slane %v8121_v44, 1 }
  0xf0   : > { %6499 = vmatmul.mubr.bf16.gmra.mrb[16].mxu0 %v3471_v33  ;;  %6274 = vmatprep.mubr.bf16.mxu1 %v1741_v34  ;;  %v3767_v33 = vld [vmem:[%s7897_s10 + $0x10] sm:$0xc]  ;;  %v3768_v34 = vld [vmem:[%s7897_s10 + $0x14] sm:$0xf]  ;;  %v1802_v15 = vshll.u32 %v8163_v30, 16  ;;  %v8222_v29 = vld [vmem:[%s7897_s10 + $0x68] sm:$0xff]  }
  0xf1   : > { %6502 = vmatprep.mubr.bf16.mxu0 %v3473_v37  ;;  %v7275_v37 = vld [vmem:[%s7899_s14 + $0xa0] sm:$0xff]   ;;  %v1797_v13 = vsel %vm1729_vm4, %v1792_v43, %v1796_v49 }
  0xf2   : > { %v1804_v62 = vrot.slane %v1802_v15, 1  ;;  %v8257_v15 = vld [vmem:[%s7897_s10 + $0x38] sm:$0xff]  }
  0xf4   : > { %v1805_v17 = vsel %vm1729_vm4, %v1800_v61, %v1804_v62  ;;  %v8274_v61 = vld [vmem:[%s7897_s10 + $0x78] sm:$0xff]  }
  0xf7   : > { %6275 = vmatmul.mubr.bf16.vlgmr.msra.gmra.mrb[0].mxu1 %v1749_v47  ;;  %v8184_v47 = vcombine.low %v3767_v33, %v3768_v34  ;;  %v8235_v33 = vld [vmem:[%s7897_s10 + $0x30] sm:$0xff]   ;;  %v2190_v34 = vrot.slane %v8138_v0, 1 }
  0xf8   : > { %6503 = vmatmul.mubr.bf16.gmra.mrb[20].mxu0 %v3475_v31  ;;  %6311 = vmatpush3.bf16.msra.mxu1 %v8060_v52  ;;  %v1774_v52 = vshrl.u32 %v8121_v44, 16  ;;  %v8189_v31 = vld [vmem:[%s7897_s10 + $0x20] sm:$0xff]   ;;  %v3921_v43 = vrot.slane %v8235_v33, 2 }
  0xf9   : > { %6278 = vmatprep.mubr.bf16.mxu1 %v1757_v56  ;;  %6506 = vmatprep.mubr.bf16.mxu0 %v3477_v59  ;;  %v3915_v56 = vrot.slane %v8177_v41, 2  ;;  %v1806_v59 = vshrl.u32 %v8163_v30, 16  ;;  %v3914_v3 = vrot.slane %v8184_v47, 2  ;;  %v3917_v11 = vrot.slane %v8189_v31, 2 }
  0xfa   : > { %6312 = vmatprep.subr.bf16.mxu1 %v7256_v51  ;;  %v1776_v27 = vor.u32 %v1774_v52, %v1772_v9  ;;  %v2157_v9 = vld [vmem:[%s7897_s10] sm:$0xe]  ;;  %v8204_v52 = vld [vmem:[%s7897_s10 + $0x28] sm:$0xff]  }
  0xfb   : > { %v5726_v12 = vcombine.low %v2157_v9, %v8072_v57  ;;  %v2184_v57 = vrot.slane %v8104_v25, 1  ;;  %v3919_v39 = vrot.slane %v8204_v52, 2  ;;  %v3918_v5 = vsel %vm3450_vm2, %v3915_v56, %v3917_v11 }
  0xfc   : > { %6313 = vmatpush3.bf16.msra.mxu1 %v7256_v51  ;;  %v1781_v38 = vsel %vm1729_vm4, %v1776_v27, %v1780_v23  ;;  %v3486_v51 = vrot.slane %v7266_v2, 2  ;;  %v1808_v27 = vor.u32 %v1806_v59, %v1804_v62  ;;  %v1820_v2 = vrot.slane %v1818_v18, 1 }
  0xfd   : > { %6314 = vmatprep.subr.bf16.mxu1 %v7262_v10  ;;  %v8227_v25 = vsel %vm2178_vm3, %v2182_v60, %v2184_v57  ;;  %v8241_v60 = vsel %vm2178_vm3, %v2186_v24, %v2188_v32  ;;  %v3920_v0 = vsel %vm3450_vm2, %v3917_v11, %v3919_v39  ;;  %v2196_v62 = vrot.slane %v8163_v30, 1 }
  0xfe   : > { %v3487_v16 = vsel %vm3450_vm2, %v3484_v35, %v3486_v51  ;;  %v8263_v51 = vld [vmem:[%s7897_s10 + $0x70] sm:$0xff]   ;;  %v2198_v30 = vrot.slane %v8171_v36, 1  ;;  %v2200_v18 = vrot.slane %v8194_v1, 1 }
  0xff   : > { %6279 = vmatmul.mubr.bf16.gmra.mrb[4].mxu1 %v1765_v14  ;;  %v1814_v14 = vshrl.u32 %v8171_v36, 16  ;;  %v1842_v9 = vshll.u32 %v8263_v51, 16 }
 0x100   : > { %6507 = vmatmul.mubr.bf16.gmra.mrb[24].mxu0 %v3479_v19  ;;  %6282 = vmatprep.mubr.bf16.mxu1 %v1773_v6  ;;  %v2179_v19 = vrot.slane %v5726_v12, 1  ;;  %v3916_v6 = vsel %vm3450_vm2, %v3914_v3, %v3915_v56  ;;  %v3923_v3 = vrot.slane %v8257_v15, 2  ;;  %v1838_v12 = vshrl.u32 %v8222_v29, 16 }
 0x101   : > { %6510 = vmatprep.mubr.bf16.mxu0 %v3481_v20  ;;  %6315 = vmatpush3.bf16.msra.mxu1 %v7262_v10  ;;  %v1812_v10 = vrot.slane %v1810_v53, 1  ;;  %v7294_v20 = vld [vmem:[%s7899_s14 + $0xb8] sm:$0xff]   ;;  %v8266_v53 = vsel %vm2178_vm3, %v2190_v34, %v2192_v46  ;;  %v1844_v36 = vrot.slane %v1842_v9, 1 }
 0x102   : > { %6316 = vmatprep.subr.bf16.mxu1 %v7268_v22  ;;  %v8218_v23 = vsel %vm2178_vm3, %v2179_v19, %v2180_v50  ;;  %v8231_v50 = vsel %vm2178_vm3, %v2184_v57, %v2186_v24  ;;  %v3924_v19 = vsel %vm3450_vm2, %v3921_v43, %v3923_v3  ;;  %v8300_v57 = vsel %vm2178_vm3, %v2196_v62, %v2198_v30  ;;  %v7290_v24 = vld [vmem:[%s7897_s10 + $0x80] sm:$0xff]  }
 0x103   : > { %v1816_v54 = vor.u32 %v1814_v14, %v1812_v10  ;;  %v1813_v35 = vsel %vm1729_vm4, %v1808_v27, %v1812_v10  ;;  %v8304_v27 = vsel %vm2178_vm3, %v2198_v30, %v2200_v18  ;;  %v8341_v30 = vld [vmem:[%s7897_s10 + $0x60] sm:$0xff]  }
 0x105   : > { %6317 = vmatpush3.bf16.msra.mxu1 %v7268_v22  ;;  %v8213_v22 = vld [vmem:[%s7897_s10 + $0x60] sm:$0xff]   ;;  %v1821_v40 = vsel %vm1729_vm4, %v1816_v54, %v1820_v2 }
 0x106   : > { %6318 = vmatprep.subr.bf16.mxu1 %v7275_v37  ;;  %v1826_v44 = vshll.u32 %v8213_v22, 16  ;;  %v2202_v54 = vrot.slane %v8213_v22, 1 }
 0x107   : > { %6283 = vmatmul.mubr.bf16.gmra.mrb[8].mxu1 %v1781_v38  ;;  %v1834_v38 = vshll.u32 %v8222_v29, 16 }
 0x108   : > { %6511 = vmatmul.mubr.bf16.gmra.mrb[28].mxu0 %v3483_v42  ;;  %6286 = vmatprep.mubr.bf16.mxu1 %v1789_v45  ;;  %v1830_v42 = vshrl.u32 %v8213_v22, 16  ;;  %v8252_v45 = vsel %vm2178_vm3, %v2188_v32, %v2190_v34  ;;  %v1828_v49 = vrot.slane %v1826_v44, 1  ;;  %v7293_v44 = vld [vmem:[%s7897_s10 + $0x88] sm:$0xff]   ;;  %v2204_v34 = vrot.slane %v8222_v29, 1  ;;  %v8322_v29 = vld [vmem:[%s7897_s10 + $0x50] sm:$0xff]  }
 0x109   : > { %6514 = vmatprep.mubr.bf16.mxu0 %v3485_v26  ;;  %6319 = vmatpush3.bf16.msra.mxu1 %v7275_v37  ;;  %v1822_v37 = vshrl.u32 %v8194_v1, 16  ;;  %v7286_v26 = vld [vmem:[%s7899_s14 + $0x1c8] sm:$0xff]   ;;  %v1836_v56 = vrot.slane %v1834_v38, 1  ;;  %v1858_v38 = vshll.u32 %v7290_v24, 16 }
 0x10a   : > { %6320 = vmatprep.subr.bf16.mxu1 %v7281_v48  ;;  %v8316_v22 = vsel %vm2178_vm3, %v2202_v54, %v2204_v34 }
 0x10b   : > { %v1824_v7 = vor.u32 %v1822_v37, %v1820_v2  ;;  %v1840_v1 = vor.u32 %v1838_v12, %v1836_v56  ;;  %v8313_v37 = vsel %vm2178_vm3, %v2200_v18, %v2202_v54 }
 0x10d   : > { %6321 = vmatpush3.bf16.msra.mxu1 %v7281_v48  ;;  %v2194_v48 = vrot.slane %v8159_v21, 1  ;;  %v1832_v21 = vor.u32 %v1830_v42, %v1828_v49  ;;  %v1829_v11 = vsel %vm1729_vm4, %v1824_v7, %v1828_v49  ;;  %v1866_v49 = vshll.u32 %v7293_v44, 16  ;;  %v8327_v7 = vld [vmem:[%s7897_s10 + $0x58] sm:$0xff]  }
 0x10e   : > { %6322 = vmatprep.subr.bf16.mxu1 %v7287_v8 }
 0x10f   : > { %6287 = vmatmul.mubr.bf16.gmra.mrb[12].mxu1 %v1797_v13  ;;  %v8270_v59 = vsel %vm2178_vm3, %v2192_v46, %v2194_v48  ;;  %v8281_v10 = vsel %vm2178_vm3, %v2194_v48, %v2196_v62  ;;  %v8287_v13 = vld [vmem:[%s7897_s10 + $0x40] sm:$0xff]   ;;  %v1837_v14 = vsel %vm1729_vm4, %v1832_v21, %v1836_v56  ;;  %v1854_v46 = vshrl.u32 %v8274_v61, 16 }
 0x110   : > { %6515 = vmatmul.mubr.bf16.gmra.mrb[32].mxu0 %v3487_v16  ;;  %6290 = vmatprep.mubr.bf16.mxu1 %v1805_v17  ;;  %v1846_v16 = vshrl.u32 %v8263_v51, 16  ;;  %v1850_v17 = vshll.u32 %v8274_v61, 16  ;;  %v3925_v32 = vrot.slane %v8287_v13, 2  ;;  %v1862_v48 = vshrl.u32 %v7290_v24, 16  ;;  %v7308_v21 = vld [vmem:[%s7899_s14 + $0x1e8] sm:$0xff]  }
 0x111   : > { %6534 = vmatprep.mubr.bf16.mxu0 %v3916_v6  ;;  %6323 = vmatpush3.bf16.msra.mxu1 %v7287_v8  ;;  %v7292_v8 = vld [vmem:[%s7899_s14 + $0x1d0] sm:$0xff]   ;;  %v1868_v12 = vrot.slane %v1866_v49, 1 }
 0x112   : > { %6324 = vmatprep.subr.bf16.mxu1 %v7294_v20  ;;  %v8296_v6 = vld [vmem:[%s7897_s10 + $0x48] sm:$0xff]   ;;  %v1848_v2 = vor.u32 %v1846_v16, %v1844_v36  ;;  %v3926_v42 = vsel %vm3450_vm2, %v3923_v3, %v3925_v32  ;;  %v1860_v3 = vrot.slane %v1858_v38, 1  ;;  %v3931_v16 = vrot.slane %v8327_v7, 2 }
 0x113   : > { %v7315_v38 = vld [vmem:[%s7899_s14 + $0x1f8] sm:$0xff]  }
 0x115   : > { %6325 = vmatpush3.bf16.msra.mxu1 %v7294_v20  ;;  %v7298_v20 = vld [vmem:[%s7899_s14 + $0x1d8] sm:$0xff]  }
 0x116   : > { %6362 = vmatprep.subr.bf16.mxu1 %v8238_v58 }
 0x117   : > { %6291 = vmatmul.mubr.bf16.gmra.mrb[16].mxu1 %v1813_v35  ;;  %v3927_v35 = vrot.slane %v8296_v6, 2 }
 0x118   : > { %6535 = vmatmul.mubr.bf16.vlgmr.msra.gmra.mrb[0].mxu0 %v3918_v5  ;;  %6294 = vmatprep.mubr.bf16.mxu1 %v1821_v40  ;;  %v7303_v5 = vld [vmem:[%s7899_s14 + $0x1e0] sm:$0xff]   ;;  %v1845_v40 = vsel %vm1729_vm4, %v1840_v1, %v1844_v36 }
 0x119   : > { %6538 = vmatprep.mubr.bf16.mxu0 %v3920_v0  ;;  %6571 = vmatpush3.bf16.msra.mxu0 %v8132_v55  ;;  %v3922_v55 = vsel %vm3450_vm2, %v3919_v39, %v3921_v43  ;;  %v1852_v39 = vrot.slane %v1850_v17, 1  ;;  %v2206_v0 = vrot.slane %v8263_v51, 1  ;;  %v2208_v43 = vrot.slane %v8274_v61, 1  ;;  %v7296_v51 = vld [vmem:[%s7897_s10 + $0x90] ss:$0 sps:$4 sm:$0x11]  }
 0x11a   : > { %6572 = vmatprep.subr.bf16.mxu0 %v7286_v26  ;;  %v3928_v56 = vsel %vm3450_vm2, %v3925_v32, %v3927_v35  ;;  %v3929_v61 = vrot.slane %v8322_v29, 2  ;;  %v7313_v17 = vld [vmem:[%s7899_s14 + $0x1f0] sm:$0xff]   ;;  %v2214_v1 = vrot.slane %v7296_v51, 1  ;;  %v4342_v32 = vshrl.u32 %v8341_v30, 16 }
 0x11b   : > { %v8333_v62 = vsel %vm2178_vm3, %v2204_v34, %v2206_v0  ;;  %v1856_v9 = vor.u32 %v1854_v46, %v1852_v39  ;;  %v8359_v34 = vld [vmem:[%s7897_s10 + $0x70] sm:$0xff]  }
 0x11c   : > { %v3930_v54 = vsel %vm3450_vm2, %v3927_v35, %v3929_v61  ;;  %v4360_v49 = vshrl.u32 %v8359_v34, 16 }
 0x11d   : > { %6573 = vmatpush3.bf16.msra.mxu0 %v7286_v26  ;;  %v1853_v26 = vsel %vm1729_vm4, %v1848_v2, %v1852_v39  ;;  %v8356_v39 = vld [vmem:[%s7897_s10 + $0x68] sm:$0xff]  }
 0x11e   : > { %6574 = vmatprep.subr.bf16.mxu0 %v7292_v8  ;;  %v4351_v46 = vshrl.u32 %v8356_v39, 16 }
 0x11f   : > { %6295 = vmatmul.mubr.bf16.gmra.mrb[20].mxu1 %v1829_v11  ;;  %v2210_v11 = vrot.slane %v7290_v24, 1  ;;  %v1861_v24 = vsel %vm1729_vm4, %v1856_v9, %v1860_v3  ;;  %v8377_v9 = vld [vmem:[%s7899_s14 + $0x200] sm:$0xff]  }
 0x120   : > { %6539 = vmatmul.mubr.bf16.gmra.mrb[4].mxu0 %v3922_v55  ;;  %6298 = vmatprep.mubr.bf16.mxu1 %v1837_v14  ;;  %v1864_v55 = vor.u32 %v1862_v48, %v1860_v3  ;;  %v2212_v14 = vrot.slane %v7293_v44, 1  ;;  %v4354_v48 = vshll.u32 %v8356_v39, 16  ;;  %v4363_v3 = vshll.u32 %v8359_v34, 16 }
 0x121   : > { %6542 = vmatprep.mubr.bf16.mxu0 %v3924_v19  ;;  %6575 = vmatpush3.bf16.msra.mxu0 %v7292_v8  ;;  %v8337_v8 = vsel %vm2178_vm3, %v2206_v0, %v2208_v43  ;;  %v8346_v18 = vsel %vm2178_vm3, %v2208_v43, %v2210_v11  ;;  %v1870_v19 = vshrl.u32 %v7293_v44, 16  ;;  %v4345_v44 = vshll.u32 %v8341_v30, 16 }
 0x122   : > { %6576 = vmatprep.subr.bf16.mxu0 %v7298_v20  ;;  %v8349_v36 = vsel %vm2178_vm3, %v2210_v11, %v2212_v14  ;;  %v1869_v2 = vsel %vm1729_vm4, %v1864_v55, %v1868_v12  ;;  %v4344_v0 = vrot.slane %v4342_v32, 2  ;;  %v3933_v43 = vrot.slane %v8341_v30, 2 }
 0x123   : > { %v4356_v11 = vrot.slane %v4354_v48, 3  ;;  %v4365_v55 = vrot.slane %v4363_v3, 3  ;;  %v8410_v48 = vld [vmem:[%s7897_s10 + $0x88] sm:$0xff]  }
 0x125   : > { %6577 = vmatpush3.bf16.msra.mxu0 %v7298_v20  ;;  %v1874_v20 = vshll.u32 %v7296_v51, 16  ;;  %v3935_v51 = vrot.slane %v8356_v39, 2 }
 0x126   : > { %6578 = vmatprep.subr.bf16.mxu0 %v7303_v5 }
 0x127   : > { %6299 = vmatmul.mubr.bf16.gmra.mrb[24].mxu1 %v1845_v40  ;;  %v8365_v40 = vsel %vm2178_vm3, %v2212_v14, %v2214_v1  ;;  %v1876_v35 = vrot.slane %v1874_v20, 1 }
 0x128   : > { %6543 = vmatmul.mubr.bf16.gmra.mrb[8].mxu0 %v3926_v42  ;;  %6302 = vmatprep.mubr.bf16.mxu1 %v1853_v26  ;;  %v1872_v42 = vor.u32 %v1870_v19, %v1868_v12  ;;  %v4347_v26 = vrot.slane %v4345_v44, 3 }
 0x129   : > { %6546 = vmatprep.mubr.bf16.mxu0 %v3928_v56  ;;  %6579 = vmatpush3.bf16.msra.mxu0 %v7303_v5  ;;  %v3932_v5 = vsel %vm3450_vm2, %v3929_v61, %v3931_v16  ;;  %v8372_v56 = vld [vmem:[%s7897_s10 + $0x78] sm:$0xff]   ;;  %v4362_v61 = vrot.slane %v4360_v49, 2 }
 0x12a   : > { %6580 = vmatprep.subr.bf16.mxu0 %v7308_v21  ;;  %v4369_v12 = vshrl.u32 %v8372_v56, 16  ;;  %v1877_v14 = vsel %vm1729_vm4, %v1872_v42, %v1876_v35  ;;  %v8381_v19 = vor.u32 %v4347_v26, %v4344_v0  ;;  %v3939_v42 = vrot.slane %v8372_v56, 2  ;;  %v8405_v0 = vld [vmem:[%s7897_s10 + $0x80] sm:$0xff]  }
 0x12b   : > { %v4366_v1 = vor.u32 %v4365_v55, %v4362_v61  ;;  %v3941_v49 = vrot.slane %v8405_v0, 2  ;;  %v4253_v55 = vshrl.u32 %v8184_v47, 16 }
 0x12c   : > { %v4371_v32 = vrot.slane %v4369_v12, 2  ;;  %v4256_v12 = vshll.u32 %v8184_v47, 16 }
 0x12d   : > { %6581 = vmatpush3.bf16.msra.mxu0 %v7308_v21  ;;  %v4353_v21 = vrot.slane %v4351_v46, 2  ;;  %v3942_v3 = vsel %vm3450_vm2, %v3939_v42, %v3941_v49 }
 0x12e   : > { %6582 = vmatprep.subr.bf16.mxu0 %v7313_v17 }
 0x12f   : > { %6303 = vmatmul.mubr.bf16.gmra.mrb[28].mxu1 %v1861_v24  ;;  %v4357_v20 = vor.u32 %v4356_v11, %v4353_v21  ;;  %v3934_v24 = vsel %vm3450_vm2, %v3931_v16, %v3933_v43  ;;  %v3943_v21 = vrot.slane %v8410_v48, 2  ;;  %v7314_v11 = vld [vmem:[%s7899_s14 + $0xd8] sm:$0xff]  }
 0x130   : > { %6547 = vmatmul.mubr.bf16.gmra.mrb[12].mxu0 %v3930_v54  ;;  %6306 = vmatprep.mubr.bf16.mxu1 %v1869_v2  ;;  %v3936_v54 = vsel %vm3450_vm2, %v3933_v43, %v3935_v51  ;;  %v7310_v43 = vld [vmem:[%s7899_s14 + $0xd0] sm:$0xff]  }
 0x131   : > { %6550 = vmatprep.mubr.bf16.mxu0 %v3932_v5  ;;  %6583 = vmatpush3.bf16.msra.mxu0 %v7313_v17  ;;  %v4372_v17 = vshll.u32 %v8372_v56, 16  ;;  %v8389_v2 = vsel %vm4251_vm5, %v8381_v19, %v4357_v20  ;;  %v8392_v5 = vsel %vm4251_vm5, %v4357_v20, %v4366_v1  ;;  %v4264_v20 = vshll.u32 %v8177_v41, 16 }
 0x132   : > { %6584 = vmatprep.subr.bf16.mxu0 %v7315_v38 }
 0x133   : > { %v4374_v44 = vrot.slane %v4372_v17, 3  ;;  %v4744_v17 = vrot.slane %v8356_v39, 3  ;;  %v7318_v39 = vld [vmem:[%s7899_s14 + $0xe8] sm:$0xff]  }
 0x135   : > { %6585 = vmatpush3.bf16.msra.mxu0 %v7315_v38  ;;  %v8395_v16 = vor.u32 %v4374_v44, %v4371_v32  ;;  %v3937_v38 = vrot.slane %v8359_v34, 2  ;;  %v7312_v32 = vld [vmem:[%s7897_s10 + $0xa0] ss:$0 sps:$4 sm:$0x33]   ;;  %v4258_v44 = vrot.slane %v4256_v12, 3 }
 0x136   : > { %6622 = vmatprep.subr.bf16.mxu0 %v8377_v9 }
 0x137   : > { %6307 = vmatmul.mubr.bf16.gmra.mrb[32].mxu1 %v1877_v14  ;;  %v8401_v35 = vsel %vm4251_vm5, %v4366_v1, %v8395_v16  ;;  %v3938_v46 = vsel %vm3450_vm2, %v3935_v51, %v3937_v38  ;;  %v3940_v26 = vsel %vm3450_vm2, %v3937_v38, %v3939_v42  ;;  %v8420_v51 = vld [vmem:[%s7897_s10 + $0x90] sm:$0xff]   ;;  %v4261_v14 = vshrl.u32 %v8177_v41, 16 }
 0x138   : > { %6551 = vmatmul.mubr.bf16.gmra.mrb[16].mxu0 %v3934_v24  ;;  %6326 = vmatprep.mubr.bf16.mxu1 %v8218_v23  ;;  %v7306_v23 = vld [vmem:[%s7899_s14 + $0xc8] sm:$0xff]   ;;  %v4746_v41 = vrot.slane %v8359_v34, 3  ;;  %v4266_v42 = vrot.slane %v4264_v20, 3  ;;  %v4273_v34 = vshll.u32 %v8189_v31, 16  ;;  %v7322_v20 = vld [vmem:[%s7899_s14 + $0xf8] sm:$0xff]  }
 0x139   : > { %6554 = vmatprep.mubr.bf16.mxu0 %v3936_v54  ;;  %v4255_v54 = vrot.slane %v4253_v55, 2  ;;  %v4263_v38 = vrot.slane %v4261_v14, 2 }
 0x13f   : > { %6327 = vmatmul.mubr.bf16.vlgmr.msra.gmra.mrb[0].mxu1 %v8087_v63  ;;  %v8423_v63 = vld [vmem:[%s7897_s10 + $0x98] sm:$0xff]  }
 0x140   : > { %6555 = vmatmul.mubr.bf16.gmra.mrb[20].mxu0 %v3938_v46  ;;  %6363 = vmatpush3.bf16.msra.mxu1 %v8238_v58  ;;  %v3944_v58 = vsel %vm3450_vm2, %v3941_v49, %v3943_v21  ;;  %v3947_v61 = vrot.slane %v8423_v63, 2  ;;  %v8450_v46 = vsel %vm4722_vm6, %v4744_v17, %v4746_v41  ;;  %v4748_v49 = vrot.slane %v8372_v56, 3 }
 0x141   : > { %6330 = vmatprep.mubr.bf16.mxu1 %v8227_v25  ;;  %6558 = vmatprep.mubr.bf16.mxu0 %v3940_v26  ;;  %v3945_v25 = vrot.slane %v8420_v51, 2  ;;  %v3949_v26 = vrot.slane %v7312_v32, 2  ;;  %v4300_v32 = vshll.u32 %v8257_v15, 16 }
 0x142   : > { %6364 = vmatprep.subr.bf16.mxu1 %v7306_v23 }
 0x143   : > { %v3946_v24 = vsel %vm3450_vm2, %v3943_v21, %v3945_v25  ;;  %v3948_v1 = vsel %vm3450_vm2, %v3945_v25, %v3947_v61  ;;  %v4267_v21 = vor.u32 %v4266_v42, %v4263_v38  ;;  %v4275_v25 = vrot.slane %v4273_v34, 3  ;;  %v7319_v42 = vld [vmem:[%s7899_s14 + $0x208] sm:$0xff]  }
 0x144   : > { %6365 = vmatpush3.bf16.msra.mxu1 %v7306_v23  ;;  %v4270_v23 = vshrl.u32 %v8189_v31, 16  ;;  %v4302_v38 = vrot.slane %v4300_v32, 3  ;;  %v4309_v34 = vshll.u32 %v8287_v13, 16  ;;  %v7324_v32 = vld [vmem:[%s7899_s14 + $0x220] sm:$0xff]  }
 0x145   : > { %6366 = vmatprep.subr.bf16.mxu1 %v7310_v43 }
 0x146   : > { %v4272_v31 = vrot.slane %v4270_v23, 2  ;;  %v4306_v23 = vshrl.u32 %v8287_v13, 16 }
 0x147   : > { %6331 = vmatmul.mubr.bf16.gmra.mrb[4].mxu1 %v8231_v50  ;;  %v7316_v50 = vld [vmem:[%s7899_s14 + $0xe0] sm:$0xff]  }
 0x148   : > { %6559 = vmatmul.mubr.bf16.gmra.mrb[24].mxu0 %v3942_v3  ;;  %6334 = vmatprep.mubr.bf16.mxu1 %v8241_v60  ;;  %v4742_v60 = vrot.slane %v8341_v30, 3  ;;  %v4282_v3 = vshll.u32 %v8204_v52, 16 }
 0x149   : > { %6562 = vmatprep.mubr.bf16.mxu0 %v3944_v58  ;;  %6367 = vmatpush3.bf16.msra.mxu1 %v7310_v43  ;;  %v4259_v43 = vor.u32 %v4258_v44, %v4255_v54  ;;  %v7320_v58 = vld [vmem:[%s7899_s14 + $0xf0] sm:$0xff]  }
 0x14a   : > { %6368 = vmatprep.subr.bf16.mxu1 %v7314_v11  ;;  %v8444_v47 = vsel %vm4722_vm6, %v4742_v60, %v4744_v17  ;;  %v4284_v14 = vrot.slane %v4282_v3, 3  ;;  %v4291_v17 = vshll.u32 %v8235_v33, 16  ;;  %v7321_v3 = vld [vmem:[%s7899_s14 + $0x210] sm:$0xff]  }
 0x14b   : > { %v4268_v55 = vsel %vm4251_vm5, %v4259_v43, %v4267_v21 }
 0x14c   : > { %v4293_v54 = vrot.slane %v4291_v17, 3  ;;  %v4327_v17 = vshll.u32 %v8322_v29, 16 }
 0x14d   : > { %6369 = vmatpush3.bf16.msra.mxu1 %v7314_v11  ;;  %v3950_v11 = vsel %vm3450_vm2, %v3947_v61, %v3949_v26  ;;  %v4288_v61 = vshrl.u32 %v8235_v33, 16 }
 0x14e   : > { %6370 = vmatprep.subr.bf16.mxu1 %v7316_v50 }
 0x14f   : > { %6335 = vmatmul.mubr.bf16.gmra.mrb[8].mxu1 %v8252_v45  ;;  %v4279_v45 = vshrl.u32 %v8204_v52, 16 }
 0x150   : > { %6563 = vmatmul.mubr.bf16.gmra.mrb[28].mxu0 %v3946_v24  ;;  %6338 = vmatprep.mubr.bf16.mxu1 %v8266_v53  ;;  %v8462_v53 = vsel %vm4722_vm6, %v4746_v41, %v4748_v49  ;;  %v4290_v41 = vrot.slane %v4288_v61, 2  ;;  %v4324_v61 = vshrl.u32 %v8322_v29, 16 }
 0x151   : > { %6566 = vmatprep.mubr.bf16.mxu0 %v3948_v1  ;;  %6371 = vmatpush3.bf16.msra.mxu1 %v7316_v50  ;;  %v4281_v12 = vrot.slane %v4279_v45, 2  ;;  %v4276_v50 = vor.u32 %v4275_v25, %v4272_v31  ;;  %v4297_v1 = vshrl.u32 %v8257_v15, 16  ;;  %v4318_v45 = vshll.u32 %v8296_v6, 16 }
 0x152   : > { %6372 = vmatprep.subr.bf16.mxu1 %v7318_v39  ;;  %v4294_v26 = vor.u32 %v4293_v54, %v4290_v41  ;;  %v4326_v41 = vrot.slane %v4324_v61, 2  ;;  %v7335_v61 = vld [vmem:[%s7897_s10 + $0x28] sm:$0xff]  }
 0x153   : > { %v4285_v24 = vor.u32 %v4284_v14, %v4281_v12  ;;  %v4299_v44 = vrot.slane %v4297_v1, 2  ;;  %v4320_v12 = vrot.slane %v4318_v45, 3  ;;  %v7323_v14 = vld [vmem:[%s7899_s14 + $0x218] sm:$0xff]   ;;  %v4333_v1 = vshrl.u32 %v8327_v7, 16 }
 0x155   : > { %6373 = vmatpush3.bf16.msra.mxu1 %v7318_v39  ;;  %v8477_v39 = vld [vmem:[%s7899_s14 + $0x100] sm:$0xff]   ;;  %v4303_v43 = vor.u32 %v4302_v38, %v4299_v44  ;;  %v7325_v38 = vld [vmem:[%s7899_s14 + $0x228] sm:$0xff]  }
 0x156   : > { %6374 = vmatprep.subr.bf16.mxu1 %v7320_v58 }
 0x157   : > { %6339 = vmatmul.mubr.bf16.gmra.mrb[12].mxu1 %v8270_v59  ;;  %v4277_v59 = vsel %vm4251_vm5, %v4267_v21, %v4276_v50  ;;  %v4315_v21 = vshrl.u32 %v8296_v6, 16  ;;  %v4304_v25 = vsel %vm4251_vm5, %v4294_v26, %v4303_v43 }
 0x158   : > { %6567 = vmatmul.mubr.bf16.gmra.mrb[32].mxu0 %v3950_v11  ;;  %6342 = vmatprep.mubr.bf16.mxu1 %v8281_v10  ;;  %v4286_v10 = vsel %vm4251_vm5, %v4276_v50, %v4285_v24  ;;  %v4308_v11 = vrot.slane %v4306_v23, 2  ;;  %v7327_v23 = vld [vmem:[%s7899_s14 + $0x230] sm:$0xff]  }
 0x159   : > { %6586 = vmatprep.mubr.bf16.mxu0 %v4268_v55  ;;  %6375 = vmatpush3.bf16.msra.mxu1 %v7320_v58  ;;  %v4295_v58 = vsel %vm4251_vm5, %v4285_v24, %v4294_v26  ;;  %v4317_v55 = vrot.slane %v4315_v21, 2  ;;  %v7328_v21 = vld [vmem:[%s7899_s14 + $0x238] sm:$0xff]  }
 0x15a   : > { %6376 = vmatprep.subr.bf16.mxu1 %v7322_v20 }
 0x15b   : > { %v4321_v24 = vor.u32 %v4320_v12, %v4317_v55 }
 0x15d   : > { %6377 = vmatpush3.bf16.msra.mxu1 %v7322_v20 }
 0x15e   : > { %6718 = vmatprep.subr.bf16.mxu1 %v8477_v39 }
 0x15f   : > { %6343 = vmatmul.mubr.bf16.gmra.mrb[16].mxu1 %v8300_v57  ;;  %v8489_v57 = vld [vmem:[%s7897_s10 + $0xa0] ss:$0 sps:$4 sm:$0x77]  }
 0x160   : > { %6587 = vmatmul.mubr.bf16.vlgmr.msra.gmra.mrb[0].mxu0 %v4277_v59  ;;  %6346 = vmatprep.mubr.bf16.mxu1 %v8304_v27  ;;  %v4756_v27 = vrot.slane %v8423_v63, 3  ;;  %v4758_v31 = vrot.slane %v8489_v57, 3 }
 0x161   : > { %6590 = vmatprep.mubr.bf16.mxu0 %v4286_v10  ;;  %6623 = vmatpush3.bf16.msra.mxu0 %v8377_v9  ;;  %v4311_v9 = vrot.slane %v4309_v34, 3  ;;  %v4335_v10 = vrot.slane %v4333_v1, 2  ;;  %v7336_v1 = vld [vmem:[%s7897_s10 + $0x30] sm:$0xff]  }
 0x162   : > { %6624 = vmatprep.subr.bf16.mxu0 %v7319_v42  ;;  %v8500_v20 = vsel %vm4722_vm6, %v4756_v27, %v4758_v31 }
 0x163   : > { %v4312_v50 = vor.u32 %v4311_v9, %v4308_v11  ;;  %v4381_v11 = vshll.u32 %v8405_v0, 16  ;;  %v7334_v9 = vld [vmem:[%s7897_s10 + $0x20] sm:$0xff]  }
 0x164   : > { %v2647_v31 = vrot.slane %v7334_v9, 1 }
 0x165   : > { %6625 = vmatpush3.bf16.msra.mxu0 %v7319_v42  ;;  %v4313_v59 = vsel %vm4251_vm5, %v4303_v43, %v4312_v50  ;;  %v4322_v54 = vsel %vm4251_vm5, %v4312_v50, %v4321_v24  ;;  %v4383_v12 = vrot.slane %v4381_v11, 3 }
 0x166   : > { %6626 = vmatprep.subr.bf16.mxu0 %v7321_v3 }
 0x167   : > { %6347 = vmatmul.mubr.bf16.gmra.mrb[20].mxu1 %v8313_v37  ;;  %v4336_v37 = vshll.u32 %v8327_v7, 16 }
 0x168   : > { %6591 = vmatmul.mubr.bf16.gmra.mrb[4].mxu0 %v4295_v58  ;;  %6350 = vmatprep.mubr.bf16.mxu1 %v8316_v22  ;;  %v4329_v22 = vrot.slane %v4327_v17, 3  ;;  %v2649_v17 = vrot.slane %v7335_v61, 1 }
 0x169   : > { %6594 = vmatprep.mubr.bf16.mxu0 %v4304_v25  ;;  %6627 = vmatpush3.bf16.msra.mxu0 %v7321_v3  ;;  %v4338_v44 = vrot.slane %v4336_v37, 3  ;;  %v4390_v25 = vshll.u32 %v8410_v48, 16  ;;  %v2651_v37 = vrot.slane %v7336_v1, 1 }
 0x16a   : > { %6628 = vmatprep.subr.bf16.mxu0 %v7323_v14  ;;  %v4330_v42 = vor.u32 %v4329_v22, %v4326_v41  ;;  %v7337_v41 = vld [vmem:[%s7899_s14 + $0x108] sm:$0xff]  }
 0x16b   : > { %v4339_v26 = vor.u32 %v4338_v44, %v4335_v10  ;;  %v4392_v50 = vrot.slane %v4390_v25, 3  ;;  %v2652_v10 = vsel %vm2178_vm3, %v2649_v17, %v2651_v37 }
 0x16c   : > { %v4331_v34 = vsel %vm4251_vm5, %v4321_v24, %v4330_v42 }
 0x16d   : > { %6629 = vmatpush3.bf16.msra.mxu0 %v7323_v14  ;;  %v4340_v43 = vsel %vm4251_vm5, %v4330_v42, %v4339_v26  ;;  %v4349_v3 = vsel %vm4251_vm5, %v4339_v26, %v8381_v19  ;;  %v4387_v19 = vshrl.u32 %v8410_v48, 16  ;;  %v7338_v42 = vld [vmem:[%s7899_s14 + $0x110] sm:$0xff]  }
 0x16e   : > { %6630 = vmatprep.subr.bf16.mxu0 %v7324_v32 }
 0x16f   : > { %6351 = vmatmul.mubr.bf16.gmra.mrb[24].mxu1 %v8333_v62  ;;  %v2642_v62 = vrot.slane %v7959_v4, 1  ;;  %v4378_v4 = vshrl.u32 %v8405_v0, 16 }
 0x170   : > { %6595 = vmatmul.mubr.bf16.gmra.mrb[8].mxu0 %v4313_v59  ;;  %6354 = vmatprep.mubr.bf16.mxu1 %v8337_v8  ;;  %v7332_v8 = vld [vmem:[%s7897_s10 + $0x10] sm:$0xff]   ;;  %v4399_v59 = vshll.u32 %v8420_v51, 16 }
 0x171   : > { %6598 = vmatprep.mubr.bf16.mxu0 %v4322_v54  ;;  %6631 = vmatpush3.bf16.msra.mxu0 %v7324_v32  ;;  %v2643_v45 = vrot.slane %v7332_v8, 1  ;;  %v4380_v55 = vrot.slane %v4378_v4, 2  ;;  %v4396_v32 = vshrl.u32 %v8420_v51, 16  ;;  %v2650_v54 = vsel %vm2178_vm3, %v2647_v31, %v2649_v17 }
 0x172   : > { %6632 = vmatprep.subr.bf16.mxu0 %v7325_v38 }
 0x173   : > { %v2644_v58 = vsel %vm2178_vm3, %v2642_v62, %v2643_v45  ;;  %v4384_v24 = vor.u32 %v4383_v12, %v4380_v55  ;;  %v4398_v44 = vrot.slane %v4396_v32, 2  ;;  %v7340_v62 = vld [vmem:[%s7897_s10 + $0x40] sm:$0xff]   ;;  %v7343_v55 = vld [vmem:[%s7899_s14 + $0x120] sm:$0xff]  }
 0x174   : > { %v2655_v8 = vrot.slane %v7340_v62, 1  ;;  %v7344_v12 = vld [vmem:[%s7897_s10 + $0x48] sm:$0xff]  }
 0x175   : > { %6633 = vmatpush3.bf16.msra.mxu0 %v7325_v38  ;;  %v4401_v38 = vrot.slane %v4399_v59, 3 }
 0x176   : > { %6634 = vmatprep.subr.bf16.mxu0 %v7327_v23 }
 0x177   : > { %6355 = vmatmul.mubr.bf16.gmra.mrb[28].mxu1 %v8346_v18  ;;  %v7333_v18 = vld [vmem:[%s7897_s10 + $0x18] sm:$0xff]  }
 0x178   : > { %6599 = vmatmul.mubr.bf16.gmra.mrb[12].mxu0 %v4331_v34  ;;  %6358 = vmatprep.mubr.bf16.mxu1 %v8349_v36  ;;  %v2645_v36 = vrot.slane %v7333_v18, 1  ;;  %v7341_v18 = vld [vmem:[%s7899_s14 + $0x118] sm:$0xff]  }
 0x179   : > { %6602 = vmatprep.mubr.bf16.mxu0 %v4340_v43  ;;  %6635 = vmatpush3.bf16.msra.mxu0 %v7327_v23  ;;  %v7339_v43 = vld [vmem:[%s7897_s10 + $0x38] sm:$0xff]  }
 0x17a   : > { %6636 = vmatprep.subr.bf16.mxu0 %v7328_v21  ;;  %v2648_v14 = vsel %vm2178_vm3, %v2645_v36, %v2647_v31 }
 0x17d   : > { %6637 = vmatpush3.bf16.msra.mxu0 %v7328_v21  ;;  %v2653_v21 = vrot.slane %v7339_v43, 1 }
 0x17f   : > { %6359 = vmatmul.mubr.bf16.gmra.mrb[32].mxu1 %v8365_v40  ;;  %v2646_v40 = vsel %vm2178_vm3, %v2643_v45, %v2645_v36  ;;  %v4414_v45 = vshrl.u32 %v8489_v57, 16  ;;  %v4701_v36 = vld [vmem:[%s7897_s10 + $0x10] sm:$0x8]  ;;  %v2654_v4 = vsel %vm2178_vm3, %v2651_v37, %v2653_v21  ;;  %v2656_v9 = vsel %vm2178_vm3, %v2653_v21, %v2655_v8  ;;  %v7347_v37 = vld [vmem:[%s7899_s14 + $0x128] sm:$0xff]  }
 0x180   : > { %6603 = vmatmul.mubr.bf16.gmra.mrb[16].mxu0 %v4349_v3  ;;  %6378 = vmatprep.mubr.bf16.mxu1 %v2644_v58  ;;  %v4417_v3 = vshll.u32 %v8489_v57, 16 }
 0x181   : > { %6606 = vmatprep.mubr.bf16.mxu0 %v8389_v2  ;;  %v4389_v2 = vrot.slane %v4387_v19, 2  ;;  %v4416_v31 = vrot.slane %v4414_v45, 2 }
 0x182   : > { %v4419_v19 = vrot.slane %v4417_v3, 3  ;;  %v4732_v3 = vrot.slane %v8257_v15, 3  ;;  %v4734_v15 = vrot.slane %v8287_v13, 3 }
 0x183   : > { %v4393_v22 = vor.u32 %v4392_v50, %v4389_v2  ;;  %v8564_v50 = vld [vmem:[%s7897_s10 + $0x50] sm:$0xff]  }
 0x184   : > { %v4420_v2 = vor.u32 %v4419_v19, %v4416_v31  ;;  %v2659_v61 = vrot.slane %v8564_v50, 1  ;;  %v4736_v19 = vrot.slane %v8296_v6, 3  ;;  %v8623_v6 = vld [vmem:[%s7897_s10 + $0x90] sm:$0xff]  }
 0x185   : > { %v4394_v26 = vsel %vm4251_vm5, %v4384_v24, %v4393_v22 }
 0x187   : > { %6379 = vmatmul.mubr.bf16.vlgmr.msra.gmra.mrb[0].mxu1 %v2646_v40  ;;  %v7342_v40 = vld [vmem:[%s7897_s10 + $0x14] sm:$0xf] }
 0x188   : > { %6607 = vmatmul.mubr.bf16.gmra.mrb[20].mxu0 %v8392_v5  ;;  %6726 = vmatpush3.bf16.msra.mxu1 %v8477_v39  ;;  %v4405_v5 = vshrl.u32 %v8423_v63, 16  ;;  %v4408_v39 = vshll.u32 %v8423_v63, 16  ;;  %v5912_v57 = vcombine.low %v4701_v36, %v7342_v40  ;;  %v4735_v40 = vsel %vm4722_vm6, %v4732_v3, %v4734_v15 }
 0x189   : > { %6382 = vmatprep.mubr.bf16.mxu1 %v2648_v14  ;;  %6610 = vmatprep.mubr.bf16.mxu0 %v8401_v35  ;;  %v4385_v35 = vsel %vm4251_vm5, %v8395_v16, %v4384_v24  ;;  %v4402_v16 = vor.u32 %v4401_v38, %v4398_v44  ;;  %v2657_v14 = vrot.slane %v7344_v12, 1  ;;  %v7346_v24 = vld [vmem:[%s7897_s10 + $0x18] sm:$0xff]   ;;  %v8580_v44 = vld [vmem:[%s7897_s10 + $0x60] sm:$0xff]   ;;  %v8618_v12 = vld [vmem:[%s7897_s10 + $0x88] sm:$0xff]  }
 0x18a   : > { %6719 = vmatprep.subr.bf16.mxu1 %v7337_v41  ;;  %v4407_v23 = vrot.slane %v4405_v5, 2  ;;  %v4410_v34 = vrot.slane %v4408_v39, 3  ;;  %v4723_v17 = vrot.slane %v5912_v57, 3  ;;  %v4724_v1 = vrot.slane %v7346_v24, 3  ;;  %v7348_v5 = vld [vmem:[%s7899_s14 + $0x130] sm:$0xff]  }
 0x18b   : > { %v4403_v11 = vsel %vm4251_vm5, %v4393_v22, %v4402_v16  ;;  %v2658_v32 = vsel %vm2178_vm3, %v2655_v8, %v2657_v14  ;;  %v8575_v39 = vld [vmem:[%s7897_s10 + $0x58] sm:$0xff]   ;;  %v2663_v38 = vrot.slane %v8580_v44, 1  ;;  %v8595_v8 = vld [vmem:[%s7897_s10 + $0x70] sm:$0xff]   ;;  %v2673_v13 = vrot.slane %v8618_v12, 1 }
 0x18c   : > { %6727 = vmatpush3.bf16.msra.mxu1 %v7337_v41  ;;  %v4411_v58 = vor.u32 %v4410_v34, %v4407_v23  ;;  %v2660_v41 = vsel %vm2178_vm3, %v2657_v14, %v2659_v61  ;;  %v4725_v22 = vsel %vm4722_vm6, %v4723_v17, %v4724_v1  ;;  %v2667_v45 = vrot.slane %v8595_v8, 1 }
 0x18d   : > { %6720 = vmatprep.subr.bf16.mxu1 %v7338_v42  ;;  %v4738_v14 = vrot.slane %v8322_v29, 3  ;;  %v3064_v17 = vshll.u32 %v8564_v50, 16  ;;  %v4740_v24 = vrot.slane %v8327_v7, 3  ;;  %v3097_v30 = vshrl.u32 %v8595_v8, 16 }
 0x18e   : > { %v4412_v25 = vsel %vm4251_vm5, %v4402_v16, %v4411_v58  ;;  %v4421_v59 = vsel %vm4251_vm5, %v4411_v58, %v4420_v2  ;;  %v8590_v16 = vld [vmem:[%s7897_s10 + $0x68] sm:$0xff]   ;;  %v2675_v2 = vrot.slane %v8623_v6, 1 }
 0x18f   : > { %6383 = vmatmul.mubr.bf16.gmra.mrb[4].mxu1 %v2650_v54  ;;  %v2661_v54 = vrot.slane %v8575_v39, 1  ;;  %v2665_v62 = vrot.slane %v8590_v16, 1  ;;  %v4741_v29 = vsel %vm4722_vm6, %v4738_v14, %v4740_v24 }
 0x190   : > { %6611 = vmatmul.mubr.bf16.gmra.mrb[24].mxu0 %v4385_v35  ;;  %6386 = vmatprep.mubr.bf16.mxu1 %v2652_v10  ;;  %v7350_v35 = vld [vmem:[%s7897_s10 + $0x20] sm:$0xff]  }
 0x191   : > { %6614 = vmatprep.mubr.bf16.mxu0 %v4394_v26  ;;  %6728 = vmatpush3.bf16.msra.mxu1 %v7338_v42  ;;  %v4726_v10 = vrot.slane %v7350_v35, 3  ;;  %v4728_v42 = vrot.slane %v8204_v52, 3  ;;  %v7352_v26 = vld [vmem:[%s7899_s14 + $0x138] sm:$0xff]   ;;  %v2662_v23 = vsel %vm2178_vm3, %v2659_v61, %v2661_v54  ;;  %v2664_v43 = vsel %vm2178_vm3, %v2661_v54, %v2663_v38 }
 0x192   : > { %6721 = vmatprep.subr.bf16.mxu1 %v7341_v18  ;;  %v4730_v52 = vrot.slane %v8235_v33, 3  ;;  %v2666_v58 = vsel %vm2178_vm3, %v2663_v38, %v2665_v62  ;;  %v2668_v36 = vsel %vm2178_vm3, %v2665_v62, %v2667_v45  ;;  %v3061_v61 = vshrl.u32 %v8564_v50, 16 }
 0x193   : > { %v4727_v34 = vsel %vm4722_vm6, %v4724_v1, %v4726_v10  ;;  %v4729_v21 = vsel %vm4722_vm6, %v4726_v10, %v4728_v42  ;;  %v3070_v54 = vshrl.u32 %v8575_v39, 16  ;;  %v3073_v50 = vshll.u32 %v8575_v39, 16 }
 0x194   : > { %v3079_v35 = vshrl.u32 %v8580_v44, 16  ;;  %v3082_v10 = vshll.u32 %v8580_v44, 16  ;;  %v3088_v62 = vshrl.u32 %v8590_v16, 16  ;;  %v3091_v44 = vshll.u32 %v8590_v16, 16 }
 0x195   : > { %6729 = vmatpush3.bf16.msra.mxu1 %v7341_v18  ;;  %v4731_v18 = vsel %vm4722_vm6, %v4728_v42, %v4730_v52  ;;  %v3072_v42 = vrot.slane %v3070_v54, 1 }
 0x196   : > { %6722 = vmatprep.subr.bf16.mxu1 %v7343_v55 }
 0x197   : > { %6387 = vmatmul.mubr.bf16.gmra.mrb[8].mxu1 %v2654_v4  ;;  %v4733_v4 = vsel %vm4722_vm6, %v4730_v52, %v4732_v3  ;;  %v3093_v3 = vrot.slane %v3091_v44, 2 }
 0x198   : > { %6615 = vmatmul.mubr.bf16.gmra.mrb[28].mxu0 %v4403_v11  ;;  %6390 = vmatprep.mubr.bf16.mxu1 %v2656_v9  ;;  %v8604_v11 = vld [vmem:[%s7897_s10 + $0x78] sm:$0xff]   ;;  %v8609_v9 = vld [vmem:[%s7897_s10 + $0x80] sm:$0xff]  }
 0x199   : > { %6618 = vmatprep.mubr.bf16.mxu0 %v4412_v25  ;;  %6730 = vmatpush3.bf16.msra.mxu1 %v7343_v55  ;;  %v2669_v33 = vrot.slane %v8604_v11, 1  ;;  %v2671_v31 = vrot.slane %v8609_v9, 1  ;;  %v4737_v55 = vsel %vm4722_vm6, %v4734_v15, %v4736_v19  ;;  %v3115_v15 = vshrl.u32 %v8609_v9, 16 }
 0x19a   : > { %6723 = vmatprep.subr.bf16.mxu1 %v7347_v37 }
 0x19b   : > { %v2670_v25 = vsel %vm2178_vm3, %v2667_v45, %v2669_v33  ;;  %v2672_v57 = vsel %vm2178_vm3, %v2669_v33, %v2671_v31  ;;  %v2674_v1 = vsel %vm2178_vm3, %v2671_v31, %v2673_v13  ;;  %v3118_v31 = vshll.u32 %v8609_v9, 16 }
 0x19d   : > { %6731 = vmatpush3.bf16.msra.mxu1 %v7347_v37  ;;  %v7330_v37 = vld [vmem:[%s7897_s10 + $0x98] ss:$0 sps:$4 sm:$0x11]  }
 0x19e   : > { %6724 = vmatprep.subr.bf16.mxu1 %v7348_v5 }
 0x19f   : > { %6391 = vmatmul.mubr.bf16.gmra.mrb[12].mxu1 %v2658_v32  ;;  %v4739_v32 = vsel %vm4722_vm6, %v4736_v19, %v4738_v14  ;;  %v4752_v19 = vrot.slane %v8410_v48, 3  ;;  %v3124_v48 = vshrl.u32 %v8618_v12, 16  ;;  %v4754_v14 = vrot.slane %v8420_v51, 3 }
 0x1a0   : > { %6619 = vmatmul.mubr.bf16.gmra.mrb[32].mxu0 %v4421_v59  ;;  %6394 = vmatprep.mubr.bf16.mxu1 %v2660_v41  ;;  %v2676_v59 = vsel %vm2178_vm3, %v2673_v13, %v2675_v2  ;;  %v3063_v41 = vrot.slane %v3061_v61, 1  ;;  %v3127_v13 = vshll.u32 %v8618_v12, 16 }
 0x1a1   : > { %6638 = vmatprep.mubr.bf16.mxu0 %v4725_v22  ;;  %6732 = vmatpush3.bf16.msra.mxu1 %v7348_v5  ;;  %v3066_v22 = vrot.slane %v3064_v17, 2  ;;  %v2677_v5 = vrot.slane %v7330_v37, 1  ;;  %v3126_v17 = vrot.slane %v3124_v48, 1  ;;  %v4757_v51 = vsel %vm4722_vm6, %v4754_v14, %v4756_v27 }
 0x1a2   : > { %6725 = vmatprep.subr.bf16.mxu1 %v7352_v26 }
 0x1a3   : > { %v3067_v7 = vor.u32 %v3066_v22, %v3063_v41  ;;  %v2678_v38 = vsel %vm2178_vm3, %v2675_v2, %v2677_v5  ;;  %v3136_v2 = vshll.u32 %v8623_v6, 16  ;;  %v7359_v41 = vld [vmem:[%s7897_s10 + $0x98] ss:$0 sps:$4 sm:$0x33]  }
 0x1a4   : > { %v3145_v22 = vshll.u32 %v7359_v41, 16 }
 0x1a5   : > { %6733 = vmatpush3.bf16.msra.mxu1 %v7352_v26  ;;  %v3075_v26 = vrot.slane %v3073_v50, 2 }
 0x1a6   : > { %v3147_v50 = vrot.slane %v3145_v22, 2 }
 0x1a7   : > { %6395 = vmatmul.mubr.bf16.gmra.mrb[16].mxu1 %v2662_v23  ;;  %v4743_v23 = vsel %vm4722_vm6, %v4740_v24, %v4742_v60  ;;  %v3076_v39 = vor.u32 %v3075_v26, %v3072_v42  ;;  %v3100_v60 = vshll.u32 %v8595_v8, 16  ;;  %v4750_v8 = vrot.slane %v8405_v0, 3 }
 0x1a8   : > { %6639 = vmatmul.mubr.bf16.vlgmr.msra.gmra.mrb[0].mxu0 %v4727_v34  ;;  %6398 = vmatprep.mubr.bf16.mxu1 %v2664_v43  ;;  %v3068_v34 = vsel %vm2979_vm1, %v8033_v28, %v3067_v7  ;;  %v3081_v43 = vrot.slane %v3079_v35, 1  ;;  %v3090_v28 = vrot.slane %v3088_v62, 1  ;;  %v3129_v24 = vrot.slane %v3127_v13, 2 }
 0x1a9   : > { %6642 = vmatprep.mubr.bf16.mxu0 %v4729_v21  ;;  %v3084_v21 = vrot.slane %v3082_v10, 2  ;;  %v3077_v45 = vsel %vm2979_vm1, %v3067_v7, %v3076_v39  ;;  %v4753_v0 = vsel %vm4722_vm6, %v4750_v8, %v4752_v19 }
 0x1aa   : > { %v3094_v16 = vor.u32 %v3093_v3, %v3090_v28  ;;  %v3130_v12 = vor.u32 %v3129_v24, %v3126_v17  ;;  %v1125_v28 = vld [vmem:[#allocation2] sm:$0xff]  ;;  %v1128_v3 = vld [vmem:[#allocation2 + $0x18] sm:$0xff]  ;;  %v1135_v24 = vld [vmem:[#allocation2 + $0x50] sm:$0xff] }
 0x1ab   : > { %v3085_v52 = vor.u32 %v3084_v21, %v3081_v43 }
 0x1af   : > { %6399 = vmatmul.mubr.bf16.gmra.mrb[20].mxu1 %v2666_v58  ;;  %v3086_v58 = vsel %vm2979_vm1, %v3076_v39, %v3085_v52 }
 0x1b0   : > { %6643 = vmatmul.mubr.bf16.gmra.mrb[4].mxu0 %v4731_v18  ;;  %6402 = vmatprep.mubr.bf16.mxu1 %v2668_v36  ;;  %v3099_v18 = vrot.slane %v3097_v30, 1  ;;  %v3102_v36 = vrot.slane %v3100_v60, 2 }
 0x1b1   : > { %6646 = vmatprep.mubr.bf16.mxu0 %v4733_v4  ;;  %v3109_v4 = vshll.u32 %v8604_v11, 16 }
 0x1b2   : > { %v3103_v33 = vor.u32 %v3102_v36, %v3099_v18  ;;  %v1126_v18 = vld [vmem:[#allocation2 + $0x8] sm:$0xff] }
 0x1b7   : > { %6403 = vmatmul.mubr.bf16.gmra.mrb[24].mxu1 %v2670_v25  ;;  %v3095_v25 = vsel %vm2979_vm1, %v3085_v52, %v3094_v16 }
 0x1b8   : > { %6647 = vmatmul.mubr.bf16.gmra.mrb[8].mxu0 %v4735_v40  ;;  %6406 = vmatprep.mubr.bf16.mxu1 %v2672_v57  ;;  %v3111_v40 = vrot.slane %v3109_v4, 2  ;;  %v4751_v57 = vsel %vm4722_vm6, %v4748_v49, %v4750_v8  ;;  %v3133_v49 = vshrl.u32 %v8623_v6, 16  ;;  %v3142_v6 = vshrl.u32 %v7359_v41, 16 }
 0x1b9   : > { %6650 = vmatprep.mubr.bf16.mxu0 %v4737_v55  ;;  %v3120_v55 = vrot.slane %v3118_v31, 2 }
 0x1ba   : > { %v3144_v54 = vrot.slane %v3142_v6, 1 }
 0x1bc   : > { %v3148_v63 = vor.u32 %v3147_v50, %v3144_v54 }
 0x1bf   : > { %6407 = vmatmul.mubr.bf16.gmra.mrb[28].mxu1 %v2674_v1  ;;  %v4755_v1 = vsel %vm4722_vm6, %v4752_v19, %v4754_v14 }
 0x1c0   : > { %6651 = vmatmul.mubr.bf16.gmra.mrb[12].mxu0 %v4739_v32  ;;  %6410 = vmatprep.mubr.bf16.mxu1 %v2676_v59  ;;  %v3135_v32 = vrot.slane %v3133_v49, 1  ;;  %v3138_v59 = vrot.slane %v3136_v2, 2 }
 0x1c1   : > { %6654 = vmatprep.mubr.bf16.mxu0 %v4741_v29 }
 0x1c2   : > { %v3139_v29 = vor.u32 %v3138_v59, %v3135_v32  ;;  %v1136_v32 = vld [vmem:[#allocation2 + $0x58] sm:$0xff] }
 0x1c4   : > { %v3140_v7 = vsel %vm2979_vm1, %v3130_v12, %v3139_v29  ;;  %v3149_v27 = vsel %vm2979_vm1, %v3139_v29, %v3148_v63 }
 0x1c7   : > { %6411 = vmatmul.mubr.bf16.gmra.mrb[32].mxu1 %v2678_v38 }
 0x1c8   : > { %6655 = vmatmul.mubr.bf16.gmra.mrb[16].mxu0 %v4743_v23  ;;  %6446 = vmatprep.mubr.bf16.mxu1 %v3068_v34 }
 0x1c9   : > { %6658 = vmatprep.mubr.bf16.mxu0 %v8444_v47  ;;  %v3106_v47 = vshrl.u32 %v8604_v11, 16  ;;  %v3104_v11 = vsel %vm2979_vm1, %v3094_v16, %v3103_v33 }
 0x1cf   : > { %6447 = vmatmul.mubr.bf16.vlgmr.msra.gmra.mrb[16].mxu1 %v3077_v45  ;;  %v1127_v45 = vld [vmem:[#allocation2 + $0x10] sm:$0xff] }
 0x1d0   : > { %6659 = vmatmul.mubr.bf16.gmra.mrb[20].mxu0 %v8450_v46  ;;  %6450 = vmatprep.mubr.bf16.mxu1 %v3086_v58  ;;  %v3108_v46 = vrot.slane %v3106_v47, 1 }
 0x1d1   : > { %6662 = vmatprep.mubr.bf16.mxu0 %v8462_v53  ;;  %v3117_v53 = vrot.slane %v3115_v15, 1 }
 0x1d2   : > { %v3112_v9 = vor.u32 %v3111_v40, %v3108_v46  ;;  %v1131_v46 = vld [vmem:[#allocation2 + $0x30] sm:$0xff] }
 0x1d3   : > { %v3121_v56 = vor.u32 %v3120_v55, %v3117_v53  ;;  %v1130_v55 = vld [vmem:[#allocation2 + $0x28] sm:$0xff] }
 0x1d4   : > { %v3113_v61 = vsel %vm2979_vm1, %v3103_v33, %v3112_v9 }
 0x1d5   : > { %v3122_v37 = vsel %vm2979_vm1, %v3112_v9, %v3121_v56  ;;  %v3131_v5 = vsel %vm2979_vm1, %v3121_v56, %v3130_v12 }
 0x1d7   : > { %6451 = vmatmul.mubr.bf16.gmra.mrb[20].mxu1 %v3095_v25 }
 0x1d8   : > { %6663 = vmatmul.mubr.bf16.gmra.mrb[24].mxu0 %v4751_v57  ;;  %6454 = vmatprep.mubr.bf16.mxu1 %v3104_v11  ;;  %v1129_v57 = vld [vmem:[#allocation2 + $0x20] sm:$0xff]  ;;  %v1132_v11 = vld [vmem:[#allocation2 + $0x38] sm:$0xff] }
 0x1d9   : > { %6666 = vmatprep.mubr.bf16.mxu0 %v4753_v0 }
 0x1df   : > { %6455 = vmatmul.mubr.bf16.gmra.mrb[24].mxu1 %v3113_v61 }
 0x1e0   : > { %6667 = vmatmul.mubr.bf16.gmra.mrb[28].mxu0 %v4755_v1  ;;  %6458 = vmatprep.mubr.bf16.mxu1 %v3122_v37  ;;  %v1133_v37 = vld [vmem:[#allocation2 + $0x40] sm:$0xff] }
 0x1e1   : > { %6670 = vmatprep.mubr.bf16.mxu0 %v4757_v51  ;;  %v1134_v51 = vld [vmem:[#allocation2 + $0x48] sm:$0xff] }
 0x1e7   : > { %6459 = vmatmul.mubr.bf16.gmra.mrb[28].mxu1 %v3131_v5 }
 0x1e8   : > { %6671 = vmatmul.mubr.bf16.gmra.mrb[32].mxu0 %v8500_v20  ;;  %6462 = vmatprep.mubr.bf16.mxu1 %v3140_v7 }
 0x1ef   : > { %6463 = vmatmul.mubr.bf16.gmra.mrb[32].mxu1 %v3149_v27  ;;  %v1139_v27 = vld [vmem:[#allocation2 + $0x70] sm:$0xff] }
 0x25a   : > { %v6380_v35 = vpop.f32.mrb[0].mxu1 }
 0x25b   : > { %v2779_v10 = vpop.f32.mrb[1].mxu1  ;;  %v6734_v58 = vadd.f32 %v6380_v35, %v1127_v45 }
 0x25c   : > { %v6381_v38 = vpop.f32.mrb[2].mxu1  ;;  %v6736_v36 = vadd.f32 %v2779_v10, %v1125_v28  ;;  %v1137_v10 = vld [vmem:[#allocation2 + $0x60] sm:$0xff] }
 0x25d   : > { %v2782_v42 = vpop.f32.mrb[3].mxu1  ;;  %v6738_v47 = vadd.f32 %v6381_v38, %v1128_v3  ;;  %v1140_v38 = vld [vmem:[#allocation2 + $0x78] sm:$0xff] }
 0x25e   : > { %v6740_v33 = vadd.f32 %v2782_v42, %v1126_v18  ;;  %v1143_v18 = vld [vmem:[#allocation2 + $0x90] sm:$0xff] }
 0x262   : > { %v6384_v26 = vpop.f32.mrb[4].mxu1 }
 0x263   : > { %v2795_v23 = vpop.f32.mrb[5].mxu1  ;;  %v6742_v53 = vadd.f32 %v6384_v26, %v1131_v46  ;;  %v1138_v26 = vld [vmem:[#allocation2 + $0x68] sm:$0xff] }
 0x264   : > { %v6385_v34 = vpop.f32.mrb[6].mxu1  ;;  %v6744_v0 = vadd.f32 %v2795_v23, %v1129_v57 }
 0x265   : > { %v2798_v43 = vpop.f32.mrb[7].mxu1  ;;  %v6746_v48 = vadd.f32 %v6385_v34, %v1132_v11 }
 0x266   : > { %v6748_v56 = vadd.f32 %v2798_v43, %v1130_v55 }
 0x26a   : > { %v6388_v21 = vpop.f32.mrb[8].mxu1 }
 0x26b   : > { %v2811_v39 = vpop.f32.mrb[9].mxu1  ;;  %v6750_v59 = vadd.f32 %v6388_v21, %v1135_v24  ;;  %v1147_v24 = vld [vmem:[#allocation2 + $0xb0] sm:$0xff] }
 0x26c   : > { %v6389_v62 = vpop.f32.mrb[10].mxu1  ;;  %v6752_v12 = vadd.f32 %v2811_v39, %v1133_v37  ;;  %v1145_v37 = vld [vmem:[#allocation2 + $0xa0] sm:$0xff] }
 0x26d   : > { %v2814_v44 = vpop.f32.mrb[11].mxu1  ;;  %v6754_v6 = vadd.f32 %v6389_v62, %v1136_v32 }
 0x26e   : > { %v6756_v5 = vadd.f32 %v2814_v44, %v1134_v51 }
 0x272   : > { %v8681_v52 = vpop.f32.mrb[12].mxu1 }
 0x273   : > { %v8683_v20 = vpop.f32.mrb[13].mxu1  ;;  %v6758_v42 = vadd.f32 %v8681_v52, %v1139_v27 }
 0x274   : > { %v8685_v30 = vpop.f32.mrb[14].mxu1  ;;  %v6760_v23 = vadd.f32 %v8683_v20, %v1137_v10 }
 0x275   : > { %v8687_v60 = vpop.f32.mrb[15].mxu1  ;;  %v6762_v43 = vadd.f32 %v8685_v30, %v1140_v38 }
 0x276   : > { %v6764_v62 = vadd.f32 %v8687_v60, %v1138_v26 }
 0x27b   : > { %v6640_v16 = vpop.f32.mrb[0].mxu0 }
 0x27c   : > { %v8689_v4 = vadd.f32 %v6734_v58, %v6640_v16  ;;  %v4860_v8 = vpop.f32.mrb[1].mxu0 }
 0x27d   : > { %v8691_v15 = vadd.f32 %v6736_v36, %v4860_v8  ;;  %v6641_v31 = vpop.f32.mrb[2].mxu0  ;;  %v1141_v36 = vld [vmem:[#allocation2 + $0x80] sm:$0xff] }
 0x27e   : > { %5042 = vst.msk [vmem:[#allocation2 + $0x10] sm:$0xff] %vm5039_vm7, %v8689_v4  ;;  %v8695_v19 = vadd.f32 %v6738_v47, %v6641_v31  ;;  %v4863_v25 = vpop.f32.mrb[3].mxu0  ;;  %v1144_v47 = vld [vmem:[#allocation2 + $0x98] sm:$0xff] }
 0x27f   : > { %5040 = vst.msk [vmem:[#allocation2] sm:$0xff] %vm5039_vm7, %v8691_v15  ;;  %v8699_v40 = vadd.f32 %v6740_v33, %v4863_v25  ;;  %v1142_v25 = vld [vmem:[#allocation2 + $0x88] sm:$0xff] }
 0x280   : > { %5043 = vst.msk [vmem:[#allocation2 + $0x18] sm:$0xff] %vm5039_vm7, %v8695_v19 }
 0x281   : > { %5041 = vst.msk [vmem:[#allocation2 + $0x8] sm:$0xff] %vm5039_vm7, %v8699_v40 }
 0x283   : > { %v6644_v9 = vpop.f32.mrb[4].mxu0 }
 0x284   : > { %v8705_v13 = vadd.f32 %v6742_v53, %v6644_v9  ;;  %v4876_v14 = vpop.f32.mrb[5].mxu0 }
 0x285   : > { %v8707_v49 = vadd.f32 %v6744_v0, %v4876_v14  ;;  %v6645_v2 = vpop.f32.mrb[6].mxu0 }
 0x286   : > { %5046 = vst.msk [vmem:[#allocation2 + $0x30] sm:$0xff] %vm5039_vm7, %v8705_v13  ;;  %v8711_v61 = vadd.f32 %v6746_v48, %v6645_v2  ;;  %v4879_v17 = vpop.f32.mrb[7].mxu0 }
 0x287   : > { %5044 = vst.msk [vmem:[#allocation2 + $0x20] sm:$0xff] %vm5039_vm7, %v8707_v49  ;;  %v8715_v1 = vadd.f32 %v6748_v56, %v4879_v17 }
 0x288   : > { %5047 = vst.msk [vmem:[#allocation2 + $0x38] sm:$0xff] %vm5039_vm7, %v8711_v61 }
 0x289   : > { %5045 = vst.msk [vmem:[#allocation2 + $0x28] sm:$0xff] %vm5039_vm7, %v8715_v1 }
 0x28b   : > { %v6648_v41 = vpop.f32.mrb[8].mxu0 }
 0x28c   : > { %v8721_v22 = vadd.f32 %v6750_v59, %v6648_v41  ;;  %v4892_v29 = vpop.f32.mrb[9].mxu0  ;;  %v1148_v59 = vld [vmem:[#allocation2 + $0xb8] sm:$0xff] }
 0x28d   : > { %v8723_v54 = vadd.f32 %v6752_v12, %v4892_v29  ;;  %v6649_v50 = vpop.f32.mrb[10].mxu0 }
 0x28e   : > { %5050 = vst.msk [vmem:[#allocation2 + $0x50] sm:$0xff] %vm5039_vm7, %v8721_v22  ;;  %v8727_v7 = vadd.f32 %v6754_v6, %v6649_v50  ;;  %v4895_v63 = vpop.f32.mrb[11].mxu0  ;;  %v1146_v6 = vld [vmem:[#allocation2 + $0xa8] sm:$0xff] }
 0x28f   : > { %5048 = vst.msk [vmem:[#allocation2 + $0x40] sm:$0xff] %vm5039_vm7, %v8723_v54  ;;  %v8731_v35 = vadd.f32 %v6756_v5, %v4895_v63 }
 0x290   : > { %5051 = vst.msk [vmem:[#allocation2 + $0x58] sm:$0xff] %vm5039_vm7, %v8727_v7 }
 0x291   : > { %5049 = vst.msk [vmem:[#allocation2 + $0x48] sm:$0xff] %vm5039_vm7, %v8731_v35 }
 0x293   : > { %v6652_v34 = vpop.f32.mrb[12].mxu0 }
 0x294   : > { %v8740_v21 = vadd.f32 %v6758_v42, %v6652_v34  ;;  %v4908_v39 = vpop.f32.mrb[13].mxu0 }
 0x295   : > { %v8743_v44 = vadd.f32 %v6760_v23, %v4908_v39  ;;  %v6653_v45 = vpop.f32.mrb[14].mxu0  ;;  %v1151_v39 = vld [vmem:[#allocation2 + $0xd0] sm:$0xff] }
 0x296   : > { %5054 = vst.msk [vmem:[#allocation2 + $0x70] sm:$0xff] %vm5039_vm7, %v8740_v21  ;;  %v8747_v28 = vadd.f32 %v6762_v43, %v6653_v45  ;;  %v4911_v52 = vpop.f32.mrb[15].mxu0 }
 0x297   : > { %5052 = vst.msk [vmem:[#allocation2 + $0x60] sm:$0xff] %vm5039_vm7, %v8743_v44  ;;  %v8751_v20 = vadd.f32 %v6764_v62, %v4911_v52  ;;  %v1149_v62 = vld [vmem:[#allocation2 + $0xc0] sm:$0xff]  ;;  %v1152_v52 = vld [vmem:[#allocation2 + $0xd8] sm:$0xff] }
 0x298   : > { %5055 = vst.msk [vmem:[#allocation2 + $0x78] sm:$0xff] %vm5039_vm7, %v8747_v28 }
 0x299   : > { %5053 = vst.msk [vmem:[#allocation2 + $0x68] sm:$0xff] %vm5039_vm7, %v8751_v20 }
 0x29b   : > { %v6656_v30 = vpop.f32.mrb[16].mxu0 }
 0x29c   : > { %v4924_v60 = vpop.f32.mrb[17].mxu0 }
 0x29d   : > { %v6657_v3 = vpop.f32.mrb[18].mxu0 }
 0x29e   : > { %v4927_v58 = vpop.f32.mrb[19].mxu0 }
 0x2a2   : > { %v6448_v16 = vpop.f32.mrb[16].mxu1 }
 0x2a3   : > { %v6766_v8 = vadd.f32 %v6448_v16, %v1143_v18  ;;  %v6660_v33 = vpop.f32.mrb[20].mxu0  ;;  %v3314_v31 = vpop.f32.mrb[17].mxu1 }
 0x2a4   : > { %v6768_v46 = vadd.f32 %v3314_v31, %v1141_v36  ;;  %v4940_v57 = vpop.f32.mrb[21].mxu0  ;;  %v6449_v11 = vpop.f32.mrb[18].mxu1 }
 0x2a5   : > { %v8757_v53 = vadd.f32 %v6766_v8, %v6656_v30  ;;  %v6770_v55 = vadd.f32 %v6449_v11, %v1144_v47  ;;  %v6661_v0 = vpop.f32.mrb[22].mxu0  ;;  %v3317_v9 = vpop.f32.mrb[19].mxu1 }
 0x2a6   : > { %v8759_v48 = vadd.f32 %v6768_v46, %v4924_v60  ;;  %v6772_v14 = vadd.f32 %v3317_v9, %v1142_v25  ;;  %v4943_v56 = vpop.f32.mrb[23].mxu0  ;;  %v1153_v9 = vld [vmem:[#allocation2 + $0xe0] sm:$0xff] }
 0x2a7   : > { %5058 = vst.msk [vmem:[#allocation2 + $0x90] sm:$0xff] %vm5039_vm7, %v8757_v53  ;;  %v8763_v2 = vadd.f32 %v6770_v55, %v6657_v3 }
 0x2a8   : > { %5056 = vst.msk [vmem:[#allocation2 + $0x80] sm:$0xff] %vm5039_vm7, %v8759_v48  ;;  %v8767_v17 = vadd.f32 %v6772_v14, %v4927_v58  ;;  %v1150_v58 = vld [vmem:[#allocation2 + $0xc8] sm:$0xff] }
 0x2a9   : > { %5059 = vst.msk [vmem:[#allocation2 + $0x98] sm:$0xff] %vm5039_vm7, %v8763_v2 }
 0x2aa   : > { %5057 = vst.msk [vmem:[#allocation2 + $0x88] sm:$0xff] %vm5039_vm7, %v8767_v17  ;;  %v6452_v32 = vpop.f32.mrb[20].mxu1 }
 0x2ab   : > { %v6774_v51 = vadd.f32 %v6452_v32, %v1147_v24  ;;  %v6664_v12 = vpop.f32.mrb[24].mxu0  ;;  %v3330_v41 = vpop.f32.mrb[21].mxu1 }
 0x2ac   : > { %v6776_v29 = vadd.f32 %v3330_v41, %v1145_v37  ;;  %v4956_v5 = vpop.f32.mrb[25].mxu0  ;;  %v6453_v50 = vpop.f32.mrb[22].mxu1 }
 0x2ad   : > { %v8773_v63 = vadd.f32 %v6774_v51, %v6660_v33  ;;  %v6778_v27 = vadd.f32 %v6453_v50, %v1148_v59  ;;  %v6665_v10 = vpop.f32.mrb[26].mxu0  ;;  %v3333_v38 = vpop.f32.mrb[23].mxu1  ;;  %v1154_v59 = vld [vmem:[#allocation2 + $0xe8] sm:$0xff] }
 0x2ae   : > { %v8775_v42 = vadd.f32 %v6776_v29, %v4940_v57  ;;  %v6780_v26 = vadd.f32 %v3333_v38, %v1146_v6  ;;  %v4959_v23 = vpop.f32.mrb[27].mxu0 }
 0x2af   : > { %5062 = vst.msk [vmem:[#allocation2 + $0xb0] sm:$0xff] %vm5039_vm7, %v8773_v63  ;;  %v8779_v34 = vadd.f32 %v6778_v27, %v6661_v0  ;;  %v1155_v0 = vld [vmem:[#allocation2 + $0xf0] sm:$0xff] }
 0x2b0   : > { %5060 = vst.msk [vmem:[#allocation2 + $0xa0] sm:$0xff] %vm5039_vm7, %v8775_v42  ;;  %v8783_v43 = vadd.f32 %v6780_v26, %v4943_v56  ;;  %v1156_v56 = vld [vmem:[#allocation2 + $0xf8] sm:$0xff] }
 0x2b1   : > { %5063 = vst.msk [vmem:[#allocation2 + $0xb8] sm:$0xff] %vm5039_vm7, %v8779_v34 }
 0x2b2   : > { %5061 = vst.msk [vmem:[#allocation2 + $0xa8] sm:$0xff] %vm5039_vm7, %v8783_v43  ;;  %v6456_v45 = vpop.f32.mrb[24].mxu1 }
 0x2b3   : > { %v6782_v30 = vadd.f32 %v6456_v45, %v1151_v39  ;;  %v6668_v60 = vpop.f32.mrb[28].mxu0  ;;  %v3346_v3 = vpop.f32.mrb[25].mxu1  ;;  %v1159_v39 = vld [vmem:[#allocation2 + $0x110] sm:$0xff] }
 0x2b4   : > { %v6784_v18 = vadd.f32 %v3346_v3, %v1149_v62  ;;  %v4972_v36 = vpop.f32.mrb[29].mxu0  ;;  %v6457_v16 = vpop.f32.mrb[26].mxu1  ;;  %v1157_v62 = vld [vmem:[#allocation2 + $0x100] sm:$0xff]  ;;  %v1158_v3 = vld [vmem:[#allocation2 + $0x108] sm:$0xff] }
 0x2b5   : > { %v8789_v47 = vadd.f32 %v6782_v30, %v6664_v12  ;;  %v6786_v8 = vadd.f32 %v6457_v16, %v1152_v52  ;;  %v6669_v33 = vpop.f32.mrb[30].mxu0  ;;  %v3349_v31 = vpop.f32.mrb[27].mxu1  ;;  %v1160_v52 = vld [vmem:[#allocation2 + $0x118] sm:$0xff] }
 0x2b6   : > { %v8791_v25 = vadd.f32 %v6784_v18, %v4956_v5  ;;  %v6788_v46 = vadd.f32 %v3349_v31, %v1150_v58  ;;  %v4975_v57 = vpop.f32.mrb[31].mxu0 }
 0x2b7   : > { %5066 = vst.msk [vmem:[#allocation2 + $0xd0] sm:$0xff] %vm5039_vm7, %v8789_v47  ;;  %v8795_v11 = vadd.f32 %v6786_v8, %v6665_v10 }
 0x2b8   : > { %5064 = vst.msk [vmem:[#allocation2 + $0xc0] sm:$0xff] %vm5039_vm7, %v8791_v25  ;;  %v8799_v55 = vadd.f32 %v6788_v46, %v4959_v23 }
 0x2b9   : > { %5067 = vst.msk [vmem:[#allocation2 + $0xd8] sm:$0xff] %vm5039_vm7, %v8795_v11 }
 0x2ba   : > { %5065 = vst.msk [vmem:[#allocation2 + $0xc8] sm:$0xff] %vm5039_vm7, %v8799_v55  ;;  %v6460_v14 = vpop.f32.mrb[28].mxu1 }
 0x2bb   : > { %v6790_v24 = vadd.f32 %v6460_v14, %v1155_v0  ;;  %v6672_v37 = vpop.f32.mrb[32].mxu0  ;;  %v3362_v32 = vpop.f32.mrb[29].mxu1  ;;  %v7360_v0 = vld [vmem:[%s9101_s4] sm:$0xff] (!%p5921_p7)   ;;  %v7362_v14 = vld [vmem:[%s9101_s4 + $0x10] sm:$0xff] (!%p5921_p7)  }
 0x2bc   : > { %v6792_v51 = vadd.f32 %v3362_v32, %v1153_v9  ;;  %v4988_v12 = vpop.f32.mrb[33].mxu0  ;;  %v6461_v41 = vpop.f32.mrb[30].mxu1  ;;  %v7361_v9 = vld [vmem:[%s9101_s4 + $0x8] sm:$0xff] (!%p5921_p7)   ;;  %6674 = vmatprep.subr.bf16.mxu0 (!%p5921_p7), %v7360_v0  ;;  %7058 = vmatprep.subr.bf16.mxu1 (!%p5921_p7), %v7360_v0 }
 0x2bd   : > { %v8805_v6 = vadd.f32 %v6790_v24, %v6668_v60  ;;  %v6794_v29 = vadd.f32 %v6461_v41, %v1156_v56  ;;  %v6673_v5 = vpop.f32.mrb[34].mxu0  ;;  %v3365_v50 = vpop.f32.mrb[31].mxu1  ;;  %6675 = vmatpush3.bf16.msra.mxu0 (!%p5921_p7), %v7360_v0  ;;  %7062 = vmatpush3.bf16.msra.mxu1 (!%p5921_p7), %v7360_v0  ;;  %v8850_v56 = vld [vmem:[%s9099_s2] ss:$0 sm:$0xff] (!%p5921_p7) }
 0x2be   : > { %v8807_v27 = vadd.f32 %v6792_v51, %v4972_v36  ;;  %v6796_v10 = vadd.f32 %v3365_v50, %v1154_v59  ;;  %v4991_v38 = vpop.f32.mrb[35].mxu0  ;;  %6676 = vmatprep.subr.bf16.mxu0 (!%p5921_p7), %v7361_v9  ;;  %7059 = vmatprep.subr.bf16.mxu1 (!%p5921_p7), %v7361_v9  ;;  %v8855_v24 = vld [vmem:[%s9100_s3] ss:$0 sm:$0xff] (!%p5921_p7)  ;;  %v5088_v32 = vmul.f32 (!%p5921_p7), %v8699_v40, %v8850_v56 }
 0x2bf   : > { %5070 = vst.msk [vmem:[#allocation2 + $0xf0] sm:$0xff] %vm5039_vm7, %v8805_v6  ;;  %v8811_v26 = vadd.f32 %v6794_v29, %v6669_v33  ;;  %v5089_v59 = vmul.f32 (!%p5921_p7), %v8689_v4, %v8850_v56  ;;  %v5090_v51 = vmul.f32 (!%p5921_p7), %v8695_v19, %v8850_v56  ;;  %v5108_v41 = vmul.f32 (!%p5921_p7), %v8783_v43, %v8850_v56 }
 0x2c0   : > { %5068 = vst.msk [vmem:[#allocation2 + $0xe0] sm:$0xff] %vm5039_vm7, %v8807_v27  ;;  %v8815_v23 = vadd.f32 %v6796_v10, %v4975_v57  ;;  %v5109_v29 = vmul.f32 (!%p5921_p7), %v8773_v63, %v8850_v56  ;;  %v5131_v4 = vadd.f32 (!%p5921_p7), %v8855_v24, %v5088_v32  ;;  %v5113_v32 = vmul.f32 (!%p5921_p7), %v8789_v47, %v8850_v56 }
 0x2c1   : > { %5071 = vst.msk [vmem:[#allocation2 + $0xf8] sm:$0xff] %vm5039_vm7, %v8811_v26  ;;  %6677 = vmatpush3.bf16.msra.mxu0 (!%p5921_p7), %v7361_v9  ;;  %7063 = vmatpush3.bf16.msra.mxu1 (!%p5921_p7), %v7361_v9  ;;  %v5132_v19 = vadd.f32 (!%p5921_p7), %v8855_v24, %v5089_v59  ;;  %v5133_v43 = vadd.f32 (!%p5921_p7), %v8855_v24, %v5090_v51 }
 0x2c2   : > { %5069 = vst.msk [vmem:[#allocation2 + $0xe8] sm:$0xff] %vm5039_vm7, %v8815_v23  ;;  %v6464_v45 = vpop.f32.mrb[32].mxu1  ;;  %6678 = vmatprep.subr.bf16.mxu0 (!%p5921_p7), %v7362_v14  ;;  %7060 = vmatprep.subr.bf16.mxu1 (!%p5921_p7), %v7362_v14  ;;  %v5167_v50 = vmax.f32 (!%p5921_p7), %v5131_v4, 0.0  ;;  %v5095_v47 = vmul.f32 (!%p5921_p7), %v8723_v54, %v8850_v56  ;;  %v5098_v54 = vmul.f32 (!%p5921_p7), %v8727_v7, %v8850_v56 }
 0x2c3   : > { %v6798_v30 = vadd.f32 %v6464_v45, %v1159_v39  ;;  %v3378_v60 = vpop.f32.mrb[33].mxu1  ;;  %v5168_v10 = vmax.f32 (!%p5921_p7), %v5132_v19, 0.0  ;;  %v5169_v39 = vmax.f32 (!%p5921_p7), %v5133_v43, 0.0 }
 0x2c4   : > { %v6800_v58 = vadd.f32 %v3378_v60, %v1157_v62  ;;  %v6465_v18 = vpop.f32.mrb[34].mxu1  ;;  %5079 = sbr.rel (%p5921_p7) target bundleno = 966 (0x3c6), region = 130 }
 0x2c5   : > { %v8821_v36 = vadd.f32 %v6798_v30, %v6672_v37  ;;  %v6802_v16 = vadd.f32 %v6465_v18, %v1160_v52  ;;  %v3381_v8 = vpop.f32.mrb[35].mxu1  ;;  %v5087_v37 = vmul.f32 (!%p5921_p7), %v8691_v15, %v8850_v56  ;;  %v5110_v15 = vmul.f32 (!%p5921_p7), %v8779_v34, %v8850_v56  ;;  %6679 = vmatpush3.bf16.msra.mxu0 (!%p5921_p7), %v7362_v14 }
 0x2c6   : > { %v8823_v33 = vadd.f32 %v6800_v58, %v4988_v12  ;;  %v6804_v31 = vadd.f32 %v3381_v8, %v1158_v3  ;;  %v5107_v12 = vmul.f32 (!%p5921_p7), %v8775_v42, %v8850_v56  ;;  %v7363_v42 = vld [vmem:[%s9101_s4 + $0x18] sm:$0xff] (!%p5921_p7)   ;;  %v5151_v34 = vadd.f32 (!%p5921_p7), %v8855_v24, %v5108_v41  ;;  %7064 = vmatpush3.bf16.msra.mxu1 (!%p5921_p7), %v7362_v14 }
 0x2c7   : > { %5074 = vst.msk [vmem:[#allocation2 + $0x110] sm:$0xff] %vm5039_vm7, %v8821_v36  ;;  %v8827_v46 = vadd.f32 %v6802_v16, %v6673_v5  ;;  %v5130_v40 = vadd.f32 (!%p5921_p7), %v8855_v24, %v5087_v37  ;;  %v5153_v52 = vadd.f32 (!%p5921_p7), %v8855_v24, %v5110_v15  ;;  %v5091_v3 = vmul.f32 (!%p5921_p7), %v8707_v49, %v8850_v56 }
 0x2c8   : > { %5072 = vst.msk [vmem:[#allocation2 + $0x100] sm:$0xff] %vm5039_vm7, %v8823_v33  ;;  %v8831_v57 = vadd.f32 %v6804_v31, %v4991_v38  ;;  %v5150_v63 = vadd.f32 (!%p5921_p7), %v8855_v24, %v5107_v12  ;;  %v5152_v38 = vadd.f32 (!%p5921_p7), %v8855_v24, %v5109_v29  ;;  %v5187_v45 = vmax.f32 (!%p5921_p7), %v5151_v34, 0.0  ;;  %6680 = vmatprep.subr.bf16.mxu0 (!%p5921_p7), %v7363_v42 }
 0x2c9   : > { %5075 = vst.msk [vmem:[#allocation2 + $0x118] sm:$0xff] %vm5039_vm7, %v8827_v46  ;;  %v5166_v5 = vmax.f32 (!%p5921_p7), %v5130_v40, 0.0  ;;  %v5092_v58 = vmul.f32 (!%p5921_p7), %v8715_v1, %v8850_v56  ;;  %v5203_v18 = vpack.c.bf16 (!%p5921_p7), %v5169_v39, %v5168_v10  ;;  %7061 = vmatprep.subr.bf16.mxu1 (!%p5921_p7), %v7363_v42  ;;  %v5189_v8 = vmax.f32 (!%p5921_p7), %v5153_v52, 0.0  ;;  %6681 = vmatpush3.bf16.msra.mxu0 (!%p5921_p7), %v7363_v42 }
 0x2ca   : > { %5073 = vst.msk [vmem:[#allocation2 + $0x108] sm:$0xff] %vm5039_vm7, %v8831_v57  ;;  %v5186_v62 = vmax.f32 (!%p5921_p7), %v5150_v63, 0.0  ;;  %v5188_v60 = vmax.f32 (!%p5921_p7), %v5152_v38, 0.0  ;;  %v5093_v31 = vmul.f32 (!%p5921_p7), %v8705_v13, %v8850_v56  ;;  %v5134_v0 = vadd.f32 (!%p5921_p7), %v8855_v24, %v5091_v3  ;;  %7065 = vmatpush3.bf16.msra.mxu1 (!%p5921_p7), %v7363_v42 }
 0x2cb   : > { %v5202_v30 = vpack.c.bf16 %v5167_v50, %v5166_v5  ;;  %v5135_v9 = vadd.f32 %v8855_v24, %v5092_v58  ;;  %v5094_v49 = vmul.f32 %v8711_v61, %v8850_v56  ;;  %v5111_v1 = vmul.f32 %v8791_v25, %v8850_v56 }
 0x2cc   : > { %v5212_v16 = vpack.c.bf16 %v5187_v45, %v5186_v62  ;;  %v5213_v14 = vpack.c.bf16 %v5189_v8, %v5188_v60  ;;  %v5136_v37 = vadd.f32 %v8855_v24, %v5093_v31  ;;  %v5112_v13 = vmul.f32 %v8799_v55, %v8850_v56 }
 0x2cd   : > { %6682 = vmatprep.mubr.msk.bf16.mxu0 %vm5039_vm7, %v5202_v30  ;;  %v5170_v59 = vmax.f32 %v5134_v0, 0.0  ;;  %v5171_v51 = vmax.f32 %v5135_v9, 0.0  ;;  %v5137_v61 = vadd.f32 %v8855_v24, %v5094_v49  ;;  %v5154_v12 = vadd.f32 %v8855_v24, %v5111_v1 }
 0x2ce   : > { %6702 = vmatprep.mubr.msk.bf16.mxu1 %vm5039_vm7, %v5212_v16  ;;  %v5172_v25 = vmax.f32 %v5136_v37, 0.0  ;;  %v5155_v41 = vadd.f32 %v8855_v24, %v5112_v13  ;;  %v5114_v29 = vmul.f32 %v8795_v11, %v8850_v56  ;;  %v5156_v15 = vadd.f32 %v8855_v24, %v5113_v32  ;;  %6683 = vmatmul.mubr.msk.bf16.vlgmr.msra.gmra.mrb[0].mxu0 %vm5039_vm7, %v5203_v18 }
 0x2cf   : > { %v5204_v55 = vpack.c.bf16 %v5171_v51, %v5170_v59  ;;  %v5173_v40 = vmax.f32 %v5137_v61, 0.0  ;;  %v5190_v4 = vmax.f32 %v5154_v12, 0.0  ;;  %6703 = vmatmul.mubr.msk.bf16.vlgmr.msra.gmra.mrb[0].mxu1 %vm5039_vm7, %v5213_v14  ;;  %v5096_v63 = vmul.f32 %v8731_v35, %v8850_v56 }
 0x2d0   : > { %v5191_v19 = vmax.f32 %v5155_v41, 0.0  ;;  %v5157_v42 = vadd.f32 %v8855_v24, %v5114_v29  ;;  %v5192_v43 = vmax.f32 %v5156_v15, 0.0  ;;  %v5138_v34 = vadd.f32 %v8855_v24, %v5095_v47 }
 0x2d1   : > { %6686 = vmatprep.mubr.msk.bf16.mxu0 %vm5039_vm7, %v5204_v55  ;;  %v5205_v11 = vpack.c.bf16 %v5173_v40, %v5172_v25  ;;  %v5097_v5 = vmul.f32 %v8721_v22, %v8850_v56  ;;  %v5139_v38 = vadd.f32 %v8855_v24, %v5096_v63  ;;  %v5115_v39 = vmul.f32 %v8807_v27, %v8850_v56 }
 0x2d2   : > { %v5214_v50 = vpack.c.bf16 %v5191_v19, %v5190_v4  ;;  %v5193_v10 = vmax.f32 %v5157_v42, 0.0  ;;  %v5174_v62 = vmax.f32 %v5138_v34, 0.0  ;;  %v5141_v45 = vadd.f32 %v8855_v24, %v5098_v54 }
 0x2d3   : > { %v5140_v35 = vadd.f32 %v8855_v24, %v5097_v5  ;;  %v5116_v52 = vmul.f32 %v8815_v23, %v8850_v56  ;;  %v5175_v30 = vmax.f32 %v5139_v38, 0.0  ;;  %v5158_v7 = vadd.f32 %v8855_v24, %v5115_v39 }
 0x2d4   : > { %6706 = vmatprep.mubr.msk.bf16.mxu1 %vm5039_vm7, %v5214_v50  ;;  %v5215_v22 = vpack.c.bf16 %v5193_v10, %v5192_v43  ;;  %v5117_v60 = vmul.f32 %v8805_v6, %v8850_v56  ;;  %v5118_v58 = vmul.f32 %v8811_v26, %v8850_v56  ;;  %v5099_v23 = vmul.f32 %v8743_v44, %v8850_v56 }
 0x2d5   : > { %v5176_v3 = vmax.f32 %v5140_v35, 0.0  ;;  %v5159_v27 = vadd.f32 %v8855_v24, %v5116_v52  ;;  %v5206_v18 = vpack.c.bf16 %v5175_v30, %v5174_v62  ;;  %v5194_v16 = vmax.f32 %v5158_v7, 0.0 }
 0x2d6   : > { %v5160_v8 = vadd.f32 %v8855_v24, %v5117_v60  ;;  %v5177_v31 = vmax.f32 %v5141_v45, 0.0  ;;  %v5161_v9 = vadd.f32 %v8855_v24, %v5118_v58  ;;  %v5100_v6 = vmul.f32 %v8751_v20, %v8850_v56  ;;  %6687 = vmatmul.mubr.msk.bf16.gmra.mrb[4].mxu0 %vm5039_vm7, %v5205_v11 }
 0x2d7   : > { %v5195_v0 = vmax.f32 %v5159_v27, 0.0  ;;  %6707 = vmatmul.mubr.msk.bf16.gmra.mrb[4].mxu1 %vm5039_vm7, %v5215_v22  ;;  %v5142_v26 = vadd.f32 %v8855_v24, %v5099_v23  ;;  %v5101_v1 = vmul.f32 %v8740_v21, %v8850_v56  ;;  %v5102_v44 = vmul.f32 %v8747_v28, %v8850_v56  ;;  %6690 = vmatprep.mubr.msk.bf16.mxu0 %vm5039_vm7, %v5206_v18 }
 0x2d8   : > { %v5196_v49 = vmax.f32 %v5160_v8, 0.0  ;;  %v5197_v37 = vmax.f32 %v5161_v9, 0.0  ;;  %v5143_v13 = vadd.f32 %v8855_v24, %v5100_v6  ;;  %v5119_v20 = vmul.f32 %v8823_v33, %v8850_v56 }
 0x2d9   : > { %v5216_v14 = vpack.c.bf16 %v5195_v0, %v5194_v16  ;;  %v5178_v32 = vmax.f32 %v5142_v26, 0.0  ;;  %v5144_v59 = vadd.f32 %v8855_v24, %v5101_v1  ;;  %v5120_v51 = vmul.f32 %v8831_v57, %v8850_v56 }
 0x2da   : > { %v5179_v21 = vmax.f32 %v5143_v13, 0.0  ;;  %v5145_v28 = vadd.f32 %v8855_v24, %v5102_v44  ;;  %v5162_v61 = vadd.f32 %v8855_v24, %v5119_v20  ;;  %v5121_v12 = vmul.f32 %v8821_v36, %v8850_v56 }
 0x2db   : > { %6710 = vmatprep.mubr.msk.bf16.mxu1 %vm5039_vm7, %v5216_v14  ;;  %v5207_v25 = vpack.c.bf16 %v5177_v31, %v5176_v3  ;;  %v5217_v41 = vpack.c.bf16 %v5197_v37, %v5196_v49  ;;  %v5163_v33 = vadd.f32 %v8855_v24, %v5120_v51  ;;  %v5122_v29 = vmul.f32 %v8827_v46, %v8850_v56 }
 0x2dc   : > { %v5208_v15 = vpack.c.bf16 %v5179_v21, %v5178_v32  ;;  %v5198_v55 = vmax.f32 %v5162_v61, 0.0  ;;  %v5164_v57 = vadd.f32 %v8855_v24, %v5121_v12  ;;  %v5103_v40 = vmul.f32 %v8759_v48, %v8850_v56 }
 0x2dd   : > { %v5180_v4 = vmax.f32 %v5144_v59, 0.0  ;;  %v5199_v47 = vmax.f32 %v5163_v33, 0.0  ;;  %v5165_v19 = vadd.f32 %v8855_v24, %v5122_v29  ;;  %v5104_v36 = vmul.f32 %v8767_v17, %v8850_v56 }
 0x2de   : > { %v5181_v42 = vmax.f32 %v5145_v28, 0.0  ;;  %v5200_v43 = vmax.f32 %v5164_v57, 0.0  ;;  %v5146_v63 = vadd.f32 %v8855_v24, %v5103_v40  ;;  %v5105_v46 = vmul.f32 %v8757_v53, %v8850_v56  ;;  %6691 = vmatmul.mubr.msk.bf16.gmra.mrb[8].mxu0 %vm5039_vm7, %v5207_v25 }
 0x2df   : > { %6711 = vmatmul.mubr.msk.bf16.gmra.mrb[8].mxu1 %vm5039_vm7, %v5217_v41  ;;  %v5218_v11 = vpack.c.bf16 %v5199_v47, %v5198_v55  ;;  %v5201_v48 = vmax.f32 %v5165_v19, 0.0  ;;  %v5147_v34 = vadd.f32 %v8855_v24, %v5104_v36  ;;  %v5106_v5 = vmul.f32 %v8763_v2, %v8850_v56  ;;  %6694 = vmatprep.mubr.msk.bf16.mxu0 %vm5039_vm7, %v5208_v15 }
 0x2e0   : > { %v5182_v17 = vmax.f32 %v5146_v63, 0.0  ;;  %v5209_v50 = vpack.c.bf16 %v5181_v42, %v5180_v4  ;;  %v5148_v10 = vadd.f32 %v8855_v24, %v5105_v46 }
 0x2e1   : > { %6714 = vmatprep.mubr.msk.bf16.mxu1 %vm5039_vm7, %v5218_v11  ;;  %v5183_v54 = vmax.f32 %v5147_v34, 0.0  ;;  %v5219_v53 = vpack.c.bf16 %v5201_v48, %v5200_v43  ;;  %v5149_v38 = vadd.f32 %v8855_v24, %v5106_v5 }
 0x2e2   : > { %v5184_v2 = vmax.f32 %v5148_v10, 0.0 }
 0x2e3   : > { %v5210_v39 = vpack.c.bf16 %v5183_v54, %v5182_v17  ;;  %v5185_v56 = vmax.f32 %v5149_v38, 0.0 }
 0x2e5   : > { %v5211_v62 = vpack.c.bf16 %v5185_v56, %v5184_v2 }
 0x2e6   : > { %6695 = vmatmul.mubr.msk.bf16.gmra.mrb[12].mxu0 %vm5039_vm7, %v5209_v50 }
 0x2e7   : > { %6715 = vmatmul.mubr.msk.bf16.gmra.mrb[12].mxu1 %vm5039_vm7, %v5219_v53  ;;  %6698 = vmatprep.mubr.msk.bf16.mxu0 %vm5039_vm7, %v5210_v39 }
 0x2ee   : > { %6699 = vmatmul.mubr.msk.bf16.gmra.mrb[16].mxu0 %vm5039_vm7, %v5211_v62 }
 0x3a1   : > { %v6684_v35 = vpop.f32.mrb[0].mxu0 }
 0x3a2   : > { %v6704_v45 = vpop.f32.mrb[0].mxu1  ;;  %5485 = vst [vmem:[%s7901_s16 + $0x10] sm:$0xff] %v6684_v35  ;;  %v5340_v24 = vpop.f32.mrb[1].mxu0 }
 0x3a3   : > { %5505 = vst [vmem:[%s7901_s16 + $0xb0] sm:$0xff] %v6704_v45  ;;  %v5420_v52 = vpop.f32.mrb[1].mxu1  ;;  %5483 = vst [vmem:[%s7901_s16] sm:$0xff] %v5340_v24  ;;  %v6685_v22 = vpop.f32.mrb[2].mxu0 }
 0x3a4   : > { %5503 = vst [vmem:[%s7901_s16 + $0xa0] sm:$0xff] %v5420_v52  ;;  %v6705_v30 = vpop.f32.mrb[2].mxu1  ;;  %5486 = vst [vmem:[%s7901_s16 + $0x18] sm:$0xff] %v6685_v22  ;;  %v5343_v7 = vpop.f32.mrb[3].mxu0 }
 0x3a5   : > { %5506 = vst [vmem:[%s7901_s16 + $0xb8] sm:$0xff] %v6705_v30  ;;  %v5423_v60 = vpop.f32.mrb[3].mxu1  ;;  %5484 = vst [vmem:[%s7901_s16 + $0x8] sm:$0xff] %v5343_v7 }
 0x3a6   : > { %5504 = vst [vmem:[%s7901_s16 + $0xa8] sm:$0xff] %v5423_v60 }
 0x3a9   : > { %v6688_v3 = vpop.f32.mrb[4].mxu0 }
 0x3aa   : > { %v6708_v27 = vpop.f32.mrb[4].mxu1  ;;  %5489 = vst [vmem:[%s7901_s16 + $0x30] sm:$0xff] %v6688_v3  ;;  %v5356_v58 = vpop.f32.mrb[5].mxu0 }
 0x3ab   : > { %5509 = vst [vmem:[%s7901_s16 + $0xd0] sm:$0xff] %v6708_v27  ;;  %v5436_v18 = vpop.f32.mrb[5].mxu1  ;;  %5487 = vst [vmem:[%s7901_s16 + $0x20] sm:$0xff] %v5356_v58  ;;  %v6689_v16 = vpop.f32.mrb[6].mxu0 }
 0x3ac   : > { %5507 = vst [vmem:[%s7901_s16 + $0xc0] sm:$0xff] %v5436_v18  ;;  %v6709_v8 = vpop.f32.mrb[6].mxu1  ;;  %5490 = vst [vmem:[%s7901_s16 + $0x38] sm:$0xff] %v6689_v16  ;;  %v5359_v23 = vpop.f32.mrb[7].mxu0 }
 0x3ad   : > { %5510 = vst [vmem:[%s7901_s16 + $0xd8] sm:$0xff] %v6709_v8  ;;  %v5439_v31 = vpop.f32.mrb[7].mxu1  ;;  %5488 = vst [vmem:[%s7901_s16 + $0x28] sm:$0xff] %v5359_v23 }
 0x3ae   : > { %5508 = vst [vmem:[%s7901_s16 + $0xc8] sm:$0xff] %v5439_v31 }
 0x3b1   : > { %v6692_v0 = vpop.f32.mrb[8].mxu0 }
 0x3b2   : > { %v6712_v9 = vpop.f32.mrb[8].mxu1  ;;  %5493 = vst [vmem:[%s7901_s16 + $0x50] sm:$0xff] %v6692_v0  ;;  %v5372_v6 = vpop.f32.mrb[9].mxu0 }
 0x3b3   : > { %5513 = vst [vmem:[%s7901_s16 + $0xf0] sm:$0xff] %v6712_v9  ;;  %v5452_v49 = vpop.f32.mrb[9].mxu1  ;;  %5491 = vst [vmem:[%s7901_s16 + $0x40] sm:$0xff] %v5372_v6  ;;  %v6693_v26 = vpop.f32.mrb[10].mxu0 }
 0x3b4   : > { %5511 = vst [vmem:[%s7901_s16 + $0xe0] sm:$0xff] %v5452_v49  ;;  %v6713_v1 = vpop.f32.mrb[10].mxu1  ;;  %5494 = vst [vmem:[%s7901_s16 + $0x58] sm:$0xff] %v6693_v26  ;;  %v5375_v44 = vpop.f32.mrb[11].mxu0 }
 0x3b5   : > { %5514 = vst [vmem:[%s7901_s16 + $0xf8] sm:$0xff] %v6713_v1  ;;  %v5455_v14 = vpop.f32.mrb[11].mxu1  ;;  %5492 = vst [vmem:[%s7901_s16 + $0x48] sm:$0xff] %v5375_v44 }
 0x3b6   : > { %5512 = vst [vmem:[%s7901_s16 + $0xe8] sm:$0xff] %v5455_v14 }
 0x3b9   : > { %v6696_v37 = vpop.f32.mrb[12].mxu0 }
 0x3ba   : > { %v6716_v13 = vpop.f32.mrb[12].mxu1  ;;  %5497 = vst [vmem:[%s7901_s16 + $0x70] sm:$0xff] %v6696_v37  ;;  %v5388_v20 = vpop.f32.mrb[13].mxu0 }
 0x3bb   : > { %5517 = vst [vmem:[%s7901_s16 + $0x110] sm:$0xff] %v6716_v13  ;;  %v5468_v32 = vpop.f32.mrb[13].mxu1  ;;  %5495 = vst [vmem:[%s7901_s16 + $0x60] sm:$0xff] %v5388_v20  ;;  %v6697_v59 = vpop.f32.mrb[14].mxu0 }
 0x3bc   : > { %5515 = vst [vmem:[%s7901_s16 + $0x100] sm:$0xff] %v5468_v32  ;;  %v6717_v51 = vpop.f32.mrb[14].mxu1  ;;  %5498 = vst [vmem:[%s7901_s16 + $0x78] sm:$0xff] %v6697_v59  ;;  %v5391_v21 = vpop.f32.mrb[15].mxu0 }
 0x3bd   : > { %5518 = vst [vmem:[%s7901_s16 + $0x118] sm:$0xff] %v6717_v51  ;;  %v5471_v28 = vpop.f32.mrb[15].mxu1  ;;  %5496 = vst [vmem:[%s7901_s16 + $0x68] sm:$0xff] %v5391_v21 }
 0x3be   : > { %5516 = vst [vmem:[%s7901_s16 + $0x108] sm:$0xff] %v5471_v28 }
 0x3c1   : > { %v6700_v61 = vpop.f32.mrb[16].mxu0 }
 0x3c2   : > { %5501 = vst [vmem:[%s7901_s16 + $0x90] sm:$0xff] %v6700_v61  ;;  %v5404_v12 = vpop.f32.mrb[17].mxu0 }
 0x3c3   : > { %5499 = vst [vmem:[%s7901_s16 + $0x80] sm:$0xff] %v5404_v12  ;;  %v6701_v25 = vpop.f32.mrb[18].mxu0 }
 0x3c4   : > { %5502 = vst [vmem:[%s7901_s16 + $0x98] sm:$0xff] %v6701_v25  ;;  %v5407_v41 = vpop.f32.mrb[19].mxu0 }
 0x3c5   : > { %5500 = vst [vmem:[%s7901_s16 + $0x88] sm:$0xff] %v5407_v41 }
 0x3c6 PF: > { %s7072_s23 = smul.u32 4608, %s7478_s26  ;;  %s5533_s5 = sshll.u32 %s7901_s16, 4  ;;  %s9029_s5 = int_to_ptr.vmem [resolvable:$true] %s5533_s5 }
 0x3c7   : > { %s9114_s11 = sld [smem:[#allocation11_spill]]  ;;  %s9033_s9 = scalar_lea.sflag [#allocation6], %s1079_s30 }
 0x3c8   : > { %s7364_s6 = scalar_lea.vmem %s9029_s5, 4608  ;;  %s7493_s26 = smov [#allocation5]  }
 0x3c9   : > { %p7365_p8 = scmp.ne.s32.totalorder %s9029_s5, %s7364_s6  ;;  %s7368_s16 = sshll.u32 %s7493_s26, 4  ;;  %s7369_s16 = int_to_ptr.vmem [resolvable:$false] %s7368_s16 }
 0x3ca   : > { %s7370_s10 = scalar_lea.vmem %s7369_s16, 9216  ;;  %p7371_p11 = scmp.lt.s32.totalorder %s9029_s5, %s7369_s16 }
 0x3cb   : > { %p7366_p9 = pnand %p7365_p8, %p7628_p0  ;;  %p7372_p12 = scmp.lt.s32.totalorder %s7370_s10, %s7364_s6 }
 0x3cd   : > { %s9027_s25 = scalar_lea.hbm %s9114_s11, %s7072_s23  ;;  %p7367_p10 = pneg %p7366_p9 }
 0x3ce   : > { %p7373_p13 = por %p7372_p12, %p7371_p11 }
 0x3d0   : > { %p7374_p2 = pnand %p7373_p13, %p7367_p10 }
 0x3d2   : > { %7377 = shalt.err (!%p7374_p2)
}
 0x3d3   : > { %s7378_s30 = scalar_lea.hbm %s9027_s25, 4608  ;;  %s7382_s23 = scalar_lea.hbm %s9114_s11, 9216 }
 0x3d4   : > { %p7379_p3 = scmp.ne.s32.totalorder %s9027_s25, %s7378_s30  ;;  %p7383_p6 = scmp.lt.u32.totalorder %s9027_s25, %s9114_s11 }
 0x3d5   : > { %p7384_p7 = scmp.lt.u32.totalorder %s7382_s23, %s7378_s30  ;;  %p7386_p9 = scmp.lt.u32.totalorder %s7378_s30, %s9027_s25 }
 0x3d6   : > { %p7380_p4 = pnand %p7379_p3, %p7628_p0 }
 0x3d7   : > { %p7385_p8 = por %p7384_p7, %p7383_p6 }
 0x3d8   : > { %p7381_p5 = pneg %p7380_p4 }
 0x3d9   : > { %p7387_p10 = por %p7386_p9, %p7385_p8 }
 0x3db   : > { %p7388_p11 = pnand %p7387_p10, %p7381_p5 }
 0x3dd   : > { %7391 = shalt.err (!%p7388_p11)
}
 0x3de   : > { %s7494_s6 = smov 128   ;;  %s7495_s26 = smov 8  }
 0x3df   : > { %7073 = dma.vmem_to_hbm [thread:$0]  (%p7628_p0), %s9029_s5, 4608, %s9027_s25, %s9033_s9, %s7494_s6, %s7494_s6, %s7495_s26  }
 0x3e0 PF: > { %p7079_p12 = scmp.ge.s32.totalorder %s7490_s29, 2  ;;  %s5548_s16 = sand.u32 1, %s7446_s18  }
 0x3e1   : > { %s5549_s10 = scalar_lea.sflag [#allocation6], %s5548_s16 }
 0x3e2   : > { %p7076_p13 = pnand %p7079_p12, %p7632_p1 }
 0x3e4   : > { %7441 = dma.done.wait (!%p7076_p13), %s5549_s10, 4608  }
 0x3e5   : > { %7443 = vsyncadd (!%p7076_p13), %s5549_s10, 4294962688  ;;  %s18_s29 = sadd.s32 1, %s7490_s29   ;;  %s9115_s12 = sld [smem:[#allocation10_spill]] }
 0x3e6   : > { %p15_p2 = scmp.ge.s32.totalorder %s18_s29, 6   ;;  %s9116_s5 = sld [smem:[#allocation8_spill]] }
 0x3e7   : > { %s9117_s9 = sld [smem:[#allocation9_spill]]  ;;  %s9118_s18 = smov %s7450_s19 }
 0x3e8   : > { %s9119_s19 = smov %s7454_s20  ;;  %s9120_s20 = smov %s7619_s7 }
 0x3e9   : > { %s9121_s21 = smov %s7462_s22  ;;  %s9122_s22 = smov %s7609_s13 }
 0x3ea   : > { %s9123_s23 = smov %s7470_s24  ;;  %s9125_s25 = smov %s7482_s27 }
 0x3eb   : > { %s9124_s24 = smov %s9115_s12  ;;  %s9126_s26 = smov %s7486_s28 }
 0x3ec   : > { %s9127_s27 = smov %s9116_s5  ;;  %17 = sbr.rel (!%p15_p2) target bundleno = 9 (0x9), region = 186 }
 0x3ed   : > { %s9128_s28 = smov %s9117_s9 }
 0x3f3   :  { %5554 = vsyncpa [#allocation6], 1 }
 0x3f4   :  { %5556 = vsyncpa [#allocation6 + $0x1], 1 }

</bundles_post_ra>
